<compile_context>
chip_gen: v6e
topology: v6e:2x2x1
jax: 0.10.0
libtpu: 0.0.40
codegen_flags: <defaults>
</compile_context>

<pallas_src>
import jax
import jax.numpy as jnp
from jax.experimental import pallas as pl
from jax.experimental.pallas import tpu as pltpu

# ---------------- KAN hyper-parameters (efficient-kan defaults) ----------------
N_CONVS = 5
KSIZE = 3               # kernel_size = (3, 3)
STRIDE = 2              # stride = (2, 2)
PAD = 1                 # padding = (1, 1)
GRID_SIZE = 5
SPLINE_ORDER = 3
GRID_RANGE = (-1.0, 1.0)
GRID_H = (GRID_RANGE[1] - GRID_RANGE[0]) / GRID_SIZE
N_COEF = GRID_SIZE + SPLINE_ORDER          # 8 spline basis functions per input
K2 = KSIZE * KSIZE                         # 9 inputs per KANLinear

LANE = 128                                 # TPU lane width
SUB = 16                                   # sublane-aligned slab height (>= K2)
N_SLABS = N_COEF + 1                       # SiLU(x) slab + 8 basis slabs
FUSED_K = N_SLABS * SUB                    # 144 = contraction dim of fused matmul

# B-spline knot vector (python floats -> constant-folded inside the kernel).
KNOTS = [GRID_RANGE[0] + GRID_H * (t - SPLINE_ORDER)
         for t in range(GRID_SIZE + 2 * SPLINE_ORDER + 1)]   # 12 scalar knots


def _round_up(x, m):
    return ((x + m - 1) // m) * m


def _choose_tile(n, max_tile=512, min_tile=128):
    """Largest power-of-two tile <= max_tile that still leaves >= 2 grid steps
    (keeps both v7x TensorCores busy); always a multiple of 128 lanes."""
    tile = max_tile
    while tile > min_tile and _round_up(n, tile) // tile < 2:
        tile //= 2
    return tile


# ============================ Kernel A: KAN conv ==============================
def kan_conv_kernel(patches_ref, w_ref, out_ref, op_ref):
    """patches_ref: (9, TN); w_ref: (5, 144); out_ref: (5, TN);
    op_ref: (144, TN) VMEM operand scratch."""
    tn = patches_ref.shape[1]

    # Zero the operand scratch every grid step: the 7 pad rows of each 16-row
    # slab must be finite (their fused weights are 0), and per-step zeroing
    # stays correct under megacore sharding of the "parallel" grid axis.
    op_ref[...] = jnp.zeros_like(op_ref)

    # Process the tile in 128-lane chunks so the Cox-de-Boor recursion only
    # keeps ~2-vreg-wide bases live (no vreg spills even at TN=512).
    for c0 in range(0, tn, LANE):
        x = patches_ref[:, c0:c0 + LANE]                       # (9, 128) f32

        # ---- base path slab: SiLU(x)  (F.linear(base_activation(x), base_w)) ----
        op_ref[0:K2, c0:c0 + LANE] = jax.nn.silu(x)

        # ---- spline path: order-0 indicators, Cox-de-Boor up to order 3 ----
        bases = [jnp.where((x >= KNOTS[t]) & (x < KNOTS[t + 1]), 1.0, 0.0)
                 for t in range(len(KNOTS) - 1)]               # 11 x (9, 128)
        for k in range(1, SPLINE_ORDER + 1):
            inv = 1.0 / (GRID_H * k)        # uniform grid -> constant denominators
            bases = [((x - KNOTS[t]) * inv) * bases[t]
                     + ((KNOTS[t + k + 1] - x) * inv) * bases[t + 1]
                     for t in range(len(bases) - 1)]           # finally 8 x (9, 128)

        for t in range(N_COEF):
            s = (t + 1) * SUB                                  # 16-row aligned slab
            op_ref[s:s + K2, c0:c0 + LANE] = bases[t]

    # Single fused MXU matmul: base + all 8 spline coefficients at once.
    # (5, 144) @ (144, TN) -> (5, TN); output is lane-dense.
    out_ref[...] = jnp.dot(w_ref[...], op_ref[...],
                           preferred_element_type=jnp.float32)


def kan_conv_apply(patches_t, w_fused):
    """patches_t: (9, N) -> (5, N): apply all 5 KANLinear(9 -> 1) conv kernels."""
    n = patches_t.shape[1]
    tn = _choose_tile(n)
    n_pad = _round_up(n, tn)
    patches_p = jnp.pad(patches_t, ((0, 0), (0, n_pad - n)))

    out = pl.pallas_call(
        kan_conv_kernel,
        out_shape=jax.ShapeDtypeStruct((N_CONVS, n_pad), jnp.float32),
        grid_spec=pltpu.PrefetchScalarGridSpec(
            num_scalar_prefetch=0,
            grid=(n_pad // tn,),
            in_specs=[
                pl.BlockSpec((K2, tn), lambda i: (0, i)),
                pl.BlockSpec((N_CONVS, FUSED_K), lambda i: (0, 0)),
            ],
            out_specs=pl.BlockSpec((N_CONVS, tn), lambda i: (0, i)),
            scratch_shapes=[pltpu.VMEM((FUSED_K, tn), jnp.float32)],
        ),
        compiler_params=pltpu.CompilerParams(
            dimension_semantics=("parallel",),
            vmem_limit_bytes=32 * 1024 * 1024),
    )(patches_p, w_fused)
    return out[:, :n]


# ============ Kernel B: maxpool + linear1 + linear2 + log_softmax =============
def head_kernel(a_ref, b_ref, w1_ref, b1_ref, w2_ref, b2_ref, out_ref, acc_ref):
    k = pl.program_id(0)

    @pl.when(k == 0)
    def _():
        acc_ref[...] = jnp.zeros_like(acc_ref)

    # a/b hold the two elements of every MaxPool2d((1,2),(2,2)) window, already
    # flattened in NCHW order; accumulate pooled @ W1 over feature tiles.
    pooled = jnp.maximum(a_ref[...], b_ref[...])                      # (Bp, TF)
    acc_ref[...] += jnp.dot(pooled, w1_ref[...],
                            preferred_element_type=jnp.float32)       # (Bp, 256)

    @pl.when(k == pl.num_programs(0) - 1)
    def _():
        h = acc_ref[...] + b1_ref[...]
        logits = jnp.dot(h, w2_ref[...],
                         preferred_element_type=jnp.float32) + b2_ref[...]
        m = jnp.max(logits, axis=1, keepdims=True)
        z = logits - m
        out_ref[...] = z - jnp.log(jnp.sum(jnp.exp(z), axis=1, keepdims=True))


def head_apply(a, b, w1, b1, w2, b2, *, feat_tile=256):
    bsz, feat = a.shape
    hid = w1.shape[1]
    ncls = w2.shape[1]
    bp = _round_up(bsz, 8)                       # pad batch to 8 sublanes
    feat_pad = _round_up(feat, feat_tile)        # grid over the feature axis

    a_p = jnp.pad(a, ((0, bp - bsz), (0, feat_pad - feat)))
    b_p = jnp.pad(b, ((0, bp - bsz), (0, feat_pad - feat)))
    w1_p = jnp.pad(w1, ((0, feat_pad - feat), (0, 0)))

    out = pl.pallas_call(
        head_kernel,
        out_shape=jax.ShapeDtypeStruct((bp, ncls), jnp.float32),
        grid_spec=pltpu.PrefetchScalarGridSpec(
            num_scalar_prefetch=0,
            grid=(feat_pad // feat_tile,),
            in_specs=[
                pl.BlockSpec((bp, feat_tile), lambda k: (0, k)),
                pl.BlockSpec((bp, feat_tile), lambda k: (0, k)),
                pl.BlockSpec((feat_tile, hid), lambda k: (k, 0)),
                pl.BlockSpec((1, hid), lambda k: (0, 0)),
                pl.BlockSpec((hid, ncls), lambda k: (0, 0)),
                pl.BlockSpec((1, ncls), lambda k: (0, 0)),
            ],
            out_specs=pl.BlockSpec((bp, ncls), lambda k: (0, 0)),
            scratch_shapes=[pltpu.VMEM((bp, hid), jnp.float32)],
        ),
        compiler_params=pltpu.CompilerParams(
            dimension_semantics=("arbitrary",),   # reduction over feature tiles
            vmem_limit_bytes=32 * 1024 * 1024),
    )(a_p, b_p, w1_p, b1.reshape(1, -1), w2, b2.reshape(1, -1))
    return out[:bsz]


# ================================ JAX glue =====================================
def extract_patches_t(x):
    """im2col (k=3, stride=2, pad=1) emitted directly in transposed layout
    (9, B*C*Ho*Wo); per-channel patch ordering dh*3+dw matches nn.Unfold."""
    b, c, h, w = x.shape
    xp = jnp.pad(x, ((0, 0), (0, 0), (PAD, PAD), (PAD, PAD)))
    ho = (h + 2 * PAD - KSIZE) // STRIDE + 1
    wo = (w + 2 * PAD - KSIZE) // STRIDE + 1
    rows = []
    for dh in range(KSIZE):
        for dw in range(KSIZE):
            rows.append(
                xp[:, :,
                   dh:dh + STRIDE * (ho - 1) + 1:STRIDE,
                   dw:dw + STRIDE * (wo - 1) + 1:STRIDE].reshape(-1))
    return jnp.stack(rows, axis=0), ho, wo          # (9, N), N = b*c*ho*wo


def build_fused_conv_weight(base_w, spline_weight, spline_scaler):
    """base_w: (9, 5) [in, conv]; spline_weight: (5, 9, 8); spline_scaler: (5, 9)
    -> (5, 144) fused weight matching the kernel's 16-row slab layout."""
    scaled = spline_weight * spline_scaler[:, :, None]       # (conv, in, coef)
    w = jnp.zeros((N_CONVS, FUSED_K), jnp.float32)
    w = w.at[:, 0:K2].set(base_w.T)                          # slab 0: SiLU(x)
    for t in range(N_COEF):
        s = (t + 1) * SUB
        w = w.at[:, s:s + K2].set(scaled[:, :, t])           # slab t+1: basis t
    return w


def kanc_mlp_forward(x1, x2, x3, params):
    # torch.cat((x1, x2, x3), dim=3)
    x = jnp.concatenate([x1, x2, x3], axis=3)                # (B, C, H, 3W) NCHW
    b, c = x.shape[0], x.shape[1]

    # KAN_Convolutional_Layer(n_convs=5, k=3, stride=2, pad=1)
    patches_t, ho, wo = extract_patches_t(x)                 # (9, N)
    conv = kan_conv_apply(patches_t, params["w_fused"])      # (5, N) lane-dense
    # out-channel index = channel * n_convs + conv_idx  (multiple_convs_kan_conv2d)
    conv = conv.reshape(N_CONVS, b, c, ho, wo).transpose(1, 2, 0, 3, 4)
    conv = conv.reshape(b, c * N_CONVS, ho, wo)              # (B, 5C, Ho, Wo)

    # MaxPool2d((1,2),(2,2)) window restructuring (layout glue); the max itself,
    # Linear1, Linear2 and log_softmax run inside head_kernel.
    hp = (ho - 1) // 2 + 1
    wp = (wo - 2) // 2 + 1
    rows = conv[:, :, 0:2 * (hp - 1) + 1:2, :]               # (B, 5C, Hp, Wo)
    a = rows[:, :, :, 0:2 * wp:2].reshape(b, -1)             # window elem 0
    bb = rows[:, :, :, 1:2 * wp:2].reshape(b, -1)            # window elem 1

    # Flatten -> LazyLinear(256) -> Linear(256, 2) -> log_softmax(dim=1)
    return head_apply(a, bb, params["w1"], params["b1"], params["w2"], params["b2"])


# ================================== main =======================================
if __name__ == "__main__":
    key = jax.random.PRNGKey(0)
    ks = jax.random.split(key, 10)

    # small shapes consistent with the module: three NCHW inputs concatenated on W
    B, C, H, W = 2, 1, 16, 16
    x1 = jax.random.normal(ks[0], (B, C, H, W), jnp.float32)
    x2 = jax.random.normal(ks[1], (B, C, H, W), jnp.float32)
    x3 = jax.random.normal(ks[2], (B, C, H, W), jnp.float32)

    # deterministic synthetic parameters
    # 5 x KANLinear(in=9, out=1): base_weight (1,9), spline_weight (1,9,8), spline_scaler (1,9)
    base_w = 0.1 * jax.random.normal(ks[3], (K2, N_CONVS), jnp.float32)          # [in, conv]
    spline_weight = 0.1 * jax.random.normal(ks[4], (N_CONVS, K2, N_COEF), jnp.float32)
    spline_scaler = 1.0 + 0.1 * jax.random.normal(ks[5], (N_CONVS, K2), jnp.float32)
    w_fused = build_fused_conv_weight(base_w, spline_weight, spline_scaler)      # (5, 144)

    # feature size after conv (stride 2, pad 1) + maxpool (1,2)/(2,2) + flatten
    ho = (H + 2 * PAD - KSIZE) // STRIDE + 1
    wo = (3 * W + 2 * PAD - KSIZE) // STRIDE + 1
    hp = (ho - 1) // 2 + 1
    wp = (wo - 2) // 2 + 1
    feat = C * N_CONVS * hp * wp                                                 # LazyLinear in_features

    w1 = 0.05 * jax.random.normal(ks[6], (feat, 256), jnp.float32)
    b1 = 0.01 * jax.random.normal(ks[7], (256,), jnp.float32)
    w2 = 0.05 * jax.random.normal(ks[8], (256, 2), jnp.float32)
    b2 = 0.01 * jax.random.normal(ks[9], (2,), jnp.float32)

    params = dict(w_fused=w_fused, w1=w1, b1=b1, w2=w2, b2=b2)

    out = jax.jit(kanc_mlp_forward)(x1, x2, x3, params)
    out = jax.block_until_ready(out)

    assert out.shape == (B, 2)
    assert bool(jnp.all(jnp.isfinite(out)))
    print("KERNEL_OK")
</pallas_src>

<mosaic_0001>
module attributes {stable_mosaic.version = 11 : i64} {
  func.func @kan_conv_kernel(%arg0: i32, %arg1: memref<9x256xf32, #tpu.memory_space<vmem>>, %arg2: memref<5x144xf32, #tpu.memory_space<vmem>>, %arg3: memref<5x256xf32, #tpu.memory_space<vmem>>, %arg4: memref<144x256xf32, #tpu.memory_space<vmem>>) attributes {dimension_semantics = [#tpu.dimension_semantics<parallel>], iteration_bounds = array<i64: 2>, scalar_prefetch = 0 : i64, scratch_operands = 1 : i64, tpu.core_type = #tpu.core_type<tc>, window_params = [{transform_indices = @transform_0, window_bounds = array<i64: 9, 256>}, {pipeline_mode = #tpu.pipeline_mode<synchronous>, transform_indices = @transform_1, window_bounds = array<i64: 5, 144>}, {transform_indices = @transform_2, window_bounds = array<i64: 5, 256>}]} {
    %cst = arith.constant 0.000000e+00 : f32
    %0 = vector.broadcast %cst : f32 to vector<144x256xf32>
    %c0 = arith.constant 0 : index
    %c0_0 = arith.constant 0 : index
    %1 = vector.load %arg4[%c0, %c0_0] : memref<144x256xf32, #tpu.memory_space<vmem>>, vector<144x256xf32>
    tpu.vector_store %arg4[%c0, %c0_0], %0 {strides = array<i32>} : memref<144x256xf32, #tpu.memory_space<vmem>>, vector<144x256xf32>,
    %c0_1 = arith.constant 0 : index
    %c0_2 = arith.constant 0 : index
    %2 = vector.load %arg1[%c0_1, %c0_2] : memref<9x256xf32, #tpu.memory_space<vmem>>, vector<9x128xf32>
    %3 = arith.negf %2 : vector<9x128xf32>
    %4 = math.exp %3 : vector<9x128xf32>
    %cst_3 = arith.constant 1.000000e+00 : f32
    %5 = vector.broadcast %cst_3 : f32 to vector<9x128xf32>
    %6 = arith.addf %5, %4 : vector<9x128xf32>
    %7 = arith.divf %5, %6 : vector<9x128xf32>
    %8 = arith.mulf %2, %7 : vector<9x128xf32>
    %c0_4 = arith.constant 0 : index
    %c0_5 = arith.constant 0 : index
    %9 = vector.load %arg4[%c0_4, %c0_5] : memref<144x256xf32, #tpu.memory_space<vmem>>, vector<9x128xf32>
    tpu.vector_store %arg4[%c0_4, %c0_5], %8 {strides = array<i32>} : memref<144x256xf32, #tpu.memory_space<vmem>>, vector<9x128xf32>,
    %cst_6 = arith.constant -2.200000e+00 : f32
    %10 = vector.broadcast %cst_6 : f32 to vector<9x128xf32>
    %11 = arith.cmpf oge, %2, %10 : vector<9x128xf32>
    %cst_7 = arith.constant -1.800000e+00 : f32
    %12 = vector.broadcast %cst_7 : f32 to vector<9x128xf32>
    %13 = arith.cmpf olt, %2, %12 : vector<9x128xf32>
    %14 = arith.andi %11, %13 : vector<9x128xi1>
    %cst_8 = arith.constant 1.000000e+00 : f32
    %cst_9 = arith.constant 0.000000e+00 : f32
    %15 = vector.broadcast %cst_8 : f32 to vector<9x128xf32>
    %16 = vector.broadcast %cst_9 : f32 to vector<9x128xf32>
    %17 = arith.select %14, %15, %16 : vector<9x128xi1>, vector<9x128xf32>
    %cst_10 = arith.constant -1.800000e+00 : f32
    %18 = vector.broadcast %cst_10 : f32 to vector<9x128xf32>
    %19 = arith.cmpf oge, %2, %18 : vector<9x128xf32>
    %cst_11 = arith.constant -1.400000e+00 : f32
    %20 = vector.broadcast %cst_11 : f32 to vector<9x128xf32>
    %21 = arith.cmpf olt, %2, %20 : vector<9x128xf32>
    %22 = arith.andi %19, %21 : vector<9x128xi1>
    %cst_12 = arith.constant 1.000000e+00 : f32
    %cst_13 = arith.constant 0.000000e+00 : f32
    %23 = vector.broadcast %cst_12 : f32 to vector<9x128xf32>
    %24 = vector.broadcast %cst_13 : f32 to vector<9x128xf32>
    %25 = arith.select %22, %23, %24 : vector<9x128xi1>, vector<9x128xf32>
    %cst_14 = arith.constant -1.400000e+00 : f32
    %26 = vector.broadcast %cst_14 : f32 to vector<9x128xf32>
    %27 = arith.cmpf oge, %2, %26 : vector<9x128xf32>
    %cst_15 = arith.constant -1.000000e+00 : f32
    %28 = vector.broadcast %cst_15 : f32 to vector<9x128xf32>
    %29 = arith.cmpf olt, %2, %28 : vector<9x128xf32>
    %30 = arith.andi %27, %29 : vector<9x128xi1>
    %cst_16 = arith.constant 1.000000e+00 : f32
    %cst_17 = arith.constant 0.000000e+00 : f32
    %31 = vector.broadcast %cst_16 : f32 to vector<9x128xf32>
    %32 = vector.broadcast %cst_17 : f32 to vector<9x128xf32>
    %33 = arith.select %30, %31, %32 : vector<9x128xi1>, vector<9x128xf32>
    %cst_18 = arith.constant -1.000000e+00 : f32
    %34 = vector.broadcast %cst_18 : f32 to vector<9x128xf32>
    %35 = arith.cmpf oge, %2, %34 : vector<9x128xf32>
    %cst_19 = arith.constant -6.000000e-01 : f32
    %36 = vector.broadcast %cst_19 : f32 to vector<9x128xf32>
    %37 = arith.cmpf olt, %2, %36 : vector<9x128xf32>
    %38 = arith.andi %35, %37 : vector<9x128xi1>
    %cst_20 = arith.constant 1.000000e+00 : f32
    %cst_21 = arith.constant 0.000000e+00 : f32
    %39 = vector.broadcast %cst_20 : f32 to vector<9x128xf32>
    %40 = vector.broadcast %cst_21 : f32 to vector<9x128xf32>
    %41 = arith.select %38, %39, %40 : vector<9x128xi1>, vector<9x128xf32>
    %cst_22 = arith.constant -6.000000e-01 : f32
    %42 = vector.broadcast %cst_22 : f32 to vector<9x128xf32>
    %43 = arith.cmpf oge, %2, %42 : vector<9x128xf32>
    %cst_23 = arith.constant -2.000000e-01 : f32
    %44 = vector.broadcast %cst_23 : f32 to vector<9x128xf32>
    %45 = arith.cmpf olt, %2, %44 : vector<9x128xf32>
    %46 = arith.andi %43, %45 : vector<9x128xi1>
    %cst_24 = arith.constant 1.000000e+00 : f32
    %cst_25 = arith.constant 0.000000e+00 : f32
    %47 = vector.broadcast %cst_24 : f32 to vector<9x128xf32>
    %48 = vector.broadcast %cst_25 : f32 to vector<9x128xf32>
    %49 = arith.select %46, %47, %48 : vector<9x128xi1>, vector<9x128xf32>
    %cst_26 = arith.constant -2.000000e-01 : f32
    %50 = vector.broadcast %cst_26 : f32 to vector<9x128xf32>
    %51 = arith.cmpf oge, %2, %50 : vector<9x128xf32>
    %cst_27 = arith.constant 2.000000e-01 : f32
    %52 = vector.broadcast %cst_27 : f32 to vector<9x128xf32>
    %53 = arith.cmpf olt, %2, %52 : vector<9x128xf32>
    %54 = arith.andi %51, %53 : vector<9x128xi1>
    %cst_28 = arith.constant 1.000000e+00 : f32
    %cst_29 = arith.constant 0.000000e+00 : f32
    %55 = vector.broadcast %cst_28 : f32 to vector<9x128xf32>
    %56 = vector.broadcast %cst_29 : f32 to vector<9x128xf32>
    %57 = arith.select %54, %55, %56 : vector<9x128xi1>, vector<9x128xf32>
    %cst_30 = arith.constant 2.000000e-01 : f32
    %58 = vector.broadcast %cst_30 : f32 to vector<9x128xf32>
    %59 = arith.cmpf oge, %2, %58 : vector<9x128xf32>
    %cst_31 = arith.constant 6.000000e-01 : f32
    %60 = vector.broadcast %cst_31 : f32 to vector<9x128xf32>
    %61 = arith.cmpf olt, %2, %60 : vector<9x128xf32>
    %62 = arith.andi %59, %61 : vector<9x128xi1>
    %cst_32 = arith.constant 1.000000e+00 : f32
    %cst_33 = arith.constant 0.000000e+00 : f32
    %63 = vector.broadcast %cst_32 : f32 to vector<9x128xf32>
    %64 = vector.broadcast %cst_33 : f32 to vector<9x128xf32>
    %65 = arith.select %62, %63, %64 : vector<9x128xi1>, vector<9x128xf32>
    %cst_34 = arith.constant 6.000000e-01 : f32
    %66 = vector.broadcast %cst_34 : f32 to vector<9x128xf32>
    %67 = arith.cmpf oge, %2, %66 : vector<9x128xf32>
    %cst_35 = arith.constant 1.000000e+00 : f32
    %68 = vector.broadcast %cst_35 : f32 to vector<9x128xf32>
    %69 = arith.cmpf olt, %2, %68 : vector<9x128xf32>
    %70 = arith.andi %67, %69 : vector<9x128xi1>
    %cst_36 = arith.constant 1.000000e+00 : f32
    %cst_37 = arith.constant 0.000000e+00 : f32
    %71 = vector.broadcast %cst_36 : f32 to vector<9x128xf32>
    %72 = vector.broadcast %cst_37 : f32 to vector<9x128xf32>
    %73 = arith.select %70, %71, %72 : vector<9x128xi1>, vector<9x128xf32>
    %cst_38 = arith.constant 1.000000e+00 : f32
    %74 = vector.broadcast %cst_38 : f32 to vector<9x128xf32>
    %75 = arith.cmpf oge, %2, %74 : vector<9x128xf32>
    %cst_39 = arith.constant 1.400000e+00 : f32
    %76 = vector.broadcast %cst_39 : f32 to vector<9x128xf32>
    %77 = arith.cmpf olt, %2, %76 : vector<9x128xf32>
    %78 = arith.andi %75, %77 : vector<9x128xi1>
    %cst_40 = arith.constant 1.000000e+00 : f32
    %cst_41 = arith.constant 0.000000e+00 : f32
    %79 = vector.broadcast %cst_40 : f32 to vector<9x128xf32>
    %80 = vector.broadcast %cst_41 : f32 to vector<9x128xf32>
    %81 = arith.select %78, %79, %80 : vector<9x128xi1>, vector<9x128xf32>
    %cst_42 = arith.constant 1.400000e+00 : f32
    %82 = vector.broadcast %cst_42 : f32 to vector<9x128xf32>
    %83 = arith.cmpf oge, %2, %82 : vector<9x128xf32>
    %cst_43 = arith.constant 1.800000e+00 : f32
    %84 = vector.broadcast %cst_43 : f32 to vector<9x128xf32>
    %85 = arith.cmpf olt, %2, %84 : vector<9x128xf32>
    %86 = arith.andi %83, %85 : vector<9x128xi1>
    %cst_44 = arith.constant 1.000000e+00 : f32
    %cst_45 = arith.constant 0.000000e+00 : f32
    %87 = vector.broadcast %cst_44 : f32 to vector<9x128xf32>
    %88 = vector.broadcast %cst_45 : f32 to vector<9x128xf32>
    %89 = arith.select %86, %87, %88 : vector<9x128xi1>, vector<9x128xf32>
    %cst_46 = arith.constant 1.800000e+00 : f32
    %90 = vector.broadcast %cst_46 : f32 to vector<9x128xf32>
    %91 = arith.cmpf oge, %2, %90 : vector<9x128xf32>
    %cst_47 = arith.constant 2.200000e+00 : f32
    %92 = vector.broadcast %cst_47 : f32 to vector<9x128xf32>
    %93 = arith.cmpf olt, %2, %92 : vector<9x128xf32>
    %94 = arith.andi %91, %93 : vector<9x128xi1>
    %cst_48 = arith.constant 1.000000e+00 : f32
    %cst_49 = arith.constant 0.000000e+00 : f32
    %95 = vector.broadcast %cst_48 : f32 to vector<9x128xf32>
    %96 = vector.broadcast %cst_49 : f32 to vector<9x128xf32>
    %97 = arith.select %94, %95, %96 : vector<9x128xi1>, vector<9x128xf32>
    %cst_50 = arith.constant -2.200000e+00 : f32
    %98 = vector.broadcast %cst_50 : f32 to vector<9x128xf32>
    %99 = arith.subf %2, %98 : vector<9x128xf32>
    %cst_51 = arith.constant 2.500000e+00 : f32
    %100 = vector.broadcast %cst_51 : f32 to vector<9x128xf32>
    %101 = arith.mulf %99, %100 : vector<9x128xf32>
    %102 = arith.mulf %101, %17 : vector<9x128xf32>
    %cst_52 = arith.constant -1.400000e+00 : f32
    %103 = vector.broadcast %cst_52 : f32 to vector<9x128xf32>
    %104 = arith.subf %103, %2 : vector<9x128xf32>
    %cst_53 = arith.constant 2.500000e+00 : f32
    %105 = vector.broadcast %cst_53 : f32 to vector<9x128xf32>
    %106 = arith.mulf %104, %105 : vector<9x128xf32>
    %107 = arith.mulf %106, %25 : vector<9x128xf32>
    %108 = arith.addf %102, %107 : vector<9x128xf32>
    %cst_54 = arith.constant -1.800000e+00 : f32
    %109 = vector.broadcast %cst_54 : f32 to vector<9x128xf32>
    %110 = arith.subf %2, %109 : vector<9x128xf32>
    %cst_55 = arith.constant 2.500000e+00 : f32
    %111 = vector.broadcast %cst_55 : f32 to vector<9x128xf32>
    %112 = arith.mulf %110, %111 : vector<9x128xf32>
    %113 = arith.mulf %112, %25 : vector<9x128xf32>
    %cst_56 = arith.constant -1.000000e+00 : f32
    %114 = vector.broadcast %cst_56 : f32 to vector<9x128xf32>
    %115 = arith.subf %114, %2 : vector<9x128xf32>
    %cst_57 = arith.constant 2.500000e+00 : f32
    %116 = vector.broadcast %cst_57 : f32 to vector<9x128xf32>
    %117 = arith.mulf %115, %116 : vector<9x128xf32>
    %118 = arith.mulf %117, %33 : vector<9x128xf32>
    %119 = arith.addf %113, %118 : vector<9x128xf32>
    %cst_58 = arith.constant -1.400000e+00 : f32
    %120 = vector.broadcast %cst_58 : f32 to vector<9x128xf32>
    %121 = arith.subf %2, %120 : vector<9x128xf32>
    %cst_59 = arith.constant 2.500000e+00 : f32
    %122 = vector.broadcast %cst_59 : f32 to vector<9x128xf32>
    %123 = arith.mulf %121, %122 : vector<9x128xf32>
    %124 = arith.mulf %123, %33 : vector<9x128xf32>
    %cst_60 = arith.constant -6.000000e-01 : f32
    %125 = vector.broadcast %cst_60 : f32 to vector<9x128xf32>
    %126 = arith.subf %125, %2 : vector<9x128xf32>
    %cst_61 = arith.constant 2.500000e+00 : f32
    %127 = vector.broadcast %cst_61 : f32 to vector<9x128xf32>
    %128 = arith.mulf %126, %127 : vector<9x128xf32>
    %129 = arith.mulf %128, %41 : vector<9x128xf32>
    %130 = arith.addf %124, %129 : vector<9x128xf32>
    %cst_62 = arith.constant -1.000000e+00 : f32
    %131 = vector.broadcast %cst_62 : f32 to vector<9x128xf32>
    %132 = arith.subf %2, %131 : vector<9x128xf32>
    %cst_63 = arith.constant 2.500000e+00 : f32
    %133 = vector.broadcast %cst_63 : f32 to vector<9x128xf32>
    %134 = arith.mulf %132, %133 : vector<9x128xf32>
    %135 = arith.mulf %134, %41 : vector<9x128xf32>
    %cst_64 = arith.constant -2.000000e-01 : f32
    %136 = vector.broadcast %cst_64 : f32 to vector<9x128xf32>
    %137 = arith.subf %136, %2 : vector<9x128xf32>
    %cst_65 = arith.constant 2.500000e+00 : f32
    %138 = vector.broadcast %cst_65 : f32 to vector<9x128xf32>
    %139 = arith.mulf %137, %138 : vector<9x128xf32>
    %140 = arith.mulf %139, %49 : vector<9x128xf32>
    %141 = arith.addf %135, %140 : vector<9x128xf32>
    %cst_66 = arith.constant -6.000000e-01 : f32
    %142 = vector.broadcast %cst_66 : f32 to vector<9x128xf32>
    %143 = arith.subf %2, %142 : vector<9x128xf32>
    %cst_67 = arith.constant 2.500000e+00 : f32
    %144 = vector.broadcast %cst_67 : f32 to vector<9x128xf32>
    %145 = arith.mulf %143, %144 : vector<9x128xf32>
    %146 = arith.mulf %145, %49 : vector<9x128xf32>
    %cst_68 = arith.constant 2.000000e-01 : f32
    %147 = vector.broadcast %cst_68 : f32 to vector<9x128xf32>
    %148 = arith.subf %147, %2 : vector<9x128xf32>
    %cst_69 = arith.constant 2.500000e+00 : f32
    %149 = vector.broadcast %cst_69 : f32 to vector<9x128xf32>
    %150 = arith.mulf %148, %149 : vector<9x128xf32>
    %151 = arith.mulf %150, %57 : vector<9x128xf32>
    %152 = arith.addf %146, %151 : vector<9x128xf32>
    %cst_70 = arith.constant -2.000000e-01 : f32
    %153 = vector.broadcast %cst_70 : f32 to vector<9x128xf32>
    %154 = arith.subf %2, %153 : vector<9x128xf32>
    %cst_71 = arith.constant 2.500000e+00 : f32
    %155 = vector.broadcast %cst_71 : f32 to vector<9x128xf32>
    %156 = arith.mulf %154, %155 : vector<9x128xf32>
    %157 = arith.mulf %156, %57 : vector<9x128xf32>
    %cst_72 = arith.constant 6.000000e-01 : f32
    %158 = vector.broadcast %cst_72 : f32 to vector<9x128xf32>
    %159 = arith.subf %158, %2 : vector<9x128xf32>
    %cst_73 = arith.constant 2.500000e+00 : f32
    %160 = vector.broadcast %cst_73 : f32 to vector<9x128xf32>
    %161 = arith.mulf %159, %160 : vector<9x128xf32>
    %162 = arith.mulf %161, %65 : vector<9x128xf32>
    %163 = arith.addf %157, %162 : vector<9x128xf32>
    %cst_74 = arith.constant 2.000000e-01 : f32
    %164 = vector.broadcast %cst_74 : f32 to vector<9x128xf32>
    %165 = arith.subf %2, %164 : vector<9x128xf32>
    %cst_75 = arith.constant 2.500000e+00 : f32
    %166 = vector.broadcast %cst_75 : f32 to vector<9x128xf32>
    %167 = arith.mulf %165, %166 : vector<9x128xf32>
    %168 = arith.mulf %167, %65 : vector<9x128xf32>
    %cst_76 = arith.constant 1.000000e+00 : f32
    %169 = vector.broadcast %cst_76 : f32 to vector<9x128xf32>
    %170 = arith.subf %169, %2 : vector<9x128xf32>
    %cst_77 = arith.constant 2.500000e+00 : f32
    %171 = vector.broadcast %cst_77 : f32 to vector<9x128xf32>
    %172 = arith.mulf %170, %171 : vector<9x128xf32>
    %173 = arith.mulf %172, %73 : vector<9x128xf32>
    %174 = arith.addf %168, %173 : vector<9x128xf32>
    %cst_78 = arith.constant 6.000000e-01 : f32
    %175 = vector.broadcast %cst_78 : f32 to vector<9x128xf32>
    %176 = arith.subf %2, %175 : vector<9x128xf32>
    %cst_79 = arith.constant 2.500000e+00 : f32
    %177 = vector.broadcast %cst_79 : f32 to vector<9x128xf32>
    %178 = arith.mulf %176, %177 : vector<9x128xf32>
    %179 = arith.mulf %178, %73 : vector<9x128xf32>
    %cst_80 = arith.constant 1.400000e+00 : f32
    %180 = vector.broadcast %cst_80 : f32 to vector<9x128xf32>
    %181 = arith.subf %180, %2 : vector<9x128xf32>
    %cst_81 = arith.constant 2.500000e+00 : f32
    %182 = vector.broadcast %cst_81 : f32 to vector<9x128xf32>
    %183 = arith.mulf %181, %182 : vector<9x128xf32>
    %184 = arith.mulf %183, %81 : vector<9x128xf32>
    %185 = arith.addf %179, %184 : vector<9x128xf32>
    %cst_82 = arith.constant 1.000000e+00 : f32
    %186 = vector.broadcast %cst_82 : f32 to vector<9x128xf32>
    %187 = arith.subf %2, %186 : vector<9x128xf32>
    %cst_83 = arith.constant 2.500000e+00 : f32
    %188 = vector.broadcast %cst_83 : f32 to vector<9x128xf32>
    %189 = arith.mulf %187, %188 : vector<9x128xf32>
    %190 = arith.mulf %189, %81 : vector<9x128xf32>
    %cst_84 = arith.constant 1.800000e+00 : f32
    %191 = vector.broadcast %cst_84 : f32 to vector<9x128xf32>
    %192 = arith.subf %191, %2 : vector<9x128xf32>
    %cst_85 = arith.constant 2.500000e+00 : f32
    %193 = vector.broadcast %cst_85 : f32 to vector<9x128xf32>
    %194 = arith.mulf %192, %193 : vector<9x128xf32>
    %195 = arith.mulf %194, %89 : vector<9x128xf32>
    %196 = arith.addf %190, %195 : vector<9x128xf32>
    %cst_86 = arith.constant 1.400000e+00 : f32
    %197 = vector.broadcast %cst_86 : f32 to vector<9x128xf32>
    %198 = arith.subf %2, %197 : vector<9x128xf32>
    %cst_87 = arith.constant 2.500000e+00 : f32
    %199 = vector.broadcast %cst_87 : f32 to vector<9x128xf32>
    %200 = arith.mulf %198, %199 : vector<9x128xf32>
    %201 = arith.mulf %200, %89 : vector<9x128xf32>
    %cst_88 = arith.constant 2.200000e+00 : f32
    %202 = vector.broadcast %cst_88 : f32 to vector<9x128xf32>
    %203 = arith.subf %202, %2 : vector<9x128xf32>
    %cst_89 = arith.constant 2.500000e+00 : f32
    %204 = vector.broadcast %cst_89 : f32 to vector<9x128xf32>
    %205 = arith.mulf %203, %204 : vector<9x128xf32>
    %206 = arith.mulf %205, %97 : vector<9x128xf32>
    %207 = arith.addf %201, %206 : vector<9x128xf32>
    %cst_90 = arith.constant -2.200000e+00 : f32
    %208 = vector.broadcast %cst_90 : f32 to vector<9x128xf32>
    %209 = arith.subf %2, %208 : vector<9x128xf32>
    %cst_91 = arith.constant 1.250000e+00 : f32
    %210 = vector.broadcast %cst_91 : f32 to vector<9x128xf32>
    %211 = arith.mulf %209, %210 : vector<9x128xf32>
    %212 = arith.mulf %211, %108 : vector<9x128xf32>
    %cst_92 = arith.constant -1.000000e+00 : f32
    %213 = vector.broadcast %cst_92 : f32 to vector<9x128xf32>
    %214 = arith.subf %213, %2 : vector<9x128xf32>
    %cst_93 = arith.constant 1.250000e+00 : f32
    %215 = vector.broadcast %cst_93 : f32 to vector<9x128xf32>
    %216 = arith.mulf %214, %215 : vector<9x128xf32>
    %217 = arith.mulf %216, %119 : vector<9x128xf32>
    %218 = arith.addf %212, %217 : vector<9x128xf32>
    %cst_94 = arith.constant -1.800000e+00 : f32
    %219 = vector.broadcast %cst_94 : f32 to vector<9x128xf32>
    %220 = arith.subf %2, %219 : vector<9x128xf32>
    %cst_95 = arith.constant 1.250000e+00 : f32
    %221 = vector.broadcast %cst_95 : f32 to vector<9x128xf32>
    %222 = arith.mulf %220, %221 : vector<9x128xf32>
    %223 = arith.mulf %222, %119 : vector<9x128xf32>
    %cst_96 = arith.constant -6.000000e-01 : f32
    %224 = vector.broadcast %cst_96 : f32 to vector<9x128xf32>
    %225 = arith.subf %224, %2 : vector<9x128xf32>
    %cst_97 = arith.constant 1.250000e+00 : f32
    %226 = vector.broadcast %cst_97 : f32 to vector<9x128xf32>
    %227 = arith.mulf %225, %226 : vector<9x128xf32>
    %228 = arith.mulf %227, %130 : vector<9x128xf32>
    %229 = arith.addf %223, %228 : vector<9x128xf32>
    %cst_98 = arith.constant -1.400000e+00 : f32
    %230 = vector.broadcast %cst_98 : f32 to vector<9x128xf32>
    %231 = arith.subf %2, %230 : vector<9x128xf32>
    %cst_99 = arith.constant 1.250000e+00 : f32
    %232 = vector.broadcast %cst_99 : f32 to vector<9x128xf32>
    %233 = arith.mulf %231, %232 : vector<9x128xf32>
    %234 = arith.mulf %233, %130 : vector<9x128xf32>
    %cst_100 = arith.constant -2.000000e-01 : f32
    %235 = vector.broadcast %cst_100 : f32 to vector<9x128xf32>
    %236 = arith.subf %235, %2 : vector<9x128xf32>
    %cst_101 = arith.constant 1.250000e+00 : f32
    %237 = vector.broadcast %cst_101 : f32 to vector<9x128xf32>
    %238 = arith.mulf %236, %237 : vector<9x128xf32>
    %239 = arith.mulf %238, %141 : vector<9x128xf32>
    %240 = arith.addf %234, %239 : vector<9x128xf32>
    %cst_102 = arith.constant -1.000000e+00 : f32
    %241 = vector.broadcast %cst_102 : f32 to vector<9x128xf32>
    %242 = arith.subf %2, %241 : vector<9x128xf32>
    %cst_103 = arith.constant 1.250000e+00 : f32
    %243 = vector.broadcast %cst_103 : f32 to vector<9x128xf32>
    %244 = arith.mulf %242, %243 : vector<9x128xf32>
    %245 = arith.mulf %244, %141 : vector<9x128xf32>
    %cst_104 = arith.constant 2.000000e-01 : f32
    %246 = vector.broadcast %cst_104 : f32 to vector<9x128xf32>
    %247 = arith.subf %246, %2 : vector<9x128xf32>
    %cst_105 = arith.constant 1.250000e+00 : f32
    %248 = vector.broadcast %cst_105 : f32 to vector<9x128xf32>
    %249 = arith.mulf %247, %248 : vector<9x128xf32>
    %250 = arith.mulf %249, %152 : vector<9x128xf32>
    %251 = arith.addf %245, %250 : vector<9x128xf32>
    %cst_106 = arith.constant -6.000000e-01 : f32
    %252 = vector.broadcast %cst_106 : f32 to vector<9x128xf32>
    %253 = arith.subf %2, %252 : vector<9x128xf32>
    %cst_107 = arith.constant 1.250000e+00 : f32
    %254 = vector.broadcast %cst_107 : f32 to vector<9x128xf32>
    %255 = arith.mulf %253, %254 : vector<9x128xf32>
    %256 = arith.mulf %255, %152 : vector<9x128xf32>
    %cst_108 = arith.constant 6.000000e-01 : f32
    %257 = vector.broadcast %cst_108 : f32 to vector<9x128xf32>
    %258 = arith.subf %257, %2 : vector<9x128xf32>
    %cst_109 = arith.constant 1.250000e+00 : f32
    %259 = vector.broadcast %cst_109 : f32 to vector<9x128xf32>
    %260 = arith.mulf %258, %259 : vector<9x128xf32>
    %261 = arith.mulf %260, %163 : vector<9x128xf32>
    %262 = arith.addf %256, %261 : vector<9x128xf32>
    %cst_110 = arith.constant -2.000000e-01 : f32
    %263 = vector.broadcast %cst_110 : f32 to vector<9x128xf32>
    %264 = arith.subf %2, %263 : vector<9x128xf32>
    %cst_111 = arith.constant 1.250000e+00 : f32
    %265 = vector.broadcast %cst_111 : f32 to vector<9x128xf32>
    %266 = arith.mulf %264, %265 : vector<9x128xf32>
    %267 = arith.mulf %266, %163 : vector<9x128xf32>
    %cst_112 = arith.constant 1.000000e+00 : f32
    %268 = vector.broadcast %cst_112 : f32 to vector<9x128xf32>
    %269 = arith.subf %268, %2 : vector<9x128xf32>
    %cst_113 = arith.constant 1.250000e+00 : f32
    %270 = vector.broadcast %cst_113 : f32 to vector<9x128xf32>
    %271 = arith.mulf %269, %270 : vector<9x128xf32>
    %272 = arith.mulf %271, %174 : vector<9x128xf32>
    %273 = arith.addf %267, %272 : vector<9x128xf32>
    %cst_114 = arith.constant 2.000000e-01 : f32
    %274 = vector.broadcast %cst_114 : f32 to vector<9x128xf32>
    %275 = arith.subf %2, %274 : vector<9x128xf32>
    %cst_115 = arith.constant 1.250000e+00 : f32
    %276 = vector.broadcast %cst_115 : f32 to vector<9x128xf32>
    %277 = arith.mulf %275, %276 : vector<9x128xf32>
    %278 = arith.mulf %277, %174 : vector<9x128xf32>
    %cst_116 = arith.constant 1.400000e+00 : f32
    %279 = vector.broadcast %cst_116 : f32 to vector<9x128xf32>
    %280 = arith.subf %279, %2 : vector<9x128xf32>
    %cst_117 = arith.constant 1.250000e+00 : f32
    %281 = vector.broadcast %cst_117 : f32 to vector<9x128xf32>
    %282 = arith.mulf %280, %281 : vector<9x128xf32>
    %283 = arith.mulf %282, %185 : vector<9x128xf32>
    %284 = arith.addf %278, %283 : vector<9x128xf32>
    %cst_118 = arith.constant 6.000000e-01 : f32
    %285 = vector.broadcast %cst_118 : f32 to vector<9x128xf32>
    %286 = arith.subf %2, %285 : vector<9x128xf32>
    %cst_119 = arith.constant 1.250000e+00 : f32
    %287 = vector.broadcast %cst_119 : f32 to vector<9x128xf32>
    %288 = arith.mulf %286, %287 : vector<9x128xf32>
    %289 = arith.mulf %288, %185 : vector<9x128xf32>
    %cst_120 = arith.constant 1.800000e+00 : f32
    %290 = vector.broadcast %cst_120 : f32 to vector<9x128xf32>
    %291 = arith.subf %290, %2 : vector<9x128xf32>
    %cst_121 = arith.constant 1.250000e+00 : f32
    %292 = vector.broadcast %cst_121 : f32 to vector<9x128xf32>
    %293 = arith.mulf %291, %292 : vector<9x128xf32>
    %294 = arith.mulf %293, %196 : vector<9x128xf32>
    %295 = arith.addf %289, %294 : vector<9x128xf32>
    %cst_122 = arith.constant 1.000000e+00 : f32
    %296 = vector.broadcast %cst_122 : f32 to vector<9x128xf32>
    %297 = arith.subf %2, %296 : vector<9x128xf32>
    %cst_123 = arith.constant 1.250000e+00 : f32
    %298 = vector.broadcast %cst_123 : f32 to vector<9x128xf32>
    %299 = arith.mulf %297, %298 : vector<9x128xf32>
    %300 = arith.mulf %299, %196 : vector<9x128xf32>
    %cst_124 = arith.constant 2.200000e+00 : f32
    %301 = vector.broadcast %cst_124 : f32 to vector<9x128xf32>
    %302 = arith.subf %301, %2 : vector<9x128xf32>
    %cst_125 = arith.constant 1.250000e+00 : f32
    %303 = vector.broadcast %cst_125 : f32 to vector<9x128xf32>
    %304 = arith.mulf %302, %303 : vector<9x128xf32>
    %305 = arith.mulf %304, %207 : vector<9x128xf32>
    %306 = arith.addf %300, %305 : vector<9x128xf32>
    %cst_126 = arith.constant -2.200000e+00 : f32
    %307 = vector.broadcast %cst_126 : f32 to vector<9x128xf32>
    %308 = arith.subf %2, %307 : vector<9x128xf32>
    %cst_127 = arith.constant 0.833333313 : f32
    %309 = vector.broadcast %cst_127 : f32 to vector<9x128xf32>
    %310 = arith.mulf %308, %309 : vector<9x128xf32>
    %311 = arith.mulf %310, %218 : vector<9x128xf32>
    %cst_128 = arith.constant -6.000000e-01 : f32
    %312 = vector.broadcast %cst_128 : f32 to vector<9x128xf32>
    %313 = arith.subf %312, %2 : vector<9x128xf32>
    %cst_129 = arith.constant 0.833333313 : f32
    %314 = vector.broadcast %cst_129 : f32 to vector<9x128xf32>
    %315 = arith.mulf %313, %314 : vector<9x128xf32>
    %316 = arith.mulf %315, %229 : vector<9x128xf32>
    %317 = arith.addf %311, %316 : vector<9x128xf32>
    %cst_130 = arith.constant -1.800000e+00 : f32
    %318 = vector.broadcast %cst_130 : f32 to vector<9x128xf32>
    %319 = arith.subf %2, %318 : vector<9x128xf32>
    %cst_131 = arith.constant 0.833333313 : f32
    %320 = vector.broadcast %cst_131 : f32 to vector<9x128xf32>
    %321 = arith.mulf %319, %320 : vector<9x128xf32>
    %322 = arith.mulf %321, %229 : vector<9x128xf32>
    %cst_132 = arith.constant -2.000000e-01 : f32
    %323 = vector.broadcast %cst_132 : f32 to vector<9x128xf32>
    %324 = arith.subf %323, %2 : vector<9x128xf32>
    %cst_133 = arith.constant 0.833333313 : f32
    %325 = vector.broadcast %cst_133 : f32 to vector<9x128xf32>
    %326 = arith.mulf %324, %325 : vector<9x128xf32>
    %327 = arith.mulf %326, %240 : vector<9x128xf32>
    %328 = arith.addf %322, %327 : vector<9x128xf32>
    %cst_134 = arith.constant -1.400000e+00 : f32
    %329 = vector.broadcast %cst_134 : f32 to vector<9x128xf32>
    %330 = arith.subf %2, %329 : vector<9x128xf32>
    %cst_135 = arith.constant 0.833333313 : f32
    %331 = vector.broadcast %cst_135 : f32 to vector<9x128xf32>
    %332 = arith.mulf %330, %331 : vector<9x128xf32>
    %333 = arith.mulf %332, %240 : vector<9x128xf32>
    %cst_136 = arith.constant 2.000000e-01 : f32
    %334 = vector.broadcast %cst_136 : f32 to vector<9x128xf32>
    %335 = arith.subf %334, %2 : vector<9x128xf32>
    %cst_137 = arith.constant 0.833333313 : f32
    %336 = vector.broadcast %cst_137 : f32 to vector<9x128xf32>
    %337 = arith.mulf %335, %336 : vector<9x128xf32>
    %338 = arith.mulf %337, %251 : vector<9x128xf32>
    %339 = arith.addf %333, %338 : vector<9x128xf32>
    %cst_138 = arith.constant -1.000000e+00 : f32
    %340 = vector.broadcast %cst_138 : f32 to vector<9x128xf32>
    %341 = arith.subf %2, %340 : vector<9x128xf32>
    %cst_139 = arith.constant 0.833333313 : f32
    %342 = vector.broadcast %cst_139 : f32 to vector<9x128xf32>
    %343 = arith.mulf %341, %342 : vector<9x128xf32>
    %344 = arith.mulf %343, %251 : vector<9x128xf32>
    %cst_140 = arith.constant 6.000000e-01 : f32
    %345 = vector.broadcast %cst_140 : f32 to vector<9x128xf32>
    %346 = arith.subf %345, %2 : vector<9x128xf32>
    %cst_141 = arith.constant 0.833333313 : f32
    %347 = vector.broadcast %cst_141 : f32 to vector<9x128xf32>
    %348 = arith.mulf %346, %347 : vector<9x128xf32>
    %349 = arith.mulf %348, %262 : vector<9x128xf32>
    %350 = arith.addf %344, %349 : vector<9x128xf32>
    %cst_142 = arith.constant -6.000000e-01 : f32
    %351 = vector.broadcast %cst_142 : f32 to vector<9x128xf32>
    %352 = arith.subf %2, %351 : vector<9x128xf32>
    %cst_143 = arith.constant 0.833333313 : f32
    %353 = vector.broadcast %cst_143 : f32 to vector<9x128xf32>
    %354 = arith.mulf %352, %353 : vector<9x128xf32>
    %355 = arith.mulf %354, %262 : vector<9x128xf32>
    %cst_144 = arith.constant 1.000000e+00 : f32
    %356 = vector.broadcast %cst_144 : f32 to vector<9x128xf32>
    %357 = arith.subf %356, %2 : vector<9x128xf32>
    %cst_145 = arith.constant 0.833333313 : f32
    %358 = vector.broadcast %cst_145 : f32 to vector<9x128xf32>
    %359 = arith.mulf %357, %358 : vector<9x128xf32>
    %360 = arith.mulf %359, %273 : vector<9x128xf32>
    %361 = arith.addf %355, %360 : vector<9x128xf32>
    %cst_146 = arith.constant -2.000000e-01 : f32
    %362 = vector.broadcast %cst_146 : f32 to vector<9x128xf32>
    %363 = arith.subf %2, %362 : vector<9x128xf32>
    %cst_147 = arith.constant 0.833333313 : f32
    %364 = vector.broadcast %cst_147 : f32 to vector<9x128xf32>
    %365 = arith.mulf %363, %364 : vector<9x128xf32>
    %366 = arith.mulf %365, %273 : vector<9x128xf32>
    %cst_148 = arith.constant 1.400000e+00 : f32
    %367 = vector.broadcast %cst_148 : f32 to vector<9x128xf32>
    %368 = arith.subf %367, %2 : vector<9x128xf32>
    %cst_149 = arith.constant 0.833333313 : f32
    %369 = vector.broadcast %cst_149 : f32 to vector<9x128xf32>
    %370 = arith.mulf %368, %369 : vector<9x128xf32>
    %371 = arith.mulf %370, %284 : vector<9x128xf32>
    %372 = arith.addf %366, %371 : vector<9x128xf32>
    %cst_150 = arith.constant 2.000000e-01 : f32
    %373 = vector.broadcast %cst_150 : f32 to vector<9x128xf32>
    %374 = arith.subf %2, %373 : vector<9x128xf32>
    %cst_151 = arith.constant 0.833333313 : f32
    %375 = vector.broadcast %cst_151 : f32 to vector<9x128xf32>
    %376 = arith.mulf %374, %375 : vector<9x128xf32>
    %377 = arith.mulf %376, %284 : vector<9x128xf32>
    %cst_152 = arith.constant 1.800000e+00 : f32
    %378 = vector.broadcast %cst_152 : f32 to vector<9x128xf32>
    %379 = arith.subf %378, %2 : vector<9x128xf32>
    %cst_153 = arith.constant 0.833333313 : f32
    %380 = vector.broadcast %cst_153 : f32 to vector<9x128xf32>
    %381 = arith.mulf %379, %380 : vector<9x128xf32>
    %382 = arith.mulf %381, %295 : vector<9x128xf32>
    %383 = arith.addf %377, %382 : vector<9x128xf32>
    %cst_154 = arith.constant 6.000000e-01 : f32
    %384 = vector.broadcast %cst_154 : f32 to vector<9x128xf32>
    %385 = arith.subf %2, %384 : vector<9x128xf32>
    %cst_155 = arith.constant 0.833333313 : f32
    %386 = vector.broadcast %cst_155 : f32 to vector<9x128xf32>
    %387 = arith.mulf %385, %386 : vector<9x128xf32>
    %388 = arith.mulf %387, %295 : vector<9x128xf32>
    %cst_156 = arith.constant 2.200000e+00 : f32
    %389 = vector.broadcast %cst_156 : f32 to vector<9x128xf32>
    %390 = arith.subf %389, %2 : vector<9x128xf32>
    %cst_157 = arith.constant 0.833333313 : f32
    %391 = vector.broadcast %cst_157 : f32 to vector<9x128xf32>
    %392 = arith.mulf %390, %391 : vector<9x128xf32>
    %393 = arith.mulf %392, %306 : vector<9x128xf32>
    %394 = arith.addf %388, %393 : vector<9x128xf32>
    %c16 = arith.constant 16 : index
    %c0_158 = arith.constant 0 : index
    %395 = vector.load %arg4[%c16, %c0_158] : memref<144x256xf32, #tpu.memory_space<vmem>>, vector<9x128xf32>
    tpu.vector_store %arg4[%c16, %c0_158], %317 {strides = array<i32>} : memref<144x256xf32, #tpu.memory_space<vmem>>, vector<9x128xf32>,
    %c32 = arith.constant 32 : index
    %c0_159 = arith.constant 0 : index
    %396 = vector.load %arg4[%c32, %c0_159] : memref<144x256xf32, #tpu.memory_space<vmem>>, vector<9x128xf32>
    tpu.vector_store %arg4[%c32, %c0_159], %328 {strides = array<i32>} : memref<144x256xf32, #tpu.memory_space<vmem>>, vector<9x128xf32>,
    %c48 = arith.constant 48 : index
    %c0_160 = arith.constant 0 : index
    %397 = vector.load %arg4[%c48, %c0_160] : memref<144x256xf32, #tpu.memory_space<vmem>>, vector<9x128xf32>
    tpu.vector_store %arg4[%c48, %c0_160], %339 {strides = array<i32>} : memref<144x256xf32, #tpu.memory_space<vmem>>, vector<9x128xf32>,
    %c64 = arith.constant 64 : index
    %c0_161 = arith.constant 0 : index
    %398 = vector.load %arg4[%c64, %c0_161] : memref<144x256xf32, #tpu.memory_space<vmem>>, vector<9x128xf32>
    tpu.vector_store %arg4[%c64, %c0_161], %350 {strides = array<i32>} : memref<144x256xf32, #tpu.memory_space<vmem>>, vector<9x128xf32>,
    %c80 = arith.constant 80 : index
    %c0_162 = arith.constant 0 : index
    %399 = vector.load %arg4[%c80, %c0_162] : memref<144x256xf32, #tpu.memory_space<vmem>>, vector<9x128xf32>
    tpu.vector_store %arg4[%c80, %c0_162], %361 {strides = array<i32>} : memref<144x256xf32, #tpu.memory_space<vmem>>, vector<9x128xf32>,
    %c96 = arith.constant 96 : index
    %c0_163 = arith.constant 0 : index
    %400 = vector.load %arg4[%c96, %c0_163] : memref<144x256xf32, #tpu.memory_space<vmem>>, vector<9x128xf32>
    tpu.vector_store %arg4[%c96, %c0_163], %372 {strides = array<i32>} : memref<144x256xf32, #tpu.memory_space<vmem>>, vector<9x128xf32>,
    %c112 = arith.constant 112 : index
    %c0_164 = arith.constant 0 : index
    %401 = vector.load %arg4[%c112, %c0_164] : memref<144x256xf32, #tpu.memory_space<vmem>>, vector<9x128xf32>
    tpu.vector_store %arg4[%c112, %c0_164], %383 {strides = array<i32>} : memref<144x256xf32, #tpu.memory_space<vmem>>, vector<9x128xf32>,
    %c128 = arith.constant 128 : index
    %c0_165 = arith.constant 0 : index
    %402 = vector.load %arg4[%c128, %c0_165] : memref<144x256xf32, #tpu.memory_space<vmem>>, vector<9x128xf32>
    tpu.vector_store %arg4[%c128, %c0_165], %394 {strides = array<i32>} : memref<144x256xf32, #tpu.memory_space<vmem>>, vector<9x128xf32>,
    %c0_166 = arith.constant 0 : index
    %c128_167 = arith.constant 128 : index
    %403 = vector.load %arg1[%c0_166, %c128_167] : memref<9x256xf32, #tpu.memory_space<vmem>>, vector<9x128xf32>
    %404 = arith.negf %403 : vector<9x128xf32>
    %405 = math.exp %404 : vector<9x128xf32>
    %cst_168 = arith.constant 1.000000e+00 : f32
    %406 = vector.broadcast %cst_168 : f32 to vector<9x128xf32>
    %407 = arith.addf %406, %405 : vector<9x128xf32>
    %408 = arith.divf %406, %407 : vector<9x128xf32>
    %409 = arith.mulf %403, %408 : vector<9x128xf32>
    %c0_169 = arith.constant 0 : index
    %c128_170 = arith.constant 128 : index
    %410 = vector.load %arg4[%c0_169, %c128_170] : memref<144x256xf32, #tpu.memory_space<vmem>>, vector<9x128xf32>
    tpu.vector_store %arg4[%c0_169, %c128_170], %409 {strides = array<i32>} : memref<144x256xf32, #tpu.memory_space<vmem>>, vector<9x128xf32>,
    %cst_171 = arith.constant -2.200000e+00 : f32
    %411 = vector.broadcast %cst_171 : f32 to vector<9x128xf32>
    %412 = arith.cmpf oge, %403, %411 : vector<9x128xf32>
    %cst_172 = arith.constant -1.800000e+00 : f32
    %413 = vector.broadcast %cst_172 : f32 to vector<9x128xf32>
    %414 = arith.cmpf olt, %403, %413 : vector<9x128xf32>
    %415 = arith.andi %412, %414 : vector<9x128xi1>
    %cst_173 = arith.constant 1.000000e+00 : f32
    %cst_174 = arith.constant 0.000000e+00 : f32
    %416 = vector.broadcast %cst_173 : f32 to vector<9x128xf32>
    %417 = vector.broadcast %cst_174 : f32 to vector<9x128xf32>
    %418 = arith.select %415, %416, %417 : vector<9x128xi1>, vector<9x128xf32>
    %cst_175 = arith.constant -1.800000e+00 : f32
    %419 = vector.broadcast %cst_175 : f32 to vector<9x128xf32>
    %420 = arith.cmpf oge, %403, %419 : vector<9x128xf32>
    %cst_176 = arith.constant -1.400000e+00 : f32
    %421 = vector.broadcast %cst_176 : f32 to vector<9x128xf32>
    %422 = arith.cmpf olt, %403, %421 : vector<9x128xf32>
    %423 = arith.andi %420, %422 : vector<9x128xi1>
    %cst_177 = arith.constant 1.000000e+00 : f32
    %cst_178 = arith.constant 0.000000e+00 : f32
    %424 = vector.broadcast %cst_177 : f32 to vector<9x128xf32>
    %425 = vector.broadcast %cst_178 : f32 to vector<9x128xf32>
    %426 = arith.select %423, %424, %425 : vector<9x128xi1>, vector<9x128xf32>
    %cst_179 = arith.constant -1.400000e+00 : f32
    %427 = vector.broadcast %cst_179 : f32 to vector<9x128xf32>
    %428 = arith.cmpf oge, %403, %427 : vector<9x128xf32>
    %cst_180 = arith.constant -1.000000e+00 : f32
    %429 = vector.broadcast %cst_180 : f32 to vector<9x128xf32>
    %430 = arith.cmpf olt, %403, %429 : vector<9x128xf32>
    %431 = arith.andi %428, %430 : vector<9x128xi1>
    %cst_181 = arith.constant 1.000000e+00 : f32
    %cst_182 = arith.constant 0.000000e+00 : f32
    %432 = vector.broadcast %cst_181 : f32 to vector<9x128xf32>
    %433 = vector.broadcast %cst_182 : f32 to vector<9x128xf32>
    %434 = arith.select %431, %432, %433 : vector<9x128xi1>, vector<9x128xf32>
    %cst_183 = arith.constant -1.000000e+00 : f32
    %435 = vector.broadcast %cst_183 : f32 to vector<9x128xf32>
    %436 = arith.cmpf oge, %403, %435 : vector<9x128xf32>
    %cst_184 = arith.constant -6.000000e-01 : f32
    %437 = vector.broadcast %cst_184 : f32 to vector<9x128xf32>
    %438 = arith.cmpf olt, %403, %437 : vector<9x128xf32>
    %439 = arith.andi %436, %438 : vector<9x128xi1>
    %cst_185 = arith.constant 1.000000e+00 : f32
    %cst_186 = arith.constant 0.000000e+00 : f32
    %440 = vector.broadcast %cst_185 : f32 to vector<9x128xf32>
    %441 = vector.broadcast %cst_186 : f32 to vector<9x128xf32>
    %442 = arith.select %439, %440, %441 : vector<9x128xi1>, vector<9x128xf32>
    %cst_187 = arith.constant -6.000000e-01 : f32
    %443 = vector.broadcast %cst_187 : f32 to vector<9x128xf32>
    %444 = arith.cmpf oge, %403, %443 : vector<9x128xf32>
    %cst_188 = arith.constant -2.000000e-01 : f32
    %445 = vector.broadcast %cst_188 : f32 to vector<9x128xf32>
    %446 = arith.cmpf olt, %403, %445 : vector<9x128xf32>
    %447 = arith.andi %444, %446 : vector<9x128xi1>
    %cst_189 = arith.constant 1.000000e+00 : f32
    %cst_190 = arith.constant 0.000000e+00 : f32
    %448 = vector.broadcast %cst_189 : f32 to vector<9x128xf32>
    %449 = vector.broadcast %cst_190 : f32 to vector<9x128xf32>
    %450 = arith.select %447, %448, %449 : vector<9x128xi1>, vector<9x128xf32>
    %cst_191 = arith.constant -2.000000e-01 : f32
    %451 = vector.broadcast %cst_191 : f32 to vector<9x128xf32>
    %452 = arith.cmpf oge, %403, %451 : vector<9x128xf32>
    %cst_192 = arith.constant 2.000000e-01 : f32
    %453 = vector.broadcast %cst_192 : f32 to vector<9x128xf32>
    %454 = arith.cmpf olt, %403, %453 : vector<9x128xf32>
    %455 = arith.andi %452, %454 : vector<9x128xi1>
    %cst_193 = arith.constant 1.000000e+00 : f32
    %cst_194 = arith.constant 0.000000e+00 : f32
    %456 = vector.broadcast %cst_193 : f32 to vector<9x128xf32>
    %457 = vector.broadcast %cst_194 : f32 to vector<9x128xf32>
    %458 = arith.select %455, %456, %457 : vector<9x128xi1>, vector<9x128xf32>
    %cst_195 = arith.constant 2.000000e-01 : f32
    %459 = vector.broadcast %cst_195 : f32 to vector<9x128xf32>
    %460 = arith.cmpf oge, %403, %459 : vector<9x128xf32>
    %cst_196 = arith.constant 6.000000e-01 : f32
    %461 = vector.broadcast %cst_196 : f32 to vector<9x128xf32>
    %462 = arith.cmpf olt, %403, %461 : vector<9x128xf32>
    %463 = arith.andi %460, %462 : vector<9x128xi1>
    %cst_197 = arith.constant 1.000000e+00 : f32
    %cst_198 = arith.constant 0.000000e+00 : f32
    %464 = vector.broadcast %cst_197 : f32 to vector<9x128xf32>
    %465 = vector.broadcast %cst_198 : f32 to vector<9x128xf32>
    %466 = arith.select %463, %464, %465 : vector<9x128xi1>, vector<9x128xf32>
    %cst_199 = arith.constant 6.000000e-01 : f32
    %467 = vector.broadcast %cst_199 : f32 to vector<9x128xf32>
    %468 = arith.cmpf oge, %403, %467 : vector<9x128xf32>
    %cst_200 = arith.constant 1.000000e+00 : f32
    %469 = vector.broadcast %cst_200 : f32 to vector<9x128xf32>
    %470 = arith.cmpf olt, %403, %469 : vector<9x128xf32>
    %471 = arith.andi %468, %470 : vector<9x128xi1>
    %cst_201 = arith.constant 1.000000e+00 : f32
    %cst_202 = arith.constant 0.000000e+00 : f32
    %472 = vector.broadcast %cst_201 : f32 to vector<9x128xf32>
    %473 = vector.broadcast %cst_202 : f32 to vector<9x128xf32>
    %474 = arith.select %471, %472, %473 : vector<9x128xi1>, vector<9x128xf32>
    %cst_203 = arith.constant 1.000000e+00 : f32
    %475 = vector.broadcast %cst_203 : f32 to vector<9x128xf32>
    %476 = arith.cmpf oge, %403, %475 : vector<9x128xf32>
    %cst_204 = arith.constant 1.400000e+00 : f32
    %477 = vector.broadcast %cst_204 : f32 to vector<9x128xf32>
    %478 = arith.cmpf olt, %403, %477 : vector<9x128xf32>
    %479 = arith.andi %476, %478 : vector<9x128xi1>
    %cst_205 = arith.constant 1.000000e+00 : f32
    %cst_206 = arith.constant 0.000000e+00 : f32
    %480 = vector.broadcast %cst_205 : f32 to vector<9x128xf32>
    %481 = vector.broadcast %cst_206 : f32 to vector<9x128xf32>
    %482 = arith.select %479, %480, %481 : vector<9x128xi1>, vector<9x128xf32>
    %cst_207 = arith.constant 1.400000e+00 : f32
    %483 = vector.broadcast %cst_207 : f32 to vector<9x128xf32>
    %484 = arith.cmpf oge, %403, %483 : vector<9x128xf32>
    %cst_208 = arith.constant 1.800000e+00 : f32
    %485 = vector.broadcast %cst_208 : f32 to vector<9x128xf32>
    %486 = arith.cmpf olt, %403, %485 : vector<9x128xf32>
    %487 = arith.andi %484, %486 : vector<9x128xi1>
    %cst_209 = arith.constant 1.000000e+00 : f32
    %cst_210 = arith.constant 0.000000e+00 : f32
    %488 = vector.broadcast %cst_209 : f32 to vector<9x128xf32>
    %489 = vector.broadcast %cst_210 : f32 to vector<9x128xf32>
    %490 = arith.select %487, %488, %489 : vector<9x128xi1>, vector<9x128xf32>
    %cst_211 = arith.constant 1.800000e+00 : f32
    %491 = vector.broadcast %cst_211 : f32 to vector<9x128xf32>
    %492 = arith.cmpf oge, %403, %491 : vector<9x128xf32>
    %cst_212 = arith.constant 2.200000e+00 : f32
    %493 = vector.broadcast %cst_212 : f32 to vector<9x128xf32>
    %494 = arith.cmpf olt, %403, %493 : vector<9x128xf32>
    %495 = arith.andi %492, %494 : vector<9x128xi1>
    %cst_213 = arith.constant 1.000000e+00 : f32
    %cst_214 = arith.constant 0.000000e+00 : f32
    %496 = vector.broadcast %cst_213 : f32 to vector<9x128xf32>
    %497 = vector.broadcast %cst_214 : f32 to vector<9x128xf32>
    %498 = arith.select %495, %496, %497 : vector<9x128xi1>, vector<9x128xf32>
    %cst_215 = arith.constant -2.200000e+00 : f32
    %499 = vector.broadcast %cst_215 : f32 to vector<9x128xf32>
    %500 = arith.subf %403, %499 : vector<9x128xf32>
    %cst_216 = arith.constant 2.500000e+00 : f32
    %501 = vector.broadcast %cst_216 : f32 to vector<9x128xf32>
    %502 = arith.mulf %500, %501 : vector<9x128xf32>
    %503 = arith.mulf %502, %418 : vector<9x128xf32>
    %cst_217 = arith.constant -1.400000e+00 : f32
    %504 = vector.broadcast %cst_217 : f32 to vector<9x128xf32>
    %505 = arith.subf %504, %403 : vector<9x128xf32>
    %cst_218 = arith.constant 2.500000e+00 : f32
    %506 = vector.broadcast %cst_218 : f32 to vector<9x128xf32>
    %507 = arith.mulf %505, %506 : vector<9x128xf32>
    %508 = arith.mulf %507, %426 : vector<9x128xf32>
    %509 = arith.addf %503, %508 : vector<9x128xf32>
    %cst_219 = arith.constant -1.800000e+00 : f32
    %510 = vector.broadcast %cst_219 : f32 to vector<9x128xf32>
    %511 = arith.subf %403, %510 : vector<9x128xf32>
    %cst_220 = arith.constant 2.500000e+00 : f32
    %512 = vector.broadcast %cst_220 : f32 to vector<9x128xf32>
    %513 = arith.mulf %511, %512 : vector<9x128xf32>
    %514 = arith.mulf %513, %426 : vector<9x128xf32>
    %cst_221 = arith.constant -1.000000e+00 : f32
    %515 = vector.broadcast %cst_221 : f32 to vector<9x128xf32>
    %516 = arith.subf %515, %403 : vector<9x128xf32>
    %cst_222 = arith.constant 2.500000e+00 : f32
    %517 = vector.broadcast %cst_222 : f32 to vector<9x128xf32>
    %518 = arith.mulf %516, %517 : vector<9x128xf32>
    %519 = arith.mulf %518, %434 : vector<9x128xf32>
    %520 = arith.addf %514, %519 : vector<9x128xf32>
    %cst_223 = arith.constant -1.400000e+00 : f32
    %521 = vector.broadcast %cst_223 : f32 to vector<9x128xf32>
    %522 = arith.subf %403, %521 : vector<9x128xf32>
    %cst_224 = arith.constant 2.500000e+00 : f32
    %523 = vector.broadcast %cst_224 : f32 to vector<9x128xf32>
    %524 = arith.mulf %522, %523 : vector<9x128xf32>
    %525 = arith.mulf %524, %434 : vector<9x128xf32>
    %cst_225 = arith.constant -6.000000e-01 : f32
    %526 = vector.broadcast %cst_225 : f32 to vector<9x128xf32>
    %527 = arith.subf %526, %403 : vector<9x128xf32>
    %cst_226 = arith.constant 2.500000e+00 : f32
    %528 = vector.broadcast %cst_226 : f32 to vector<9x128xf32>
    %529 = arith.mulf %527, %528 : vector<9x128xf32>
    %530 = arith.mulf %529, %442 : vector<9x128xf32>
    %531 = arith.addf %525, %530 : vector<9x128xf32>
    %cst_227 = arith.constant -1.000000e+00 : f32
    %532 = vector.broadcast %cst_227 : f32 to vector<9x128xf32>
    %533 = arith.subf %403, %532 : vector<9x128xf32>
    %cst_228 = arith.constant 2.500000e+00 : f32
    %534 = vector.broadcast %cst_228 : f32 to vector<9x128xf32>
    %535 = arith.mulf %533, %534 : vector<9x128xf32>
    %536 = arith.mulf %535, %442 : vector<9x128xf32>
    %cst_229 = arith.constant -2.000000e-01 : f32
    %537 = vector.broadcast %cst_229 : f32 to vector<9x128xf32>
    %538 = arith.subf %537, %403 : vector<9x128xf32>
    %cst_230 = arith.constant 2.500000e+00 : f32
    %539 = vector.broadcast %cst_230 : f32 to vector<9x128xf32>
    %540 = arith.mulf %538, %539 : vector<9x128xf32>
    %541 = arith.mulf %540, %450 : vector<9x128xf32>
    %542 = arith.addf %536, %541 : vector<9x128xf32>
    %cst_231 = arith.constant -6.000000e-01 : f32
    %543 = vector.broadcast %cst_231 : f32 to vector<9x128xf32>
    %544 = arith.subf %403, %543 : vector<9x128xf32>
    %cst_232 = arith.constant 2.500000e+00 : f32
    %545 = vector.broadcast %cst_232 : f32 to vector<9x128xf32>
    %546 = arith.mulf %544, %545 : vector<9x128xf32>
    %547 = arith.mulf %546, %450 : vector<9x128xf32>
    %cst_233 = arith.constant 2.000000e-01 : f32
    %548 = vector.broadcast %cst_233 : f32 to vector<9x128xf32>
    %549 = arith.subf %548, %403 : vector<9x128xf32>
    %cst_234 = arith.constant 2.500000e+00 : f32
    %550 = vector.broadcast %cst_234 : f32 to vector<9x128xf32>
    %551 = arith.mulf %549, %550 : vector<9x128xf32>
    %552 = arith.mulf %551, %458 : vector<9x128xf32>
    %553 = arith.addf %547, %552 : vector<9x128xf32>
    %cst_235 = arith.constant -2.000000e-01 : f32
    %554 = vector.broadcast %cst_235 : f32 to vector<9x128xf32>
    %555 = arith.subf %403, %554 : vector<9x128xf32>
    %cst_236 = arith.constant 2.500000e+00 : f32
    %556 = vector.broadcast %cst_236 : f32 to vector<9x128xf32>
    %557 = arith.mulf %555, %556 : vector<9x128xf32>
    %558 = arith.mulf %557, %458 : vector<9x128xf32>
    %cst_237 = arith.constant 6.000000e-01 : f32
    %559 = vector.broadcast %cst_237 : f32 to vector<9x128xf32>
    %560 = arith.subf %559, %403 : vector<9x128xf32>
    %cst_238 = arith.constant 2.500000e+00 : f32
    %561 = vector.broadcast %cst_238 : f32 to vector<9x128xf32>
    %562 = arith.mulf %560, %561 : vector<9x128xf32>
    %563 = arith.mulf %562, %466 : vector<9x128xf32>
    %564 = arith.addf %558, %563 : vector<9x128xf32>
    %cst_239 = arith.constant 2.000000e-01 : f32
    %565 = vector.broadcast %cst_239 : f32 to vector<9x128xf32>
    %566 = arith.subf %403, %565 : vector<9x128xf32>
    %cst_240 = arith.constant 2.500000e+00 : f32
    %567 = vector.broadcast %cst_240 : f32 to vector<9x128xf32>
    %568 = arith.mulf %566, %567 : vector<9x128xf32>
    %569 = arith.mulf %568, %466 : vector<9x128xf32>
    %cst_241 = arith.constant 1.000000e+00 : f32
    %570 = vector.broadcast %cst_241 : f32 to vector<9x128xf32>
    %571 = arith.subf %570, %403 : vector<9x128xf32>
    %cst_242 = arith.constant 2.500000e+00 : f32
    %572 = vector.broadcast %cst_242 : f32 to vector<9x128xf32>
    %573 = arith.mulf %571, %572 : vector<9x128xf32>
    %574 = arith.mulf %573, %474 : vector<9x128xf32>
    %575 = arith.addf %569, %574 : vector<9x128xf32>
    %cst_243 = arith.constant 6.000000e-01 : f32
    %576 = vector.broadcast %cst_243 : f32 to vector<9x128xf32>
    %577 = arith.subf %403, %576 : vector<9x128xf32>
    %cst_244 = arith.constant 2.500000e+00 : f32
    %578 = vector.broadcast %cst_244 : f32 to vector<9x128xf32>
    %579 = arith.mulf %577, %578 : vector<9x128xf32>
    %580 = arith.mulf %579, %474 : vector<9x128xf32>
    %cst_245 = arith.constant 1.400000e+00 : f32
    %581 = vector.broadcast %cst_245 : f32 to vector<9x128xf32>
    %582 = arith.subf %581, %403 : vector<9x128xf32>
    %cst_246 = arith.constant 2.500000e+00 : f32
    %583 = vector.broadcast %cst_246 : f32 to vector<9x128xf32>
    %584 = arith.mulf %582, %583 : vector<9x128xf32>
    %585 = arith.mulf %584, %482 : vector<9x128xf32>
    %586 = arith.addf %580, %585 : vector<9x128xf32>
    %cst_247 = arith.constant 1.000000e+00 : f32
    %587 = vector.broadcast %cst_247 : f32 to vector<9x128xf32>
    %588 = arith.subf %403, %587 : vector<9x128xf32>
    %cst_248 = arith.constant 2.500000e+00 : f32
    %589 = vector.broadcast %cst_248 : f32 to vector<9x128xf32>
    %590 = arith.mulf %588, %589 : vector<9x128xf32>
    %591 = arith.mulf %590, %482 : vector<9x128xf32>
    %cst_249 = arith.constant 1.800000e+00 : f32
    %592 = vector.broadcast %cst_249 : f32 to vector<9x128xf32>
    %593 = arith.subf %592, %403 : vector<9x128xf32>
    %cst_250 = arith.constant 2.500000e+00 : f32
    %594 = vector.broadcast %cst_250 : f32 to vector<9x128xf32>
    %595 = arith.mulf %593, %594 : vector<9x128xf32>
    %596 = arith.mulf %595, %490 : vector<9x128xf32>
    %597 = arith.addf %591, %596 : vector<9x128xf32>
    %cst_251 = arith.constant 1.400000e+00 : f32
    %598 = vector.broadcast %cst_251 : f32 to vector<9x128xf32>
    %599 = arith.subf %403, %598 : vector<9x128xf32>
    %cst_252 = arith.constant 2.500000e+00 : f32
    %600 = vector.broadcast %cst_252 : f32 to vector<9x128xf32>
    %601 = arith.mulf %599, %600 : vector<9x128xf32>
    %602 = arith.mulf %601, %490 : vector<9x128xf32>
    %cst_253 = arith.constant 2.200000e+00 : f32
    %603 = vector.broadcast %cst_253 : f32 to vector<9x128xf32>
    %604 = arith.subf %603, %403 : vector<9x128xf32>
    %cst_254 = arith.constant 2.500000e+00 : f32
    %605 = vector.broadcast %cst_254 : f32 to vector<9x128xf32>
    %606 = arith.mulf %604, %605 : vector<9x128xf32>
    %607 = arith.mulf %606, %498 : vector<9x128xf32>
    %608 = arith.addf %602, %607 : vector<9x128xf32>
    %cst_255 = arith.constant -2.200000e+00 : f32
    %609 = vector.broadcast %cst_255 : f32 to vector<9x128xf32>
    %610 = arith.subf %403, %609 : vector<9x128xf32>
    %cst_256 = arith.constant 1.250000e+00 : f32
    %611 = vector.broadcast %cst_256 : f32 to vector<9x128xf32>
    %612 = arith.mulf %610, %611 : vector<9x128xf32>
    %613 = arith.mulf %612, %509 : vector<9x128xf32>
    %cst_257 = arith.constant -1.000000e+00 : f32
    %614 = vector.broadcast %cst_257 : f32 to vector<9x128xf32>
    %615 = arith.subf %614, %403 : vector<9x128xf32>
    %cst_258 = arith.constant 1.250000e+00 : f32
    %616 = vector.broadcast %cst_258 : f32 to vector<9x128xf32>
    %617 = arith.mulf %615, %616 : vector<9x128xf32>
    %618 = arith.mulf %617, %520 : vector<9x128xf32>
    %619 = arith.addf %613, %618 : vector<9x128xf32>
    %cst_259 = arith.constant -1.800000e+00 : f32
    %620 = vector.broadcast %cst_259 : f32 to vector<9x128xf32>
    %621 = arith.subf %403, %620 : vector<9x128xf32>
    %cst_260 = arith.constant 1.250000e+00 : f32
    %622 = vector.broadcast %cst_260 : f32 to vector<9x128xf32>
    %623 = arith.mulf %621, %622 : vector<9x128xf32>
    %624 = arith.mulf %623, %520 : vector<9x128xf32>
    %cst_261 = arith.constant -6.000000e-01 : f32
    %625 = vector.broadcast %cst_261 : f32 to vector<9x128xf32>
    %626 = arith.subf %625, %403 : vector<9x128xf32>
    %cst_262 = arith.constant 1.250000e+00 : f32
    %627 = vector.broadcast %cst_262 : f32 to vector<9x128xf32>
    %628 = arith.mulf %626, %627 : vector<9x128xf32>
    %629 = arith.mulf %628, %531 : vector<9x128xf32>
    %630 = arith.addf %624, %629 : vector<9x128xf32>
    %cst_263 = arith.constant -1.400000e+00 : f32
    %631 = vector.broadcast %cst_263 : f32 to vector<9x128xf32>
    %632 = arith.subf %403, %631 : vector<9x128xf32>
    %cst_264 = arith.constant 1.250000e+00 : f32
    %633 = vector.broadcast %cst_264 : f32 to vector<9x128xf32>
    %634 = arith.mulf %632, %633 : vector<9x128xf32>
    %635 = arith.mulf %634, %531 : vector<9x128xf32>
    %cst_265 = arith.constant -2.000000e-01 : f32
    %636 = vector.broadcast %cst_265 : f32 to vector<9x128xf32>
    %637 = arith.subf %636, %403 : vector<9x128xf32>
    %cst_266 = arith.constant 1.250000e+00 : f32
    %638 = vector.broadcast %cst_266 : f32 to vector<9x128xf32>
    %639 = arith.mulf %637, %638 : vector<9x128xf32>
    %640 = arith.mulf %639, %542 : vector<9x128xf32>
    %641 = arith.addf %635, %640 : vector<9x128xf32>
    %cst_267 = arith.constant -1.000000e+00 : f32
    %642 = vector.broadcast %cst_267 : f32 to vector<9x128xf32>
    %643 = arith.subf %403, %642 : vector<9x128xf32>
    %cst_268 = arith.constant 1.250000e+00 : f32
    %644 = vector.broadcast %cst_268 : f32 to vector<9x128xf32>
    %645 = arith.mulf %643, %644 : vector<9x128xf32>
    %646 = arith.mulf %645, %542 : vector<9x128xf32>
    %cst_269 = arith.constant 2.000000e-01 : f32
    %647 = vector.broadcast %cst_269 : f32 to vector<9x128xf32>
    %648 = arith.subf %647, %403 : vector<9x128xf32>
    %cst_270 = arith.constant 1.250000e+00 : f32
    %649 = vector.broadcast %cst_270 : f32 to vector<9x128xf32>
    %650 = arith.mulf %648, %649 : vector<9x128xf32>
    %651 = arith.mulf %650, %553 : vector<9x128xf32>
    %652 = arith.addf %646, %651 : vector<9x128xf32>
    %cst_271 = arith.constant -6.000000e-01 : f32
    %653 = vector.broadcast %cst_271 : f32 to vector<9x128xf32>
    %654 = arith.subf %403, %653 : vector<9x128xf32>
    %cst_272 = arith.constant 1.250000e+00 : f32
    %655 = vector.broadcast %cst_272 : f32 to vector<9x128xf32>
    %656 = arith.mulf %654, %655 : vector<9x128xf32>
    %657 = arith.mulf %656, %553 : vector<9x128xf32>
    %cst_273 = arith.constant 6.000000e-01 : f32
    %658 = vector.broadcast %cst_273 : f32 to vector<9x128xf32>
    %659 = arith.subf %658, %403 : vector<9x128xf32>
    %cst_274 = arith.constant 1.250000e+00 : f32
    %660 = vector.broadcast %cst_274 : f32 to vector<9x128xf32>
    %661 = arith.mulf %659, %660 : vector<9x128xf32>
    %662 = arith.mulf %661, %564 : vector<9x128xf32>
    %663 = arith.addf %657, %662 : vector<9x128xf32>
    %cst_275 = arith.constant -2.000000e-01 : f32
    %664 = vector.broadcast %cst_275 : f32 to vector<9x128xf32>
    %665 = arith.subf %403, %664 : vector<9x128xf32>
    %cst_276 = arith.constant 1.250000e+00 : f32
    %666 = vector.broadcast %cst_276 : f32 to vector<9x128xf32>
    %667 = arith.mulf %665, %666 : vector<9x128xf32>
    %668 = arith.mulf %667, %564 : vector<9x128xf32>
    %cst_277 = arith.constant 1.000000e+00 : f32
    %669 = vector.broadcast %cst_277 : f32 to vector<9x128xf32>
    %670 = arith.subf %669, %403 : vector<9x128xf32>
    %cst_278 = arith.constant 1.250000e+00 : f32
    %671 = vector.broadcast %cst_278 : f32 to vector<9x128xf32>
    %672 = arith.mulf %670, %671 : vector<9x128xf32>
    %673 = arith.mulf %672, %575 : vector<9x128xf32>
    %674 = arith.addf %668, %673 : vector<9x128xf32>
    %cst_279 = arith.constant 2.000000e-01 : f32
    %675 = vector.broadcast %cst_279 : f32 to vector<9x128xf32>
    %676 = arith.subf %403, %675 : vector<9x128xf32>
    %cst_280 = arith.constant 1.250000e+00 : f32
    %677 = vector.broadcast %cst_280 : f32 to vector<9x128xf32>
    %678 = arith.mulf %676, %677 : vector<9x128xf32>
    %679 = arith.mulf %678, %575 : vector<9x128xf32>
    %cst_281 = arith.constant 1.400000e+00 : f32
    %680 = vector.broadcast %cst_281 : f32 to vector<9x128xf32>
    %681 = arith.subf %680, %403 : vector<9x128xf32>
    %cst_282 = arith.constant 1.250000e+00 : f32
    %682 = vector.broadcast %cst_282 : f32 to vector<9x128xf32>
    %683 = arith.mulf %681, %682 : vector<9x128xf32>
    %684 = arith.mulf %683, %586 : vector<9x128xf32>
    %685 = arith.addf %679, %684 : vector<9x128xf32>
    %cst_283 = arith.constant 6.000000e-01 : f32
    %686 = vector.broadcast %cst_283 : f32 to vector<9x128xf32>
    %687 = arith.subf %403, %686 : vector<9x128xf32>
    %cst_284 = arith.constant 1.250000e+00 : f32
    %688 = vector.broadcast %cst_284 : f32 to vector<9x128xf32>
    %689 = arith.mulf %687, %688 : vector<9x128xf32>
    %690 = arith.mulf %689, %586 : vector<9x128xf32>
    %cst_285 = arith.constant 1.800000e+00 : f32
    %691 = vector.broadcast %cst_285 : f32 to vector<9x128xf32>
    %692 = arith.subf %691, %403 : vector<9x128xf32>
    %cst_286 = arith.constant 1.250000e+00 : f32
    %693 = vector.broadcast %cst_286 : f32 to vector<9x128xf32>
    %694 = arith.mulf %692, %693 : vector<9x128xf32>
    %695 = arith.mulf %694, %597 : vector<9x128xf32>
    %696 = arith.addf %690, %695 : vector<9x128xf32>
    %cst_287 = arith.constant 1.000000e+00 : f32
    %697 = vector.broadcast %cst_287 : f32 to vector<9x128xf32>
    %698 = arith.subf %403, %697 : vector<9x128xf32>
    %cst_288 = arith.constant 1.250000e+00 : f32
    %699 = vector.broadcast %cst_288 : f32 to vector<9x128xf32>
    %700 = arith.mulf %698, %699 : vector<9x128xf32>
    %701 = arith.mulf %700, %597 : vector<9x128xf32>
    %cst_289 = arith.constant 2.200000e+00 : f32
    %702 = vector.broadcast %cst_289 : f32 to vector<9x128xf32>
    %703 = arith.subf %702, %403 : vector<9x128xf32>
    %cst_290 = arith.constant 1.250000e+00 : f32
    %704 = vector.broadcast %cst_290 : f32 to vector<9x128xf32>
    %705 = arith.mulf %703, %704 : vector<9x128xf32>
    %706 = arith.mulf %705, %608 : vector<9x128xf32>
    %707 = arith.addf %701, %706 : vector<9x128xf32>
    %cst_291 = arith.constant -2.200000e+00 : f32
    %708 = vector.broadcast %cst_291 : f32 to vector<9x128xf32>
    %709 = arith.subf %403, %708 : vector<9x128xf32>
    %cst_292 = arith.constant 0.833333313 : f32
    %710 = vector.broadcast %cst_292 : f32 to vector<9x128xf32>
    %711 = arith.mulf %709, %710 : vector<9x128xf32>
    %712 = arith.mulf %711, %619 : vector<9x128xf32>
    %cst_293 = arith.constant -6.000000e-01 : f32
    %713 = vector.broadcast %cst_293 : f32 to vector<9x128xf32>
    %714 = arith.subf %713, %403 : vector<9x128xf32>
    %cst_294 = arith.constant 0.833333313 : f32
    %715 = vector.broadcast %cst_294 : f32 to vector<9x128xf32>
    %716 = arith.mulf %714, %715 : vector<9x128xf32>
    %717 = arith.mulf %716, %630 : vector<9x128xf32>
    %718 = arith.addf %712, %717 : vector<9x128xf32>
    %cst_295 = arith.constant -1.800000e+00 : f32
    %719 = vector.broadcast %cst_295 : f32 to vector<9x128xf32>
    %720 = arith.subf %403, %719 : vector<9x128xf32>
    %cst_296 = arith.constant 0.833333313 : f32
    %721 = vector.broadcast %cst_296 : f32 to vector<9x128xf32>
    %722 = arith.mulf %720, %721 : vector<9x128xf32>
    %723 = arith.mulf %722, %630 : vector<9x128xf32>
    %cst_297 = arith.constant -2.000000e-01 : f32
    %724 = vector.broadcast %cst_297 : f32 to vector<9x128xf32>
    %725 = arith.subf %724, %403 : vector<9x128xf32>
    %cst_298 = arith.constant 0.833333313 : f32
    %726 = vector.broadcast %cst_298 : f32 to vector<9x128xf32>
    %727 = arith.mulf %725, %726 : vector<9x128xf32>
    %728 = arith.mulf %727, %641 : vector<9x128xf32>
    %729 = arith.addf %723, %728 : vector<9x128xf32>
    %cst_299 = arith.constant -1.400000e+00 : f32
    %730 = vector.broadcast %cst_299 : f32 to vector<9x128xf32>
    %731 = arith.subf %403, %730 : vector<9x128xf32>
    %cst_300 = arith.constant 0.833333313 : f32
    %732 = vector.broadcast %cst_300 : f32 to vector<9x128xf32>
    %733 = arith.mulf %731, %732 : vector<9x128xf32>
    %734 = arith.mulf %733, %641 : vector<9x128xf32>
    %cst_301 = arith.constant 2.000000e-01 : f32
    %735 = vector.broadcast %cst_301 : f32 to vector<9x128xf32>
    %736 = arith.subf %735, %403 : vector<9x128xf32>
    %cst_302 = arith.constant 0.833333313 : f32
    %737 = vector.broadcast %cst_302 : f32 to vector<9x128xf32>
    %738 = arith.mulf %736, %737 : vector<9x128xf32>
    %739 = arith.mulf %738, %652 : vector<9x128xf32>
    %740 = arith.addf %734, %739 : vector<9x128xf32>
    %cst_303 = arith.constant -1.000000e+00 : f32
    %741 = vector.broadcast %cst_303 : f32 to vector<9x128xf32>
    %742 = arith.subf %403, %741 : vector<9x128xf32>
    %cst_304 = arith.constant 0.833333313 : f32
    %743 = vector.broadcast %cst_304 : f32 to vector<9x128xf32>
    %744 = arith.mulf %742, %743 : vector<9x128xf32>
    %745 = arith.mulf %744, %652 : vector<9x128xf32>
    %cst_305 = arith.constant 6.000000e-01 : f32
    %746 = vector.broadcast %cst_305 : f32 to vector<9x128xf32>
    %747 = arith.subf %746, %403 : vector<9x128xf32>
    %cst_306 = arith.constant 0.833333313 : f32
    %748 = vector.broadcast %cst_306 : f32 to vector<9x128xf32>
    %749 = arith.mulf %747, %748 : vector<9x128xf32>
    %750 = arith.mulf %749, %663 : vector<9x128xf32>
    %751 = arith.addf %745, %750 : vector<9x128xf32>
    %cst_307 = arith.constant -6.000000e-01 : f32
    %752 = vector.broadcast %cst_307 : f32 to vector<9x128xf32>
    %753 = arith.subf %403, %752 : vector<9x128xf32>
    %cst_308 = arith.constant 0.833333313 : f32
    %754 = vector.broadcast %cst_308 : f32 to vector<9x128xf32>
    %755 = arith.mulf %753, %754 : vector<9x128xf32>
    %756 = arith.mulf %755, %663 : vector<9x128xf32>
    %cst_309 = arith.constant 1.000000e+00 : f32
    %757 = vector.broadcast %cst_309 : f32 to vector<9x128xf32>
    %758 = arith.subf %757, %403 : vector<9x128xf32>
    %cst_310 = arith.constant 0.833333313 : f32
    %759 = vector.broadcast %cst_310 : f32 to vector<9x128xf32>
    %760 = arith.mulf %758, %759 : vector<9x128xf32>
    %761 = arith.mulf %760, %674 : vector<9x128xf32>
    %762 = arith.addf %756, %761 : vector<9x128xf32>
    %cst_311 = arith.constant -2.000000e-01 : f32
    %763 = vector.broadcast %cst_311 : f32 to vector<9x128xf32>
    %764 = arith.subf %403, %763 : vector<9x128xf32>
    %cst_312 = arith.constant 0.833333313 : f32
    %765 = vector.broadcast %cst_312 : f32 to vector<9x128xf32>
    %766 = arith.mulf %764, %765 : vector<9x128xf32>
    %767 = arith.mulf %766, %674 : vector<9x128xf32>
    %cst_313 = arith.constant 1.400000e+00 : f32
    %768 = vector.broadcast %cst_313 : f32 to vector<9x128xf32>
    %769 = arith.subf %768, %403 : vector<9x128xf32>
    %cst_314 = arith.constant 0.833333313 : f32
    %770 = vector.broadcast %cst_314 : f32 to vector<9x128xf32>
    %771 = arith.mulf %769, %770 : vector<9x128xf32>
    %772 = arith.mulf %771, %685 : vector<9x128xf32>
    %773 = arith.addf %767, %772 : vector<9x128xf32>
    %cst_315 = arith.constant 2.000000e-01 : f32
    %774 = vector.broadcast %cst_315 : f32 to vector<9x128xf32>
    %775 = arith.subf %403, %774 : vector<9x128xf32>
    %cst_316 = arith.constant 0.833333313 : f32
    %776 = vector.broadcast %cst_316 : f32 to vector<9x128xf32>
    %777 = arith.mulf %775, %776 : vector<9x128xf32>
    %778 = arith.mulf %777, %685 : vector<9x128xf32>
    %cst_317 = arith.constant 1.800000e+00 : f32
    %779 = vector.broadcast %cst_317 : f32 to vector<9x128xf32>
    %780 = arith.subf %779, %403 : vector<9x128xf32>
    %cst_318 = arith.constant 0.833333313 : f32
    %781 = vector.broadcast %cst_318 : f32 to vector<9x128xf32>
    %782 = arith.mulf %780, %781 : vector<9x128xf32>
    %783 = arith.mulf %782, %696 : vector<9x128xf32>
    %784 = arith.addf %778, %783 : vector<9x128xf32>
    %cst_319 = arith.constant 6.000000e-01 : f32
    %785 = vector.broadcast %cst_319 : f32 to vector<9x128xf32>
    %786 = arith.subf %403, %785 : vector<9x128xf32>
    %cst_320 = arith.constant 0.833333313 : f32
    %787 = vector.broadcast %cst_320 : f32 to vector<9x128xf32>
    %788 = arith.mulf %786, %787 : vector<9x128xf32>
    %789 = arith.mulf %788, %696 : vector<9x128xf32>
    %cst_321 = arith.constant 2.200000e+00 : f32
    %790 = vector.broadcast %cst_321 : f32 to vector<9x128xf32>
    %791 = arith.subf %790, %403 : vector<9x128xf32>
    %cst_322 = arith.constant 0.833333313 : f32
    %792 = vector.broadcast %cst_322 : f32 to vector<9x128xf32>
    %793 = arith.mulf %791, %792 : vector<9x128xf32>
    %794 = arith.mulf %793, %707 : vector<9x128xf32>
    %795 = arith.addf %789, %794 : vector<9x128xf32>
    %c16_323 = arith.constant 16 : index
    %c128_324 = arith.constant 128 : index
    %796 = vector.load %arg4[%c16_323, %c128_324] : memref<144x256xf32, #tpu.memory_space<vmem>>, vector<9x128xf32>
    tpu.vector_store %arg4[%c16_323, %c128_324], %718 {strides = array<i32>} : memref<144x256xf32, #tpu.memory_space<vmem>>, vector<9x128xf32>,
    %c32_325 = arith.constant 32 : index
    %c128_326 = arith.constant 128 : index
    %797 = vector.load %arg4[%c32_325, %c128_326] : memref<144x256xf32, #tpu.memory_space<vmem>>, vector<9x128xf32>
    tpu.vector_store %arg4[%c32_325, %c128_326], %729 {strides = array<i32>} : memref<144x256xf32, #tpu.memory_space<vmem>>, vector<9x128xf32>,
    %c48_327 = arith.constant 48 : index
    %c128_328 = arith.constant 128 : index
    %798 = vector.load %arg4[%c48_327, %c128_328] : memref<144x256xf32, #tpu.memory_space<vmem>>, vector<9x128xf32>
    tpu.vector_store %arg4[%c48_327, %c128_328], %740 {strides = array<i32>} : memref<144x256xf32, #tpu.memory_space<vmem>>, vector<9x128xf32>,
    %c64_329 = arith.constant 64 : index
    %c128_330 = arith.constant 128 : index
    %799 = vector.load %arg4[%c64_329, %c128_330] : memref<144x256xf32, #tpu.memory_space<vmem>>, vector<9x128xf32>
    tpu.vector_store %arg4[%c64_329, %c128_330], %751 {strides = array<i32>} : memref<144x256xf32, #tpu.memory_space<vmem>>, vector<9x128xf32>,
    %c80_331 = arith.constant 80 : index
    %c128_332 = arith.constant 128 : index
    %800 = vector.load %arg4[%c80_331, %c128_332] : memref<144x256xf32, #tpu.memory_space<vmem>>, vector<9x128xf32>
    tpu.vector_store %arg4[%c80_331, %c128_332], %762 {strides = array<i32>} : memref<144x256xf32, #tpu.memory_space<vmem>>, vector<9x128xf32>,
    %c96_333 = arith.constant 96 : index
    %c128_334 = arith.constant 128 : index
    %801 = vector.load %arg4[%c96_333, %c128_334] : memref<144x256xf32, #tpu.memory_space<vmem>>, vector<9x128xf32>
    tpu.vector_store %arg4[%c96_333, %c128_334], %773 {strides = array<i32>} : memref<144x256xf32, #tpu.memory_space<vmem>>, vector<9x128xf32>,
    %c112_335 = arith.constant 112 : index
    %c128_336 = arith.constant 128 : index
    %802 = vector.load %arg4[%c112_335, %c128_336] : memref<144x256xf32, #tpu.memory_space<vmem>>, vector<9x128xf32>
    tpu.vector_store %arg4[%c112_335, %c128_336], %784 {strides = array<i32>} : memref<144x256xf32, #tpu.memory_space<vmem>>, vector<9x128xf32>,
    %c128_337 = arith.constant 128 : index
    %c128_338 = arith.constant 128 : index
    %803 = vector.load %arg4[%c128_337, %c128_338] : memref<144x256xf32, #tpu.memory_space<vmem>>, vector<9x128xf32>
    tpu.vector_store %arg4[%c128_337, %c128_338], %795 {strides = array<i32>} : memref<144x256xf32, #tpu.memory_space<vmem>>, vector<9x128xf32>,
    %c0_339 = arith.constant 0 : index
    %c0_340 = arith.constant 0 : index
    %804 = vector.load %arg2[%c0_339, %c0_340] : memref<5x144xf32, #tpu.memory_space<vmem>>, vector<5x144xf32>
    %c0_341 = arith.constant 0 : index
    %c0_342 = arith.constant 0 : index
    %805 = vector.load %arg4[%c0_341, %c0_342] : memref<144x256xf32, #tpu.memory_space<vmem>>, vector<144x256xf32>
    %cst_343 = arith.constant dense<0.000000e+00> : vector<5x256xf32>
    %806 = tpu.matmul %804, %805, %cst_343 {dimension_numbers = #tpu.dot_dimension_numbers<[1], [0], [0], [1], [0, 0, 1, 1], [], []>} : vector<5x144xf32>, vector<144x256xf32>, vector<5x256xf32> -> vector<5x256xf32>
    %c0_344 = arith.constant 0 : index
    %c0_345 = arith.constant 0 : index
    %807 = vector.load %arg3[%c0_344, %c0_345] : memref<5x256xf32, #tpu.memory_space<vmem>>, vector<5x256xf32>
    tpu.vector_store %arg3[%c0_344, %c0_345], %806 {strides = array<i32>} : memref<5x256xf32, #tpu.memory_space<vmem>>, vector<5x256xf32>,
    return
  }
  func.func @transform_0(%arg0: i32) -> (i32, i32) {
    %c0_i32 = arith.constant 0 : i32
    %c0_i32_0 = arith.constant 0 : i32
    return %c0_i32, %arg0 : i32, i32
  }
  func.func @transform_1(%arg0: i32) -> (i32, i32) {
    %c0_i32 = arith.constant 0 : i32
    %c0_i32_0 = arith.constant 0 : i32
    %c0_i32_1 = arith.constant 0 : i32
    return %c0_i32, %c0_i32_0 : i32, i32
  }
  func.func @transform_2(%arg0: i32) -> (i32, i32) {
    %c0_i32 = arith.constant 0 : i32
    %c0_i32_0 = arith.constant 0 : i32
    return %c0_i32, %arg0 : i32, i32
  }
}

module attributes {stable_mosaic.version = 11 : i64} {
  func.func @head_kernel(%arg0: i32, %arg1: memref<8x256xf32, #tpu.memory_space<vmem>>, %arg2: memref<8x256xf32, #tpu.memory_space<vmem>>, %arg3: memref<256x256xf32, #tpu.memory_space<vmem>>, %arg4: memref<1x256xf32, #tpu.memory_space<vmem>>, %arg5: memref<256x2xf32, #tpu.memory_space<vmem>>, %arg6: memref<1x2xf32, #tpu.memory_space<vmem>>, %arg7: memref<8x2xf32, #tpu.memory_space<vmem>>, %arg8: memref<8x256xf32, #tpu.memory_space<vmem>>) attributes {dimension_semantics = [#tpu.dimension_semantics<arbitrary>], iteration_bounds = array<i64: 1>, scalar_prefetch = 0 : i64, scratch_operands = 1 : i64, tpu.core_type = #tpu.core_type<tc>, window_params = [{transform_indices = @transform_0, window_bounds = array<i64: 8, 256>}, {transform_indices = @transform_1, window_bounds = array<i64: 8, 256>}, {transform_indices = @transform_2, window_bounds = array<i64: 256, 256>}, {pipeline_mode = #tpu.pipeline_mode<synchronous>, transform_indices = @transform_3, window_bounds = array<i64: 1, 256>}, {pipeline_mode = #tpu.pipeline_mode<synchronous>, transform_indices = @transform_4, window_bounds = array<i64: 256, 2>}, {pipeline_mode = #tpu.pipeline_mode<synchronous>, transform_indices = @transform_5, window_bounds = array<i64: 1, 2>}, {pipeline_mode = #tpu.pipeline_mode<synchronous>, transform_indices = @transform_6, window_bounds = array<i64: 8, 2>}]} {
    %c0_i32 = arith.constant 0 : i32
    %0 = arith.cmpi eq, %arg0, %c0_i32 : i32
    %1 = arith.extui %0 : i1 to i32
    %c0_i32_0 = arith.constant 0 : i32
    %2 = arith.cmpi ne, %1, %c0_i32_0 : i32
    scf.if %2 {
      %cst_12 = arith.constant 0.000000e+00 : f32
      %14 = vector.broadcast %cst_12 : f32 to vector<8x256xf32>
      %c0_13 = arith.constant 0 : index
      %c0_14 = arith.constant 0 : index
      %15 = vector.load %arg8[%c0_13, %c0_14] : memref<8x256xf32, #tpu.memory_space<vmem>>, vector<8x256xf32>
      tpu.vector_store %arg8[%c0_13, %c0_14], %14 {strides = array<i32>} : memref<8x256xf32, #tpu.memory_space<vmem>>, vector<8x256xf32>,
    } else {
    }
    %c0 = arith.constant 0 : index
    %c0_1 = arith.constant 0 : index
    %3 = vector.load %arg1[%c0, %c0_1] : memref<8x256xf32, #tpu.memory_space<vmem>>, vector<8x256xf32>
    %c0_2 = arith.constant 0 : index
    %c0_3 = arith.constant 0 : index
    %4 = vector.load %arg2[%c0_2, %c0_3] : memref<8x256xf32, #tpu.memory_space<vmem>>, vector<8x256xf32>
    %5 = arith.maximumf %3, %4 : vector<8x256xf32>
    %c0_4 = arith.constant 0 : index
    %c0_5 = arith.constant 0 : index
    %6 = vector.load %arg8[%c0_4, %c0_5] : memref<8x256xf32, #tpu.memory_space<vmem>>, vector<8x256xf32>
    %c0_6 = arith.constant 0 : index
    %c0_7 = arith.constant 0 : index
    %7 = vector.load %arg3[%c0_6, %c0_7] : memref<256x256xf32, #tpu.memory_space<vmem>>, vector<256x256xf32>
    %cst = arith.constant dense<0.000000e+00> : vector<8x256xf32>
    %8 = tpu.matmul %5, %7, %cst {dimension_numbers = #tpu.dot_dimension_numbers<[1], [0], [0], [1], [0, 0, 1, 1], [], []>} : vector<8x256xf32>, vector<256x256xf32>, vector<8x256xf32> -> vector<8x256xf32>
    %9 = arith.addf %6, %8 : vector<8x256xf32>
    %c0_8 = arith.constant 0 : index
    %c0_9 = arith.constant 0 : index
    %10 = vector.load %arg8[%c0_8, %c0_9] : memref<8x256xf32, #tpu.memory_space<vmem>>, vector<8x256xf32>
    tpu.vector_store %arg8[%c0_8, %c0_9], %9 {strides = array<i32>} : memref<8x256xf32, #tpu.memory_space<vmem>>, vector<8x256xf32>,
    %c0_i32_10 = arith.constant 0 : i32
    %11 = arith.cmpi eq, %arg0, %c0_i32_10 : i32
    %12 = arith.extui %11 : i1 to i32
    %c0_i32_11 = arith.constant 0 : i32
    %13 = arith.cmpi ne, %12, %c0_i32_11 : i32
    scf.if %13 {
      %c0_12 = arith.constant 0 : index
      %c0_13 = arith.constant 0 : index
      %14 = vector.load %arg8[%c0_12, %c0_13] : memref<8x256xf32, #tpu.memory_space<vmem>>, vector<8x256xf32>
      %c0_14 = arith.constant 0 : index
      %c0_15 = arith.constant 0 : index
      %15 = vector.load %arg4[%c0_14, %c0_15] : memref<1x256xf32, #tpu.memory_space<vmem>>, vector<1x256xf32>
      %16 = vector.broadcast %15 : vector<1x256xf32> to vector<8x256xf32>
      %17 = arith.addf %14, %16 : vector<8x256xf32>
      %c0_16 = arith.constant 0 : index
      %c0_17 = arith.constant 0 : index
      %18 = vector.load %arg5[%c0_16, %c0_17] : memref<256x2xf32, #tpu.memory_space<vmem>>, vector<256x2xf32>
      %cst_18 = arith.constant dense<0.000000e+00> : vector<8x2xf32>
      %19 = tpu.matmul %17, %18, %cst_18 {dimension_numbers = #tpu.dot_dimension_numbers<[1], [0], [0], [1], [0, 0, 1, 1], [], []>} : vector<8x256xf32>, vector<256x2xf32>, vector<8x2xf32> -> vector<8x2xf32>
      %c0_19 = arith.constant 0 : index
      %c0_20 = arith.constant 0 : index
      %20 = vector.load %arg6[%c0_19, %c0_20] : memref<1x2xf32, #tpu.memory_space<vmem>>, vector<1x2xf32>
      %21 = vector.broadcast %20 : vector<1x2xf32> to vector<8x2xf32>
      %22 = arith.addf %19, %21 : vector<8x2xf32>
      %cst_21 = arith.constant dense<0xFF800000> : vector<8xf32>
      %23 = vector.multi_reduction <maximumf>, %22, %cst_21 [1] : vector<8x2xf32> to vector<8xf32>
      %24 = vector.shape_cast %23 : vector<8xf32> to vector<8x1xf32>
      %25 = vector.broadcast %24 : vector<8x1xf32> to vector<8x2xf32>
      %26 = arith.subf %22, %25 : vector<8x2xf32>
      %27 = math.exp %26 : vector<8x2xf32>
      %cst_22 = arith.constant dense<0.000000e+00> : vector<8xf32>
      %28 = vector.multi_reduction <add>, %27, %cst_22 [1] : vector<8x2xf32> to vector<8xf32>
      %29 = vector.shape_cast %28 : vector<8xf32> to vector<8x1xf32>
      %30 = math.log %29 : vector<8x1xf32>
      %31 = vector.broadcast %30 : vector<8x1xf32> to vector<8x2xf32>
      %32 = arith.subf %26, %31 : vector<8x2xf32>
      %c0_23 = arith.constant 0 : index
      %c0_24 = arith.constant 0 : index
      %33 = vector.load %arg7[%c0_23, %c0_24] : memref<8x2xf32, #tpu.memory_space<vmem>>, vector<8x2xf32>
      tpu.vector_store %arg7[%c0_23, %c0_24], %32 {strides = array<i32>} : memref<8x2xf32, #tpu.memory_space<vmem>>, vector<8x2xf32>,
    } else {
    }
    return
  }
  func.func @transform_0(%arg0: i32) -> (i32, i32) {
    %c0_i32 = arith.constant 0 : i32
    %c0_i32_0 = arith.constant 0 : i32
    return %c0_i32, %arg0 : i32, i32
  }
  func.func @transform_1(%arg0: i32) -> (i32, i32) {
    %c0_i32 = arith.constant 0 : i32
    %c0_i32_0 = arith.constant 0 : i32
    return %c0_i32, %arg0 : i32, i32
  }
  func.func @transform_2(%arg0: i32) -> (i32, i32) {
    %c0_i32 = arith.constant 0 : i32
    %c0_i32_0 = arith.constant 0 : i32
    return %arg0, %c0_i32 : i32, i32
  }
  func.func @transform_3(%arg0: i32) -> (i32, i32) {
    %c0_i32 = arith.constant 0 : i32
    %c0_i32_0 = arith.constant 0 : i32
    %c0_i32_1 = arith.constant 0 : i32
    return %c0_i32, %c0_i32_0 : i32, i32
  }
  func.func @transform_4(%arg0: i32) -> (i32, i32) {
    %c0_i32 = arith.constant 0 : i32
    %c0_i32_0 = arith.constant 0 : i32
    %c0_i32_1 = arith.constant 0 : i32
    return %c0_i32, %c0_i32_0 : i32, i32
  }
  func.func @transform_5(%arg0: i32) -> (i32, i32) {
    %c0_i32 = arith.constant 0 : i32
    %c0_i32_0 = arith.constant 0 : i32
    %c0_i32_1 = arith.constant 0 : i32
    return %c0_i32, %c0_i32_0 : i32, i32
  }
  func.func @transform_6(%arg0: i32) -> (i32, i32) {
    %c0_i32 = arith.constant 0 : i32
    %c0_i32_0 = arith.constant 0 : i32
    %c0_i32_1 = arith.constant 0 : i32
    return %c0_i32, %c0_i32_0 : i32, i32
  }
}

</mosaic_0001>

<bundles_post_ra>
// kernel: kanc_mlp_forward.3
= control target key start
LH: loop header
LB: loop body
LE: loop exit
PB: predicated region body
PF: predicated region fallthrough
CT: control target
= control target key end

     0   :  { %vm304_vm0 = vcmask 15360   ;;  %s709_s2 = inlined_call_operand.vmem [shape: f32[256,256], index: 2, kind: input, shape index: {}]   ;;  %s710_s0 = inlined_call_operand.vmem [shape: f32[8,256], index: 0, kind: input, shape index: {}]   ;;  %s711_s1 = inlined_call_operand.vmem [shape: f32[8,256], index: 1, kind: input, shape index: {}]   ;;  %s712_s4 = inlined_call_operand.vmem [shape: f32[256,2], index: 4, kind: input, shape index: {}]   ;;  %s713_s3 = inlined_call_operand.vmem [shape: f32[1,256], index: 3, kind: input, shape index: {}]   ;;  %s714_s5 = inlined_call_operand.vmem [shape: f32[1,2], index: 5, kind: input, shape index: {}]   ;;  %s715_s6 = inlined_call_operand.vmem [shape: f32[8,2], index: 6, kind: output, shape index: {}]  }
   0x1   :  { %v68_v0 = vld [vmem:[%s709_s2 + $0xf8] sm:$0xff]  ;;  %v67_v1 = vld [vmem:[%s709_s2 + $0xf0] sm:$0xff]  ;;  %v66_v2 = vld [vmem:[%s709_s2 + $0xe8] sm:$0xff] }
   0x2   :  { %101 = vmatprep.subr.mxu0 %v68_v0  ;;  %v65_v3 = vld [vmem:[%s709_s2 + $0xe0] sm:$0xff]  ;;  %v64_v4 = vld [vmem:[%s709_s2 + $0xd8] sm:$0xff]  ;;  %v63_v5 = vld [vmem:[%s709_s2 + $0xd0] sm:$0xff] }
   0x3   :  { %102 = vmatpush1.msra.mxu0 %v67_v1  ;;  %v62_v6 = vld [vmem:[%s709_s2 + $0xc8] sm:$0xff]  ;;  %v61_v7 = vld [vmem:[%s709_s2 + $0xc0] sm:$0xff]  ;;  %v60_v8 = vld [vmem:[%s709_s2 + $0xb8] sm:$0xff] }
   0x4   :  { %103 = vmatprep.subr.mxu0 %v66_v2  ;;  %v59_v9 = vld [vmem:[%s709_s2 + $0xb0] sm:$0xff]  ;;  %v58_v10 = vld [vmem:[%s709_s2 + $0xa8] sm:$0xff]  ;;  %v57_v11 = vld [vmem:[%s709_s2 + $0xa0] sm:$0xff] }
   0x5   :  { %104 = vmatpush1.msra.mxu0 %v65_v3  ;;  %v56_v12 = vld [vmem:[%s709_s2 + $0x98] sm:$0xff]  ;;  %v55_v13 = vld [vmem:[%s709_s2 + $0x90] sm:$0xff]  ;;  %v54_v14 = vld [vmem:[%s709_s2 + $0x88] sm:$0xff] }
   0x6   :  { %105 = vmatprep.subr.mxu0 %v64_v4  ;;  %v53_v15 = vld [vmem:[%s709_s2 + $0x80] sm:$0xff]  ;;  %v52_v16 = vld [vmem:[%s709_s2 + $0x78] sm:$0xff]  ;;  %v51_v17 = vld [vmem:[%s709_s2 + $0x70] sm:$0xff] }
   0x7   :  { %106 = vmatpush1.msra.mxu0 %v63_v5  ;;  %v50_v18 = vld [vmem:[%s709_s2 + $0x68] sm:$0xff]  ;;  %v49_v19 = vld [vmem:[%s709_s2 + $0x60] sm:$0xff]  ;;  %v48_v20 = vld [vmem:[%s709_s2 + $0x58] sm:$0xff] }
   0x8   :  { %107 = vmatprep.subr.mxu0 %v62_v6  ;;  %v47_v21 = vld [vmem:[%s709_s2 + $0x50] sm:$0xff]  ;;  %v46_v22 = vld [vmem:[%s709_s2 + $0x48] sm:$0xff]  ;;  %v45_v23 = vld [vmem:[%s709_s2 + $0x40] sm:$0xff] }
   0x9   :  { %108 = vmatpush1.msra.mxu0 %v61_v7  ;;  %v30_v24 = vld [vmem:[%s710_s0 + $0x8] sm:$0xff]  ;;  %v44_v25 = vld [vmem:[%s709_s2 + $0x38] sm:$0xff]  ;;  %v43_v28 = vld [vmem:[%s709_s2 + $0x30] sm:$0xff] }
   0xa   :  { %109 = vmatprep.subr.mxu0 %v60_v8  ;;  %v32_v26 = vld [vmem:[%s711_s1 + $0x8] sm:$0xff]  ;;  %v226_v27 = vld [vmem:[%s712_s4 + $0xf8] sm:$0xff]  ;;  %v225_v31 = vld [vmem:[%s712_s4 + $0xf0] sm:$0xff] }
   0xb   :  { %110 = vmatpush1.msra.mxu0 %v59_v9  ;;  %v34_v29 = vmax.f32 %v30_v24, %v32_v26  ;;  %323 = vmatprep.subr.mxu1 %v226_v27  ;;  %v210_v30 = vld [vmem:[%s712_s4 + $0x78] sm:$0xff]  ;;  %v42_v32 = vld [vmem:[%s709_s2 + $0x28] sm:$0xff]  ;;  %v209_v33 = vld [vmem:[%s712_s4 + $0x70] sm:$0xff] }
   0xc   :  { %111 = vmatprep.subr.mxu0 %v58_v10  ;;  %324 = vmatpush3.msra.mxu1 %v210_v30  ;;  %v41_v34 = vld [vmem:[%s709_s2 + $0x20] sm:$0xff]  ;;  %v224_v35 = vld [vmem:[%s712_s4 + $0xe8] sm:$0xff]  ;;  %v40_v36 = vld [vmem:[%s709_s2 + $0x18] sm:$0xff] }
   0xd   :  { %112 = vmatpush1.msra.mxu0 %v57_v11  ;;  %165 = vmatprep.mubr.f32.mxu0 %v34_v29  ;;  %v208_v37 = vld [vmem:[%s712_s4 + $0x68] sm:$0xff]  ;;  %v39_v38 = vld [vmem:[%s709_s2 + $0x10] sm:$0xff]  ;;  %v223_v39 = vld [vmem:[%s712_s4 + $0xe0] sm:$0xff] }
   0xe   :  { %113 = vmatprep.subr.mxu0 %v56_v12  ;;  %325 = vmatprep.subr.mxu1 %v225_v31  ;;  %v38_v40 = vld [vmem:[%s709_s2 + $0x8] sm:$0xff]  ;;  %v207_v41 = vld [vmem:[%s712_s4 + $0x60] sm:$0xff]  ;;  %v222_v43 = vld [vmem:[%s712_s4 + $0xd8] sm:$0xff] }
   0xf   :  { %114 = vmatpush1.msra.mxu0 %v55_v13  ;;  %326 = vmatpush3.msra.mxu1 %v209_v33  ;;  %v37_v42 = vld [vmem:[%s709_s2] sm:$0xff]  ;;  %v100_v44 = vld [vmem:[%s709_s2 + $0x1f8] sm:$0xff]  ;;  %v99_v46 = vld [vmem:[%s709_s2 + $0x1f0] sm:$0xff] }
  0x10   :  { %115 = vmatprep.subr.mxu0 %v54_v14  ;;  %327 = vmatprep.subr.mxu1 %v224_v35  ;;  %v206_v45 = vld [vmem:[%s712_s4 + $0x58] sm:$0xff]  ;;  %v221_v47 = vld [vmem:[%s712_s4 + $0xd0] sm:$0xff]  ;;  %v98_v48 = vld [vmem:[%s709_s2 + $0x1e8] sm:$0xff] }
  0x11   :  { %116 = vmatpush1.msra.mxu0 %v53_v15  ;;  %328 = vmatpush3.msra.mxu1 %v208_v37  ;;  %v205_v49 = vld [vmem:[%s712_s4 + $0x50] sm:$0xff]  ;;  %v97_v50 = vld [vmem:[%s709_s2 + $0x1e0] sm:$0xff]  ;;  %v220_v51 = vld [vmem:[%s712_s4 + $0xc8] sm:$0xff] }
  0x12   :  { %117 = vmatprep.subr.mxu0 %v52_v16  ;;  %329 = vmatprep.subr.mxu1 %v223_v39  ;;  %v96_v52 = vld [vmem:[%s709_s2 + $0x1d8] sm:$0xff]  ;;  %v204_v53 = vld [vmem:[%s712_s4 + $0x48] sm:$0xff]  ;;  %v95_v54 = vld [vmem:[%s709_s2 + $0x1d0] sm:$0xff] }
  0x13   :  { %118 = vmatpush1.msra.mxu0 %v51_v17  ;;  %330 = vmatpush3.msra.mxu1 %v207_v41  ;;  %v219_v55 = vld [vmem:[%s712_s4 + $0xc0] sm:$0xff]  ;;  %v94_v56 = vld [vmem:[%s709_s2 + $0x1c8] sm:$0xff]  ;;  %v218_v59 = vld [vmem:[%s712_s4 + $0xb8] sm:$0xff] }
  0x14   :  { %119 = vmatprep.subr.mxu0 %v50_v18  ;;  %331 = vmatprep.subr.mxu1 %v222_v43  ;;  %v203_v57 = vld [vmem:[%s712_s4 + $0x40] sm:$0xff]  ;;  %v92_v60 = vld [vmem:[%s709_s2 + $0x1b8] sm:$0xff]  ;;  %v91_v62 = vld [vmem:[%s709_s2 + $0x1b0] sm:$0xff] }
  0x15   :  { %120 = vmatpush1.msra.mxu0 %v49_v19  ;;  %332 = vmatpush3.msra.mxu1 %v206_v45  ;;  %v93_v58 = vld [vmem:[%s709_s2 + $0x1c0] sm:$0xff]  ;;  %v202_v61 = vld [vmem:[%s712_s4 + $0x38] sm:$0xff]  ;;  %v217_v63 = vld [vmem:[%s712_s4 + $0xb0] sm:$0xff] }
  0x16   :  { %121 = vmatprep.subr.mxu0 %v48_v20  ;;  %333 = vmatprep.subr.mxu1 %v221_v47  ;;  %v90_v0 = vld [vmem:[%s709_s2 + $0x1a8] sm:$0xff]  ;;  %v201_v1 = vld [vmem:[%s712_s4 + $0x30] sm:$0xff]  ;;  %v89_v2 = vld [vmem:[%s709_s2 + $0x1a0] sm:$0xff] }
  0x17   :  { %122 = vmatpush1.msra.mxu0 %v47_v21  ;;  %334 = vmatpush3.msra.mxu1 %v205_v49  ;;  %v216_v3 = vld [vmem:[%s712_s4 + $0xa8] sm:$0xff]  ;;  %v88_v4 = vld [vmem:[%s709_s2 + $0x198] sm:$0xff]  ;;  %v87_v6 = vld [vmem:[%s709_s2 + $0x190] sm:$0xff] }
  0x18   :  { %123 = vmatprep.subr.mxu0 %v46_v22  ;;  %335 = vmatprep.subr.mxu1 %v220_v51  ;;  %v200_v5 = vld [vmem:[%s712_s4 + $0x28] sm:$0xff]  ;;  %v215_v7 = vld [vmem:[%s712_s4 + $0xa0] sm:$0xff]  ;;  %v214_v11 = vld [vmem:[%s712_s4 + $0x98] sm:$0xff] }
  0x19   :  { %124 = vmatpush1.msra.mxu0 %v45_v23  ;;  %336 = vmatpush3.msra.mxu1 %v204_v53  ;;  %v86_v8 = vld [vmem:[%s709_s2 + $0x188] sm:$0xff]  ;;  %v199_v9 = vld [vmem:[%s712_s4 + $0x20] sm:$0xff]  ;;  %v84_v12 = vld [vmem:[%s709_s2 + $0x178] sm:$0xff] }
  0x1a   :  { %125 = vmatprep.subr.mxu0 %v44_v25  ;;  %337 = vmatprep.subr.mxu1 %v219_v55  ;;  %v85_v10 = vld [vmem:[%s709_s2 + $0x180] sm:$0xff]  ;;  %v198_v13 = vld [vmem:[%s712_s4 + $0x18] sm:$0xff]  ;;  %v83_v14 = vld [vmem:[%s709_s2 + $0x170] sm:$0xff] }
  0x1b   :  { %126 = vmatpush1.msra.mxu0 %v43_v28  ;;  %338 = vmatpush3.msra.mxu1 %v203_v57  ;;  %v82_v15 = vld [vmem:[%s709_s2 + $0x168] sm:$0xff]  ;;  %v81_v16 = vld [vmem:[%s709_s2 + $0x160] sm:$0xff]  ;;  %v80_v17 = vld [vmem:[%s709_s2 + $0x158] sm:$0xff] }
  0x1c   :  { %127 = vmatprep.subr.mxu0 %v42_v32  ;;  %339 = vmatprep.subr.mxu1 %v218_v59  ;;  %v79_v18 = vld [vmem:[%s709_s2 + $0x150] sm:$0xff]  ;;  %v78_v19 = vld [vmem:[%s709_s2 + $0x148] sm:$0xff]  ;;  %v77_v20 = vld [vmem:[%s709_s2 + $0x140] sm:$0xff] }
  0x1d   :  { %128 = vmatpush1.msra.mxu0 %v41_v34  ;;  %340 = vmatpush3.msra.mxu1 %v202_v61  ;;  %v76_v21 = vld [vmem:[%s709_s2 + $0x138] sm:$0xff]  ;;  %v75_v22 = vld [vmem:[%s709_s2 + $0x130] sm:$0xff]  ;;  %v74_v23 = vld [vmem:[%s709_s2 + $0x128] sm:$0xff] }
  0x1e   :  { %129 = vmatprep.subr.mxu0 %v40_v36  ;;  %341 = vmatprep.subr.mxu1 %v217_v63  ;;  %v73_v24 = vld [vmem:[%s709_s2 + $0x120] sm:$0xff]  ;;  %v72_v25 = vld [vmem:[%s709_s2 + $0x118] sm:$0xff]  ;;  %v71_v28 = vld [vmem:[%s709_s2 + $0x110] sm:$0xff] }
  0x1f   :  { %130 = vmatpush1.msra.mxu0 %v39_v38  ;;  %342 = vmatpush3.msra.mxu1 %v201_v1  ;;  %v29_v26 = vld [vmem:[%s710_s0] sm:$0xff]  ;;  %v70_v29 = vld [vmem:[%s709_s2 + $0x108] sm:$0xff]  ;;  %v213_v32 = vld [vmem:[%s712_s4 + $0x90] sm:$0xff]  ;;  %v183_v38 = vlaneseq }
  0x20   :  { %131 = vmatprep.subr.mxu0 %v38_v40  ;;  %343 = vmatprep.subr.mxu1 %v216_v3  ;;  %v31_v27 = vld [vmem:[%s711_s1] sm:$0xff]  ;;  %v197_v33 = vld [vmem:[%s712_s4 + $0x10] sm:$0xff]  ;;  %v212_v34 = vld [vmem:[%s712_s4 + $0x88] sm:$0xff] }
  0x21   :  { %132 = vmatpush1.msra.mxu0 %v37_v42  ;;  %344 = vmatpush3.msra.mxu1 %v200_v5  ;;  %v69_v30 = vld [vmem:[%s709_s2 + $0x100] sm:$0xff]  ;;  %v33_v31 = vmax.f32 %v29_v26, %v31_v27  ;;  %v196_v35 = vld [vmem:[%s712_s4 + $0x8] sm:$0xff]  ;;  %v184_v39 = vshrl.u32 %v183_v38, 7 }
  0x22   :  { %133 = vmatprep.subr.mxu0 %v100_v44  ;;  %345 = vmatprep.subr.mxu1 %v215_v7  ;;  %v211_v36 = vld [vmem:[%s712_s4 + $0x80] sm:$0xff] }
  0x23   :  { %134 = vmatpush2.msra.mxu0 %v99_v46  ;;  %346 = vmatpush3.msra.mxu1 %v199_v9  ;;  %v195_v37 = vld [vmem:[%s712_s4] sm:$0xff]  ;;  %v189_v40 = vsub.s32 1, %v184_v39  ;;  %v185_v41 = vsub.s32 0, %v184_v39 }
  0x24   :  { %135 = vmatprep.subr.mxu0 %v98_v48  ;;  %347 = vmatprep.subr.mxu1 %v214_v11  ;;  %v181_v42 = vld [vmem:[%s713_s3] sm:$0x3] }
  0x25   :  { %136 = vmatpush2.msra.mxu0 %v97_v50  ;;  %348 = vmatpush3.msra.mxu1 %v198_v13  ;;  %v190_v43 = vrot.slane %v181_v42, %v189_v40  ;;  %v186_v45 = vrot.slane %v181_v42, %v185_v41  ;;  %v322_v51 = vld [vmem:[%s714_s5] ss:$0 sm:$0xff] }
  0x26   :  { %137 = vmatprep.subr.mxu0 %v96_v52  ;;  %349 = vmatprep.subr.mxu1 %v213_v32 }
  0x27   :  { %138 = vmatpush2.msra.mxu0 %v95_v54  ;;  %350 = vmatpush3.msra.mxu1 %v197_v33 }
  0x28   :  { %139 = vmatprep.subr.mxu0 %v94_v56  ;;  %351 = vmatprep.subr.mxu1 %v212_v34 }
  0x29   :  { %140 = vmatpush2.msra.mxu0 %v93_v58  ;;  %352 = vmatpush3.msra.mxu1 %v196_v35 }
  0x2a   :  { %141 = vmatprep.subr.mxu0 %v92_v60  ;;  %353 = vmatprep.subr.mxu1 %v211_v36 }
  0x2b   :  { %142 = vmatpush2.msra.mxu0 %v91_v62  ;;  %354 = vmatpush3.msra.mxu1 %v195_v37 }
  0x2c   :  { %143 = vmatprep.subr.mxu0 %v90_v0 }
  0x2d   :  { %144 = vmatpush2.msra.mxu0 %v89_v2 }
  0x2e   :  { %145 = vmatprep.subr.mxu0 %v88_v4 }
  0x2f   :  { %146 = vmatpush2.msra.mxu0 %v87_v6 }
  0x30   :  { %147 = vmatprep.subr.mxu0 %v86_v8 }
  0x31   :  { %148 = vmatpush2.msra.mxu0 %v85_v10 }
  0x32   :  { %149 = vmatprep.subr.mxu0 %v84_v12 }
  0x33   :  { %150 = vmatpush2.msra.mxu0 %v83_v14 }
  0x34   :  { %151 = vmatprep.subr.mxu0 %v82_v15 }
  0x35   :  { %152 = vmatpush2.msra.mxu0 %v81_v16 }
  0x36   :  { %153 = vmatprep.subr.mxu0 %v80_v17 }
  0x37   :  { %154 = vmatpush2.msra.mxu0 %v79_v18 }
  0x38   :  { %155 = vmatprep.subr.mxu0 %v78_v19 }
  0x39   :  { %156 = vmatpush2.msra.mxu0 %v77_v20 }
  0x3a   :  { %157 = vmatprep.subr.mxu0 %v76_v21 }
  0x3b   :  { %158 = vmatpush2.msra.mxu0 %v75_v22 }
  0x3c   :  { %159 = vmatprep.subr.mxu0 %v74_v23 }
  0x3d   :  { %160 = vmatpush2.msra.mxu0 %v73_v24 }
  0x3e   :  { %161 = vmatprep.subr.mxu0 %v72_v25 }
  0x3f   :  { %162 = vmatpush2.msra.mxu0 %v71_v28 }
  0x40   :  { %163 = vmatprep.subr.mxu0 %v70_v29 }
  0x41   :  { %164 = vmatpush2.msra.mxu0 %v69_v30 }
  0x42   :  { %166 = vmatmul.mubr.f32.vlgmr.msra.gmra.mxu0 %v33_v31 }
 0x102   :  { %v167_v44 = vpop.f32.mrf.mxu0 }
 0x103   :  { %v193_v48 = vadd.f32 %v186_v45, %v167_v44 }
 0x104   :  { %v169_v46 = vpop.f32.mrf.mxu0 }
 0x105   :  { %v194_v47 = vadd.f32 %v190_v43, %v169_v46 }
 0x107   :  { %298 = vmatprep.mubr.f32.mxu1 %v194_v47 }
 0x108   :  { %299 = vmatmul.mubr.f32.vlgmr.msra.gmra.mxu1 %v193_v48 }
 0x1c8   :  { %v355_v49 = vpop.f32.mrf.mxu1 }
 0x1ca   :  { %v356_v50 = vpop.f32.mrf.mxu1 }
 0x1cb   :  { %v357_v52 = vadd.f32 %v356_v50, %v355_v49 }
 0x1cd   :  { %v301_v53 = vadd.f32 %v357_v52, %v322_v51 }
 0x1cf   :  { %v305_v54 = vsel %vm304_vm0, %v301_v53, -inf }
 0x1d0   :  { %306 = vmax.xlane.f32.xlu0 %v305_v54 }
 0x259   :  { %v307_v55 = vpop.xlane.xlu0 %306 }
 0x25a   :  { %v308_v56 = vsub.f32 %v301_v53, %v307_v55 }
 0x25c   :  { %v309_v57 = vmul.f32 1.442695, %v308_v56 }
 0x25e   :  { %358 = vpow2.f32 %v309_v57 }
 0x26b   :  { %v359_v58 = vpop.eup %358 }
 0x26c   :  { %v311_v59 = vsel %vm304_vm0, %v359_v58, 0.0 }
 0x26d   :  { %312 = vadd.xlane.f32.xlu0 %v311_v59 }
 0x2f6   :  { %v313_v60 = vpop.xlane.xlu0 %312 }
 0x2f7   :  { %360 = vlog2.f32 %v313_v60 }
 0x304   :  { %v361_v61 = vpop.eup %360 }
 0x305   :  { %v315_v62 = vmul.f32 0.6931472, %v361_v61 }
 0x307   :  { %v316_v63 = vsub.f32 %v308_v56, %v315_v62 }
 0x309   :  { %317 = vst.msk [vmem:[%s715_s6] sm:$0xff] %vm304_vm0, %v316_v63 }

// kernel: kanc_mlp_forward.2
= control target key start
LH: loop header
LB: loop body
LE: loop exit
PB: predicated region body
PF: predicated region fallthrough
CT: control target
= control target key end

     0   :  { %s1394_s9 = smov 0   ;;  %s1396_s10 = smov 0   ;;  %s2246_s0 = inlined_call_operand.vmem [shape: f32[9,512], index: 0, kind: input, shape index: {}]   ;;  %s2247_s1 = inlined_call_operand.vmem [shape: f32[5,144], index: 1, kind: input, shape index: {}]   ;;  %s2248_s2 = inlined_call_operand.vmem [shape: f32[5,512], index: 2, kind: output, shape index: {}]  }
   0x1   :  { %s1398_s11 = smov 0  }
   0x2 LB: > { %s1249_s12 = sadd.s32 4294967295, %s1376_s11   ;;  %s1411_s13 = sadd.s32 1, %s1376_s11   ;;  %s1376_s11 = sphi %s1398_s11, %s2269_s11   ;;  %s1372_s10 = sphi %s1396_s10, %s2268_s10   ;;  %s1368_s9 = sphi %s1394_s9, %s2267_s9  }
   0x3   : > { %s16_s14 = ssub.s32 %s1376_s11, %s1411_s13  ;;  %s19_s15 = sadd.s32 1, %s1372_s10 }
   0x4   : > { %p17_p0 = scmp.eq.s32.totalorder %s16_s14, 0  ;;  %p26_p1 = scmp.ne.s32.totalorder %s1372_s10, %s1368_s9 }
   0x5   : > { %p27_p2 = scmp.eq.s32.totalorder %s1376_s11, 0  ;;  %p1252_p4 = scmp.ge.s32.totalorder %s1376_s11, 2 }
   0x6   : > { %s1420_s16 = scalar_select %p17_p0, %s1372_s10, %s19_s15  }
   0x7   : > { %p28_p3 = por %p27_p2, %p26_p1  ;;  %102 = sbr.rel (%p1252_p4) target bundleno = 18 (0x12), region = 20 }
   0xc   : > { %105 = sbr.rel (!%p28_p3) target bundleno = 18 (0x12), region = 24  ;;  %s107_s17 = sand.u32 (%p28_p3), 1, %s1372_s10  }
   0xd   : > { %s1307_s18 = sshll.u32 (%p28_p3), %s1376_s11, 4  ;;  %s1253_s19 = sshll.u32 (%p28_p3), %s107_s17, 5 }
   0xe   : > { %s112_s22 = scalar_lea.vmem (%p28_p3), %s2246_s0, %s1307_s18  ;;  %s109_s23 = scalar_lea.vmem (%p28_p3), [#allocation3], %s1253_s19 }
   0xf   : > { %v125_v0 = vld [vmem:[%s112_s22] sm:$0xff] (%p28_p3)  ;;  %v127_v1 = vld [vmem:[%s112_s22 + $0x8] sm:$0xff] (%p28_p3) }
  0x10   : > { %v129_v2 = vld [vmem:[%s112_s22 + $0x20] sm:$0xff] (%p28_p3)  ;;  %126 = vst [vmem:[%s109_s23] sm:$0xff] (%p28_p3), %v125_v0  ;;  %128 = vst [vmem:[%s109_s23 + $0x8] sm:$0xff] (%p28_p3), %v127_v1  ;;  %v131_v3 = vld [vmem:[%s112_s22 + $0x28] sm:$0xff] (%p28_p3) }
  0x11   : > { %130 = vst [vmem:[%s109_s23 + $0x10] sm:$0xff] %v129_v2  ;;  %132 = vst [vmem:[%s109_s23 + $0x18] sm:$0xff] %v131_v3 }
  0x12 PF: > { %p1256_p5 = scmp.ge.s32.totalorder %s1376_s11, 1  ;;  %p137_p6 = scmp.lt.s32.totalorder %s1376_s11, 3 }
  0x14   : > { %p138_p7 = pnand %p1256_p5, %p137_p6 }
  0x16   : > { %141 = sbr.rel (%p138_p7) target bundleno = 444 (0x1bc), region = 47 }
  0x1b   : > { %s144_s24 = sand.u32 1, %s1368_s9   ;;  %v2249_v4 = vmov 0.0   ;;  %s1258_s3 = sshll.u32 %s1249_s12, 1 }
  0x1c   : > { %s1257_s25 = sshll.u32 %s144_s24, 5  ;;  %203 = vst [vmem:[#allocation2 + $0x28] sm:$0xff] %v2249_v4  ;;  %174 = vst [vmem:[#allocation2 + $0x10] sm:$0xff] %v2249_v4  ;;  %p167_p8 = scmp.lt.s32.totalorder %s1258_s3, 3 }
  0x1d   : > { %175 = vst [vmem:[#allocation2 + $0x48] sm:$0xff] %v2249_v4  ;;  %178 = vst [vmem:[#allocation2 + $0x30] sm:$0xff] %v2249_v4  ;;  %s1449_s26 = scalar_lea.vmem [#allocation3], %s1257_s25 }
  0x1e   : > { %179 = vst [vmem:[#allocation2 + $0x18] sm:$0xff] %v2249_v4  ;;  %182 = vst [vmem:[#allocation2 + $0x118] sm:$0xff] %v2249_v4  ;;  %v1452_v5 = vld [vmem:[%s1449_s26 + $0x18] sm:$0x1]  ;;  %v1490_v25 = vld [vmem:[%s1449_s26 + $0x10] sm:$0x1] }
  0x1f   : > { %183 = vst [vmem:[#allocation2 + $0x98] sm:$0xff] %v2249_v4  ;;  %186 = vst [vmem:[#allocation2 + $0x8] sm:$0xff] %v2249_v4  ;;  %vm707_vm0 = vcmp.ge.f32.partialorder %v1452_v5, 0.2  ;;  %vm709_vm1 = vcmp.lt.f32.partialorder %v1452_v5, 0.6 }
  0x20   : > { %187 = vst [vmem:[#allocation2 + $0x78] sm:$0xff] %v2249_v4  ;;  %190 = vst [vmem:[#allocation2 + $0x90] sm:$0xff] %v2249_v4  ;;  %vm715_vm2 = vcmp.ge.f32.partialorder %v1452_v5, 0.6  ;;  %vm717_vm4 = vcmp.lt.f32.partialorder %v1452_v5, 1.0  ;;  %vm723_vm5 = vcmp.ge.f32.partialorder %v1452_v5, 1.0 }
  0x21   : > { %191 = vst [vmem:[#allocation2 + $0xa0] sm:$0xff] %v2249_v4  ;;  %194 = vst [vmem:[#allocation2 + $0xe0] sm:$0xff] %v2249_v4  ;;  %vm725_vm6 = vcmp.lt.f32.partialorder %v1452_v5, 1.4  ;;  %vm731_vm7 = vcmp.ge.f32.partialorder %v1452_v5, 1.4 }
  0x22   : > { %195 = vst [vmem:[#allocation2 + $0x60] sm:$0xff] %v2249_v4  ;;  %198 = vst [vmem:[#allocation2 + $0xd8] sm:$0xff] %v2249_v4  ;;  %vm733_vm9 = vcmp.lt.f32.partialorder %v1452_v5, 1.8  ;;  %v1297_v7 = vadd.f32 -0.2, %v1452_v5 }
  0x23   : > { %199 = vst [vmem:[#allocation2 + $0xc0] sm:$0xff] %v2249_v4  ;;  %202 = vst [vmem:[#allocation2 + $0xb8] sm:$0xff] %v2249_v4  ;;  %v1467_v8 = vsub.f32 1.0, %v1452_v5  ;;  %v1471_v10 = vadd.f32 -0.6, %v1452_v5  ;;  %v1477_v12 = vadd.f32 -1.0, %v1452_v5 }
  0x24   : > { %206 = vst [vmem:[#allocation2 + $0x40] sm:$0xff] %v2249_v4  ;;  %207 = vst [vmem:[#allocation2 + $0xe8] sm:$0xff] %v2249_v4  ;;  %v1474_v11 = vsub.f32 1.4, %v1452_v5  ;;  %v833_v14 = vmul.f32 2.5, %v1297_v7  ;;  %v947_v24 = vmul.f32 1.25, %v1297_v7 }
  0x25   : > { %vm711_vm3 = vmand %vm707_vm0, %vm709_vm1  ;;  %v839_v15 = vmul.f32 2.5, %v1467_v8  ;;  %v865_v16 = vsub.f32 1.8, %v1452_v5  ;;  %v847_v18 = vmul.f32 2.5, %v1471_v10  ;;  %v861_v20 = vmul.f32 2.5, %v1477_v12  ;;  %v1543_v2 = vld [vmem:[%s1449_s26 + $0x8] sm:$0xff] }
  0x26   : > { %v1462_v6 = vsel %vm711_vm3, 1.0, %v2249_v4  ;;  %vm719_vm8 = vmand %vm715_vm2, %vm717_vm4  ;;  %v853_v19 = vmul.f32 2.5, %v1474_v11  ;;  %v951_v29 = vmul.f32 1.25, %v1474_v11  ;;  %v957_v32 = vmul.f32 1.25, %v1471_v10  ;;  %s2271_s3 = smov (!%p167_p8, %s1258_s3), 3 }
  0x27   : > { %v721_v9 = vsel %vm719_vm8, 1.0, %v2249_v4  ;;  %vm727_vm10 = vmand %vm723_vm5, %vm725_vm6  ;;  %v835_v21 = vmul.f32 %v833_v14, %v1462_v6  ;;  %v867_v23 = vmul.f32 2.5, %v865_v16  ;;  %v961_v33 = vmul.f32 1.25, %v865_v16  ;;  %s1259_s4 = sshll.u32 %s2271_s3, 3 }
  0x28   : > { %v729_v13 = vsel %vm727_vm10, 1.0, %v2249_v4  ;;  %vm735_vm11 = vmand %vm731_vm7, %vm733_vm9  ;;  %v841_v22 = vmul.f32 %v839_v15, %v721_v9  ;;  %v849_v26 = vmul.f32 %v847_v18, %v721_v9  ;;  %v1037_v35 = vmul.f32 0.8333333, %v1297_v7  ;;  %s170_s7 = scalar_lea.vmem %s2248_s2, %s1259_s4 }
  0x29   : > { %v1483_v17 = vsel %vm735_vm11, 1.0, %v2249_v4  ;;  %v855_v27 = vmul.f32 %v853_v19, %v729_v13  ;;  %v863_v28 = vmul.f32 %v861_v20, %v729_v13  ;;  %v1041_v36 = vmul.f32 0.8333333, %v865_v16 }
  0x2a   : > { %v1493_v30 = vadd.f32 %v841_v22, %v835_v21  ;;  %v869_v31 = vmul.f32 %v867_v23, %v1483_v17  ;;  %vm275_vm12 = vcmp.ge.f32.partialorder %v1490_v25, 0.2  ;;  %vm277_vm13 = vcmp.lt.f32.partialorder %v1490_v25, 0.6 }
  0x2b   : > { %v857_v34 = vadd.f32 %v855_v27, %v849_v26  ;;  %vm283_vm14 = vcmp.ge.f32.partialorder %v1490_v25, 0.6  ;;  %vm279_vm15 = vmand %vm275_vm12, %vm277_vm13  ;;  %vm285_vm0 = vcmp.lt.f32.partialorder %v1490_v25, 1.0  ;;  %vm291_vm1 = vcmp.ge.f32.partialorder %v1490_v25, 1.0 }
  0x2c   : > { %v1498_v37 = vadd.f32 %v869_v31, %v863_v28  ;;  %v949_v38 = vmul.f32 %v947_v24, %v1493_v30  ;;  %v1507_v42 = vsel %vm279_vm15, 1.0, %v2249_v4  ;;  %vm287_vm2 = vmand %vm283_vm14, %vm285_vm0  ;;  %vm293_vm3 = vcmp.lt.f32.partialorder %v1490_v25, 1.4 }
  0x2d   : > { %v953_v39 = vmul.f32 %v951_v29, %v857_v34  ;;  %v959_v40 = vmul.f32 %v957_v32, %v857_v34  ;;  %vm299_vm4 = vcmp.ge.f32.partialorder %v1490_v25, 1.4  ;;  %v289_v44 = vsel %vm287_vm2, 1.0, %v2249_v4  ;;  %vm295_vm5 = vmand %vm291_vm1, %vm293_vm3 }
  0x2e   : > { %v963_v41 = vmul.f32 %v961_v33, %v1498_v37  ;;  %vm301_vm6 = vcmp.lt.f32.partialorder %v1490_v25, 1.8  ;;  %v1275_v45 = vadd.f32 -0.2, %v1490_v25  ;;  %v297_v47 = vsel %vm295_vm5, 1.0, %v2249_v4 }
  0x2f   : > { %v1511_v43 = vadd.f32 %v953_v39, %v949_v38  ;;  %vm303_vm7 = vmand %vm299_vm4, %vm301_vm6  ;;  %v1520_v48 = vsub.f32 1.0, %v1490_v25  ;;  %v1523_v49 = vadd.f32 -0.6, %v1490_v25  ;;  %v1530_v53 = vsub.f32 1.4, %v1490_v25 }
  0x30   : > { %v1516_v46 = vadd.f32 %v963_v41, %v959_v40  ;;  %v1527_v51 = vsel %vm303_vm7, 1.0, %v2249_v4  ;;  %v401_v52 = vmul.f32 2.5, %v1275_v45  ;;  %v1536_v57 = vadd.f32 -1.0, %v1490_v25 }
  0x31   : > { %v1039_v50 = vmul.f32 %v1037_v35, %v1511_v43  ;;  %v407_v55 = vmul.f32 2.5, %v1520_v48  ;;  %v415_v56 = vmul.f32 2.5, %v1523_v49  ;;  %v421_v59 = vmul.f32 2.5, %v1530_v53 }
  0x32   : > { %v1043_v54 = vmul.f32 %v1041_v36, %v1516_v46  ;;  %v403_v58 = vmul.f32 %v401_v52, %v1507_v42  ;;  %v433_v60 = vsub.f32 1.8, %v1490_v25  ;;  %v515_v61 = vmul.f32 1.25, %v1275_v45 }
  0x33   : > { %v409_v63 = vmul.f32 %v407_v55, %v289_v44  ;;  %v417_v0 = vmul.f32 %v415_v56, %v289_v44  ;;  %v429_v1 = vmul.f32 2.5, %v1536_v57  ;;  %v423_v3 = vmul.f32 %v421_v59, %v297_v47 }
  0x34   : > { %v1045_v62 = vadd.f32 %v1043_v54, %v1039_v50  ;;  %v435_v7 = vmul.f32 2.5, %v433_v60  ;;  %v519_v9 = vmul.f32 1.25, %v1530_v53  ;;  %v525_v13 = vmul.f32 1.25, %v1523_v49 }
  0x35   : > { %v1547_v14 = vadd.f32 %v409_v63, %v403_v58  ;;  %v431_v15 = vmul.f32 %v429_v1, %v297_v47  ;;  %v529_v16 = vmul.f32 1.25, %v433_v60  ;;  %v605_v18 = vmul.f32 0.8333333, %v1275_v45  ;;  %v1597_v63 = vld [vmem:[%s1449_s26] sm:$0xff] }
  0x36   : > { %1069 = vst [vmem:[#allocation2 + $0x28] sm:$0x1] %v1045_v62  ;;  %v425_v19 = vadd.f32 %v423_v3, %v417_v0  ;;  %v437_v20 = vmul.f32 %v435_v7, %v1527_v51  ;;  %v609_v21 = vmul.f32 0.8333333, %v433_v60  ;;  %vm706_vm8 = vcmp.ge.f32.partialorder %v1543_v2, 0.2 }
  0x37   : > { %v517_v22 = vmul.f32 %v515_v61, %v1547_v14  ;;  %vm708_vm9 = vcmp.lt.f32.partialorder %v1543_v2, 0.6  ;;  %vm714_vm10 = vcmp.ge.f32.partialorder %v1543_v2, 0.6  ;;  %vm716_vm11 = vcmp.lt.f32.partialorder %v1543_v2, 1.0 }
  0x38   : > { %v1555_v23 = vadd.f32 %v437_v20, %v431_v15  ;;  %v521_v24 = vmul.f32 %v519_v9, %v425_v19  ;;  %v527_v26 = vmul.f32 %v525_v13, %v425_v19  ;;  %vm710_vm12 = vmand %vm706_vm8, %vm708_vm9  ;;  %vm722_vm13 = vcmp.ge.f32.partialorder %v1543_v2, 1.0 }
  0x39   : > { %v1559_v27 = vsel %vm710_vm12, 1.0, %v2249_v4  ;;  %vm718_vm14 = vmand %vm714_vm10, %vm716_vm11  ;;  %vm724_vm15 = vcmp.lt.f32.partialorder %v1543_v2, 1.4  ;;  %vm730_vm0 = vcmp.ge.f32.partialorder %v1543_v2, 1.4  ;;  %v1564_v28 = vsub.f32 1.0, %v1543_v2 }
  0x3a   : > { %v1566_v29 = vadd.f32 %v521_v24, %v517_v22  ;;  %v531_v31 = vmul.f32 %v529_v16, %v1555_v23  ;;  %v720_v32 = vsel %vm718_vm14, 1.0, %v2249_v4  ;;  %vm726_vm1 = vmand %vm722_vm13, %vm724_vm15  ;;  %vm732_vm2 = vcmp.lt.f32.partialorder %v1543_v2, 1.8 }
  0x3b   : > { %v728_v33 = vsel %vm726_vm1, 1.0, %v2249_v4  ;;  %vm734_vm3 = vmand %vm730_vm0, %vm732_vm2  ;;  %v1296_v34 = vadd.f32 -0.2, %v1543_v2  ;;  %v838_v35 = vmul.f32 2.5, %v1564_v28  ;;  %v1575_v36 = vadd.f32 -0.6, %v1543_v2 }
  0x3c   : > { %v1577_v39 = vadd.f32 %v531_v31, %v527_v26  ;;  %v607_v40 = vmul.f32 %v605_v18, %v1566_v29  ;;  %v1581_v41 = vsel %vm734_vm3, 1.0, %v2249_v4  ;;  %v1584_v44 = vsub.f32 1.4, %v1543_v2 }
  0x3d   : > { %v1105_v38 = vld [vmem:[#allocation2 + $0x28] sm:$0xff]  ;;  %v832_v45 = vmul.f32 2.5, %v1296_v34  ;;  %v840_v47 = vmul.f32 %v838_v35, %v720_v32  ;;  %v846_v50 = vmul.f32 2.5, %v1575_v36  ;;  %v1588_v52 = vadd.f32 -1.0, %v1543_v2 }
  0x3e   : > { %1114 = vmatprep.subr.mxu0 %v1105_v38  ;;  %v611_v54 = vmul.f32 %v609_v21, %v1577_v39  ;;  %v852_v55 = vmul.f32 2.5, %v1584_v44  ;;  %v864_v56 = vsub.f32 1.8, %v1543_v2  ;;  %v946_v58 = vmul.f32 1.25, %v1296_v34 }
  0x3f   : > { %v834_v59 = vmul.f32 %v832_v45, %v1559_v27  ;;  %v848_v60 = vmul.f32 %v846_v50, %v720_v32  ;;  %v860_v61 = vmul.f32 2.5, %v1588_v52  ;;  %v950_v62 = vmul.f32 1.25, %v1584_v44 }
  0x40   : > { %v613_v0 = vadd.f32 %v611_v54, %v607_v40  ;;  %v854_v1 = vmul.f32 %v852_v55, %v728_v33  ;;  %v866_v3 = vmul.f32 2.5, %v864_v56  ;;  %v956_v7 = vmul.f32 1.25, %v1575_v36 }
  0x41   : > { %v1600_v9 = vadd.f32 %v840_v47, %v834_v59  ;;  %v862_v13 = vmul.f32 %v860_v61, %v728_v33  ;;  %v960_v15 = vmul.f32 1.25, %v864_v56  ;;  %v1036_v16 = vmul.f32 0.8333333, %v1296_v34 }
  0x42   : > { %637 = vst [vmem:[#allocation2 + $0xb8] sm:$0x1] %v613_v0  ;;  %v856_v18 = vadd.f32 %v854_v1, %v848_v60  ;;  %v868_v19 = vmul.f32 %v866_v3, %v1581_v41  ;;  %v1040_v20 = vmul.f32 0.8333333, %v864_v56  ;;  %vm274_vm4 = vcmp.ge.f32.partialorder %v1597_v63, 0.2 }
  0x43   : > { %v948_v21 = vmul.f32 %v946_v58, %v1600_v9  ;;  %vm276_vm5 = vcmp.lt.f32.partialorder %v1597_v63, 0.6  ;;  %vm282_vm6 = vcmp.ge.f32.partialorder %v1597_v63, 0.6  ;;  %vm284_vm7 = vcmp.lt.f32.partialorder %v1597_v63, 1.0 }
  0x44   : > { %v1608_v22 = vadd.f32 %v868_v19, %v862_v13  ;;  %v952_v24 = vmul.f32 %v950_v62, %v856_v18  ;;  %v958_v26 = vmul.f32 %v956_v7, %v856_v18  ;;  %vm278_vm8 = vmand %vm274_vm4, %vm276_vm5  ;;  %vm290_vm9 = vcmp.ge.f32.partialorder %v1597_v63, 1.0 }
  0x45   : > { %v1612_v31 = vsel %vm278_vm8, 1.0, %v2249_v4  ;;  %vm286_vm10 = vmand %vm282_vm6, %vm284_vm7  ;;  %vm292_vm11 = vcmp.lt.f32.partialorder %v1597_v63, 1.4  ;;  %vm298_vm12 = vcmp.ge.f32.partialorder %v1597_v63, 1.4  ;;  %v1617_v32 = vsub.f32 1.0, %v1597_v63 }
  0x46   : > { %v1619_v33 = vadd.f32 %v952_v24, %v948_v21  ;;  %v962_v34 = vmul.f32 %v960_v15, %v1608_v22  ;;  %v288_v35 = vsel %vm286_vm10, 1.0, %v2249_v4  ;;  %vm294_vm13 = vmand %vm290_vm9, %vm292_vm11  ;;  %vm300_vm14 = vcmp.lt.f32.partialorder %v1597_v63, 1.8 }
  0x47   : > { %v296_v38 = vsel %vm294_vm13, 1.0, %v2249_v4  ;;  %vm302_vm15 = vmand %vm298_vm12, %vm300_vm14  ;;  %v1274_v40 = vadd.f32 -0.2, %v1597_v63  ;;  %v406_v45 = vmul.f32 2.5, %v1617_v32  ;;  %v1628_v47 = vadd.f32 -0.6, %v1597_v63 }
  0x48   : > { %v1630_v50 = vadd.f32 %v962_v34, %v958_v26  ;;  %v1038_v54 = vmul.f32 %v1036_v16, %v1619_v33  ;;  %v1634_v55 = vsel %vm302_vm15, 1.0, %v2249_v4  ;;  %v1637_v56 = vsub.f32 1.4, %v1597_v63 }
  0x49   : > { %2254 = vst [vmem:[#allocation4_spill] sm:$0xff] %v1628_v47  ;;  %v1104_v58 = vld [vmem:[#allocation2 + $0xb8] sm:$0xff]  ;;  %v400_v59 = vmul.f32 2.5, %v1274_v40  ;;  %v408_v60 = vmul.f32 %v406_v45, %v288_v35  ;;  %v414_v61 = vmul.f32 2.5, %v1628_v47  ;;  %v1641_v62 = vadd.f32 -1.0, %v1597_v63 }
  0x4a   : > { %2255 = vst [vmem:[#allocation5_spill] sm:$0xff] %v1630_v50  ;;  %1115 = vmatpush1.msra.mxu0 %v1104_v58  ;;  %v1042_v0 = vmul.f32 %v1040_v20, %v1630_v50  ;;  %v420_v1 = vmul.f32 2.5, %v1637_v56  ;;  %v432_v3 = vsub.f32 1.8, %v1597_v63  ;;  %v514_v7 = vmul.f32 1.25, %v1274_v40 }
  0x4b   : > { %v402_v13 = vmul.f32 %v400_v59, %v1612_v31  ;;  %v416_v15 = vmul.f32 %v414_v61, %v288_v35  ;;  %v428_v16 = vmul.f32 2.5, %v1641_v62  ;;  %v518_v18 = vmul.f32 1.25, %v1637_v56 }
  0x4c   : > { %v1044_v19 = vadd.f32 %v1042_v0, %v1038_v54  ;;  %v422_v21 = vmul.f32 %v420_v1, %v296_v38  ;;  %v434_v24 = vmul.f32 2.5, %v432_v3  ;;  %v524_v26 = vmul.f32 1.25, %v1628_v47 }
  0x4d   : > { %v1650_v34 = vadd.f32 %v408_v60, %v402_v13  ;;  %v430_v20 = vmul.f32 %v428_v16, %v296_v38  ;;  %v528_v45 = vmul.f32 1.25, %v432_v3  ;;  %v604_v50 = vmul.f32 0.8333333, %v1274_v40 }
  0x4e   : > { %1116 = vmatprep.subr.mxu0 %v1044_v19  ;;  %v424_v58 = vadd.f32 %v422_v21, %v416_v15  ;;  %v436_v4 = vmul.f32 %v434_v24, %v1634_v55  ;;  %vm699_vm0 = vcmp.ge.f32.partialorder %v1452_v5, -0.2  ;;  %vm701_vm1 = vcmp.lt.f32.partialorder %v1452_v5, 0.2 }
  0x4f   : > { %v516_v35 = vmul.f32 %v514_v7, %v1650_v34  ;;  %v1295_v54 = vadd.f32 0.2, %v1452_v5  ;;  %v1658_v59 = vsub.f32 0.6, %v1452_v5  ;;  %vm703_vm2 = vmand %vm699_vm0, %vm701_vm1  ;;  %v941_v0 = vmul.f32 1.25, %v1467_v8 }
  0x50   : > { %v1660_v60 = vadd.f32 %v436_v4, %v430_v20  ;;  %v520_v38 = vmul.f32 %v518_v18, %v424_v58  ;;  %v526_v61 = vmul.f32 %v524_v26, %v424_v58  ;;  %v608_v1 = vmul.f32 0.8333333, %v432_v3 }
  0x51   : > { %v2256_v40 = vmov 0.0   ;;  %v819_v15 = vmul.f32 2.5, %v1295_v54  ;;  %v825_v7 = vmul.f32 2.5, %v1658_v59  ;;  %v937_v21 = vmul.f32 1.25, %v1295_v54 }
  0x52   : > { %v1664_v13 = vsel %vm703_vm2, 1.0, %v2256_v40  ;;  %v1667_v16 = vadd.f32 %v520_v38, %v516_v35  ;;  %v530_v19 = vmul.f32 %v528_v45, %v1660_v60  ;;  %v943_v4 = vmul.f32 %v941_v0, %v1493_v30 }
  0x53   : > { %v821_v18 = vmul.f32 %v819_v15, %v1664_v13  ;;  %v827_v24 = vmul.f32 %v825_v7, %v1462_v6  ;;  %v1031_v26 = vmul.f32 0.8333333, %v1474_v11  ;;  %vm267_vm3 = vcmp.ge.f32.partialorder %v1490_v25, -0.2 }
  0x54   : > { %v1675_v3 = vadd.f32 %v530_v19, %v526_v61  ;;  %v606_v20 = vmul.f32 %v604_v50, %v1667_v16  ;;  %vm269_vm4 = vcmp.lt.f32.partialorder %v1490_v25, 0.2  ;;  %v1273_v58 = vadd.f32 0.2, %v1490_v25 }
  0x55   : > { %v1680_v45 = vadd.f32 %v827_v24, %v821_v18  ;;  %v1027_v35 = vmul.f32 0.8333333, %v1295_v54  ;;  %v1033_v30 = vmul.f32 %v1031_v26, %v1511_v43  ;;  %vm271_vm5 = vmand %vm267_vm3, %vm269_vm4  ;;  %v1684_v6 = vsub.f32 0.6, %v1490_v25 }
  0x56   : > { %2257 = vst [vmem:[#allocation6_spill] sm:$0xff] %v1675_v3  ;;  %v610_v11 = vmul.f32 %v608_v1, %v1675_v3  ;;  %v1688_v38 = vsel %vm271_vm5, 1.0, %v2256_v40  ;;  %v387_v61 = vmul.f32 2.5, %v1273_v58  ;;  %v509_v50 = vmul.f32 1.25, %v1520_v48 }
  0x57   : > { %v939_v0 = vmul.f32 %v937_v21, %v1680_v45  ;;  %v393_v15 = vmul.f32 2.5, %v1684_v6  ;;  %v505_v7 = vmul.f32 1.25, %v1273_v58  ;;  %v595_v54 = vmul.f32 0.8333333, %v1273_v58 }
  0x58   : > { %v612_v19 = vadd.f32 %v610_v11, %v606_v20  ;;  %v389_v43 = vmul.f32 %v387_v61, %v1688_v38  ;;  %v599_v18 = vmul.f32 0.8333333, %v1530_v53  ;;  %vm698_vm6 = vcmp.ge.f32.partialorder %v1543_v2, -0.2 }
  0x59   : > { %v1696_v1 = vadd.f32 %v943_v4, %v939_v0  ;;  %v395_v24 = vmul.f32 %v393_v15, %v1507_v42  ;;  %vm700_vm7 = vcmp.lt.f32.partialorder %v1543_v2, 0.2  ;;  %v1294_v26 = vadd.f32 0.2, %v1543_v2 }
  0x5a   : > { %1117 = vmatpush1.msra.mxu0 %v612_v19  ;;  %v511_v21 = vmul.f32 %v509_v50, %v1547_v14  ;;  %vm702_vm8 = vmand %vm698_vm6, %vm700_vm7  ;;  %v1703_v20 = vsub.f32 0.6, %v1543_v2  ;;  %v940_v58 = vmul.f32 1.25, %v1564_v28  ;;  %v1030_v53 = vmul.f32 0.8333333, %v1584_v44 }
  0x5b   : > { %v1029_v4 = vmul.f32 %v1027_v35, %v1696_v1  ;;  %v1708_v11 = vadd.f32 %v395_v24, %v389_v43  ;;  %v1711_v42 = vsel %vm702_vm8, 1.0, %v2256_v40  ;;  %v818_v61 = vmul.f32 2.5, %v1294_v26 }
  0x5c   : > { %v601_v0 = vmul.f32 %v599_v18, %v1566_v29  ;;  %v824_v14 = vmul.f32 2.5, %v1703_v20  ;;  %v936_v50 = vmul.f32 1.25, %v1294_v26  ;;  %v942_v15 = vmul.f32 %v940_v58, %v1600_v9 }
  0x5d   : > { %v1035_v19 = vadd.f32 %v1033_v30, %v1029_v4  ;;  %v507_v3 = vmul.f32 %v505_v7, %v1708_v11  ;;  %v820_v44 = vmul.f32 %v818_v61, %v1711_v42  ;;  %v1026_v47 = vmul.f32 0.8333333, %v1294_v26 }
  0x5e   : > { %v826_v35 = vmul.f32 %v824_v14, %v1559_v27  ;;  %vm266_vm9 = vcmp.ge.f32.partialorder %v1597_v63, -0.2  ;;  %vm268_vm10 = vcmp.lt.f32.partialorder %v1597_v63, 0.2  ;;  %v1272_v43 = vadd.f32 0.2, %v1597_v63 }
  0x5f   : > { %1067 = vst [vmem:[#allocation2 + $0xc0] sm:$0x1] %v1035_v19  ;;  %v1722_v29 = vadd.f32 %v511_v21, %v507_v3  ;;  %v1032_v18 = vmul.f32 %v1030_v53, %v1619_v33  ;;  %vm270_vm11 = vmand %vm266_vm9, %vm268_vm10  ;;  %v1726_v9 = vsub.f32 0.6, %v1597_v63  ;;  %v508_v30 = vmul.f32 1.25, %v1617_v32 }
  0x60   : > { %v1729_v7 = vadd.f32 %v826_v35, %v820_v44  ;;  %v1732_v27 = vsel %vm270_vm11, 1.0, %v2256_v40  ;;  %v386_v24 = vmul.f32 2.5, %v1272_v43  ;;  %v598_v26 = vmul.f32 0.8333333, %v1637_v56 }
  0x61   : > { %v597_v58 = vmul.f32 %v595_v54, %v1722_v29  ;;  %v392_v3 = vmul.f32 2.5, %v1726_v9  ;;  %v504_v21 = vmul.f32 1.25, %v1272_v43  ;;  %v510_v33 = vmul.f32 %v508_v30, %v1650_v34 }
  0x62   : > { %v938_v53 = vmul.f32 %v936_v50, %v1729_v7  ;;  %v388_v4 = vmul.f32 %v386_v24, %v1732_v27  ;;  %v594_v61 = vmul.f32 0.8333333, %v1272_v43  ;;  %vm691_vm12 = vcmp.ge.f32.partialorder %v1452_v5, -0.6 }
  0x63   : > { %v603_v14 = vadd.f32 %v601_v0, %v597_v58  ;;  %v394_v19 = vmul.f32 %v392_v3, %v1612_v31  ;;  %vm693_vm13 = vcmp.lt.f32.partialorder %v1452_v5, -0.2  ;;  %v1293_v56 = vadd.f32 0.6, %v1452_v5 }
  0x64   : > { %v1744_v54 = vadd.f32 %v942_v15, %v938_v53  ;;  %v600_v44 = vmul.f32 %v598_v26, %v1667_v16  ;;  %vm695_vm14 = vmand %vm691_vm12, %vm693_vm13  ;;  %v1748_v34 = vsub.f32 0.2, %v1452_v5  ;;  %v931_v50 = vmul.f32 1.25, %v1658_v59 }
  0x65   : > { %635 = vst [vmem:[#allocation2 + $0xd8] sm:$0x1] %v603_v14  ;;  %v1751_v35 = vadd.f32 %v394_v19, %v388_v4  ;;  %v1754_v0 = vsel %vm695_vm14, 1.0, %v2256_v40  ;;  %v805_v31 = vmul.f32 2.5, %v1293_v56  ;;  %v1021_v43 = vmul.f32 0.8333333, %v1467_v8 }
  0x66   : > { %v1101_v30 = vld [vmem:[#allocation2 + $0xc0] sm:$0xff]  ;;  %v1028_v15 = vmul.f32 %v1026_v47, %v1744_v54  ;;  %v811_v16 = vmul.f32 2.5, %v1748_v34  ;;  %v927_v24 = vmul.f32 1.25, %v1293_v56  ;;  %v933_v26 = vmul.f32 %v931_v50, %v1680_v45 }
  0x67   : > { %1118 = vmatprep.subr.mxu0 %v1101_v30  ;;  %v506_v58 = vmul.f32 %v504_v21, %v1751_v35  ;;  %v807_v3 = vmul.f32 %v805_v31, %v1754_v0  ;;  %v1017_v53 = vmul.f32 0.8333333, %v1293_v56  ;;  %vm259_vm15 = vcmp.ge.f32.partialorder %v1490_v25, -0.6 }
  0x68   : > { %v1034_v4 = vadd.f32 %v1032_v18, %v1028_v15  ;;  %v813_v14 = vmul.f32 %v811_v16, %v1664_v13  ;;  %vm261_vm0 = vcmp.lt.f32.partialorder %v1490_v25, -0.2  ;;  %v1271_v8 = vadd.f32 0.6, %v1490_v25 }
  0x69   : > { %v1766_v47 = vadd.f32 %v510_v33, %v506_v58  ;;  %v1023_v19 = vmul.f32 %v1021_v43, %v1696_v1  ;;  %vm263_vm1 = vmand %vm259_vm15, %vm261_vm0  ;;  %v1770_v45 = vsub.f32 0.2, %v1490_v25  ;;  %v499_v21 = vmul.f32 1.25, %v1684_v6 }
  0x6a   : > { %v1773_v56 = vadd.f32 %v813_v14, %v807_v3  ;;  %v1776_v18 = vsel %vm263_vm1, 1.0, %v2256_v40  ;;  %v373_v13 = vmul.f32 2.5, %v1271_v8  ;;  %v589_v50 = vmul.f32 0.8333333, %v1520_v48 }
  0x6b   : > { %v596_v31 = vmul.f32 %v594_v61, %v1766_v47  ;;  %v379_v33 = vmul.f32 2.5, %v1770_v45  ;;  %v495_v30 = vmul.f32 1.25, %v1271_v8  ;;  %v501_v1 = vmul.f32 %v499_v21, %v1708_v11 }
  0x6c   : > { %v1100_v43 = vld [vmem:[#allocation2 + $0xd8] sm:$0xff]  ;;  %v929_v15 = vmul.f32 %v927_v24, %v1773_v56  ;;  %v375_v16 = vmul.f32 %v373_v13, %v1776_v18  ;;  %v585_v58 = vmul.f32 0.8333333, %v1271_v8  ;;  %vm690_vm2 = vcmp.ge.f32.partialorder %v1543_v2, -0.6 }
  0x6d   : > { %1119 = vmatpush1.msra.mxu0 %v1100_v43  ;;  %v602_v3 = vadd.f32 %v600_v44, %v596_v31  ;;  %v381_v14 = vmul.f32 %v379_v33, %v1688_v38  ;;  %vm692_vm3 = vcmp.lt.f32.partialorder %v1543_v2, -0.2  ;;  %v1292_v48 = vadd.f32 0.6, %v1543_v2 }
  0x6e   : > { %1120 = vmatprep.subr.mxu0 %v1034_v4  ;;  %v1788_v61 = vadd.f32 %v933_v26, %v929_v15  ;;  %v591_v11 = vmul.f32 %v589_v50, %v1722_v29  ;;  %vm694_vm4 = vmand %vm690_vm2, %vm692_vm3  ;;  %v1792_v24 = vsub.f32 0.2, %v1543_v2  ;;  %v930_v8 = vmul.f32 1.25, %v1703_v20 }
  0x6f   : > { %1121 = vmatpush1.msra.mxu0 %v602_v3  ;;  %v1795_v21 = vadd.f32 %v381_v14, %v375_v16  ;;  %v1798_v38 = vsel %vm694_vm4, 1.0, %v2256_v40  ;;  %v804_v44 = vmul.f32 2.5, %v1292_v48  ;;  %v1020_v13 = vmul.f32 0.8333333, %v1564_v28 }
  0x70   : > { %v1019_v26 = vmul.f32 %v1017_v53, %v1788_v61  ;;  %v810_v4 = vmul.f32 2.5, %v1792_v24  ;;  %v926_v29 = vmul.f32 1.25, %v1292_v48  ;;  %v932_v50 = vmul.f32 %v930_v8, %v1729_v7 }
  0x71   : > { %v497_v31 = vmul.f32 %v495_v30, %v1795_v21  ;;  %v806_v33 = vmul.f32 %v804_v44, %v1798_v38  ;;  %v1016_v43 = vmul.f32 0.8333333, %v1292_v48  ;;  %vm258_vm5 = vcmp.ge.f32.partialorder %v1597_v63, -0.6 }
  0x72   : > { %v1025_v15 = vadd.f32 %v1023_v19, %v1019_v26  ;;  %v812_v16 = vmul.f32 %v810_v4, %v1711_v42  ;;  %vm260_vm6 = vcmp.lt.f32.partialorder %v1597_v63, -0.2  ;;  %v1270_v28 = vadd.f32 0.6, %v1597_v63 }
  0x73   : > { %v1810_v53 = vadd.f32 %v501_v1, %v497_v31  ;;  %v1022_v3 = vmul.f32 %v1020_v13, %v1744_v54  ;;  %vm262_vm7 = vmand %vm258_vm5, %vm260_vm6  ;;  %v1814_v7 = vsub.f32 0.2, %v1597_v63  ;;  %v498_v30 = vmul.f32 1.25, %v1726_v9 }
  0x74   : > { %1065 = vst [vmem:[#allocation2 + $0x60] sm:$0x1] %v1025_v15  ;;  %v1817_v14 = vadd.f32 %v812_v16, %v806_v33  ;;  %v1820_v19 = vsel %vm262_vm7, 1.0, %v2256_v40  ;;  %v372_v42 = vmul.f32 2.5, %v1270_v28  ;;  %v588_v48 = vmul.f32 0.8333333, %v1617_v32 }
  0x75   : > { %v587_v1 = vmul.f32 %v585_v58, %v1810_v53  ;;  %v378_v8 = vmul.f32 2.5, %v1814_v7  ;;  %v494_v54 = vmul.f32 1.25, %v1270_v28  ;;  %v500_v44 = vmul.f32 %v498_v30, %v1751_v35 }
  0x76   : > { %v928_v13 = vmul.f32 %v926_v29, %v1817_v14  ;;  %v374_v26 = vmul.f32 %v372_v42, %v1820_v19  ;;  %v584_v4 = vmul.f32 0.8333333, %v1270_v28  ;;  %vm683_vm8 = vcmp.ge.f32.partialorder %v1452_v5, -1.0 }
  0x77   : > { %v593_v31 = vadd.f32 %v591_v11, %v587_v1  ;;  %v380_v33 = vmul.f32 %v378_v8, %v1732_v27  ;;  %vm685_vm9 = vcmp.lt.f32.partialorder %v1452_v5, -0.6  ;;  %v1291_v32 = vadd.f32 1.0, %v1452_v5 }
  0x78   : > { %v1832_v58 = vadd.f32 %v932_v50, %v928_v13  ;;  %v590_v15 = vmul.f32 %v588_v48, %v1766_v47  ;;  %vm687_vm10 = vmand %vm683_vm8, %vm685_vm9  ;;  %v1836_v35 = vsub.f32 -0.2, %v1452_v5  ;;  %v921_v29 = vmul.f32 1.25, %v1748_v34 }
  0x79   : > { %633 = vst [vmem:[#allocation2 + $0xe0] sm:$0x1] %v593_v31  ;;  %v1839_v16 = vadd.f32 %v380_v33, %v374_v26  ;;  %v1842_v11 = vsel %vm687_vm10, 1.0, %v2256_v40  ;;  %v791_v27 = vmul.f32 2.5, %v1291_v32  ;;  %v1011_v28 = vmul.f32 0.8333333, %v1658_v59 }
  0x7a   : > { %v1018_v50 = vmul.f32 %v1016_v43, %v1832_v58  ;;  %v797_v30 = vmul.f32 2.5, %v1836_v35  ;;  %v917_v47 = vmul.f32 1.25, %v1291_v32  ;;  %v923_v42 = vmul.f32 %v921_v29, %v1773_v56 }
  0x7b   : > { %v1097_v48 = vld [vmem:[#allocation2 + $0x60] sm:$0xff]  ;;  %v496_v1 = vmul.f32 %v494_v54, %v1839_v16  ;;  %v793_v8 = vmul.f32 %v791_v27, %v1842_v11  ;;  %v1007_v13 = vmul.f32 0.8333333, %v1291_v32  ;;  %vm251_vm11 = vcmp.ge.f32.partialorder %v1490_v25, -1.0 }
  0x7c   : > { %1122 = vmatprep.subr.mxu0 %v1097_v48  ;;  %v1024_v26 = vadd.f32 %v1022_v3, %v1018_v50  ;;  %v799_v31 = vmul.f32 %v797_v30, %v1754_v0  ;;  %vm253_vm12 = vcmp.lt.f32.partialorder %v1490_v25, -0.6  ;;  %v1269_v59 = vadd.f32 1.0, %v1490_v25 }
  0x7d   : > { %v1854_v43 = vadd.f32 %v500_v44, %v496_v1  ;;  %v1013_v56 = vmul.f32 %v1011_v28, %v1788_v61  ;;  %vm255_vm13 = vmand %vm251_vm11, %vm253_vm12  ;;  %v1858_v54 = vsub.f32 -0.2, %v1490_v25  ;;  %v489_v33 = vmul.f32 1.25, %v1770_v45 }
  0x7e   : > { %v1861_v32 = vadd.f32 %v799_v31, %v793_v8  ;;  %v1864_v3 = vsel %vm255_vm13, 1.0, %v2256_v40  ;;  %v359_v0 = vmul.f32 2.5, %v1269_v59  ;;  %v579_v29 = vmul.f32 0.8333333, %v1684_v6 }
  0x7f   : > { %v586_v27 = vmul.f32 %v584_v4, %v1854_v43  ;;  %v365_v44 = vmul.f32 2.5, %v1858_v54  ;;  %v485_v50 = vmul.f32 1.25, %v1269_v59  ;;  %v491_v61 = vmul.f32 %v489_v33, %v1795_v21 }
  0x80   : > { %v1096_v28 = vld [vmem:[#allocation2 + $0xe0] sm:$0xff]  ;;  %v919_v30 = vmul.f32 %v917_v47, %v1861_v32  ;;  %v361_v48 = vmul.f32 %v359_v0, %v1864_v3  ;;  %v575_v1 = vmul.f32 0.8333333, %v1269_v59  ;;  %vm682_vm14 = vcmp.ge.f32.partialorder %v1543_v2, -1.0 }
  0x81   : > { %1123 = vmatpush1.msra.mxu0 %v1096_v28  ;;  %v592_v8 = vadd.f32 %v590_v15, %v586_v27  ;;  %v367_v31 = vmul.f32 %v365_v44, %v1776_v18  ;;  %vm684_vm15 = vcmp.lt.f32.partialorder %v1543_v2, -0.6  ;;  %v1290_v6 = vadd.f32 1.0, %v1543_v2 }
  0x82   : > { %1124 = vmatprep.subr.mxu0 %v1024_v26  ;;  %v1876_v4 = vadd.f32 %v923_v42, %v919_v30  ;;  %v581_v21 = vmul.f32 %v579_v29, %v1810_v53  ;;  %vm686_vm0 = vmand %vm682_vm14, %vm684_vm15  ;;  %v1880_v47 = vsub.f32 -0.2, %v1543_v2  ;;  %v920_v59 = vmul.f32 1.25, %v1792_v24 }
  0x83   : > { %1125 = vmatpush1.msra.mxu0 %v592_v8  ;;  %v1883_v33 = vadd.f32 %v367_v31, %v361_v48  ;;  %v1886_v18 = vsel %vm686_vm0, 1.0, %v2256_v40  ;;  %v790_v15 = vmul.f32 2.5, %v1290_v6  ;;  %v1010_v0 = vmul.f32 0.8333333, %v1703_v20 }
  0x84   : > { %v1009_v42 = vmul.f32 %v1007_v13, %v1876_v4  ;;  %v796_v26 = vmul.f32 2.5, %v1880_v47  ;;  %v916_v53 = vmul.f32 1.25, %v1290_v6  ;;  %v922_v29 = vmul.f32 %v920_v59, %v1817_v14 }
  0x85   : > { %v487_v27 = vmul.f32 %v485_v50, %v1883_v33  ;;  %v792_v44 = vmul.f32 %v790_v15, %v1886_v18  ;;  %v1006_v28 = vmul.f32 0.8333333, %v1290_v6  ;;  %vm250_vm1 = vcmp.ge.f32.partialorder %v1597_v63, -1.0 }
  0x86   : > { %v1015_v30 = vadd.f32 %v1013_v56, %v1009_v42  ;;  %v798_v48 = vmul.f32 %v796_v26, %v1798_v38  ;;  %vm252_vm2 = vcmp.lt.f32.partialorder %v1597_v63, -0.6  ;;  %v1268_v20 = vadd.f32 1.0, %v1597_v63 }
  0x87   : > { %v1898_v13 = vadd.f32 %v491_v61, %v487_v27  ;;  %v1012_v8 = vmul.f32 %v1010_v0, %v1832_v58  ;;  %vm254_vm3 = vmand %vm250_vm1, %vm252_vm2  ;;  %v1902_v14 = vsub.f32 -0.2, %v1597_v63  ;;  %v488_v50 = vmul.f32 1.25, %v1814_v7 }
  0x88   : > { %1063 = vst [vmem:[#allocation2 + $0xa0] sm:$0x1] %v1015_v30  ;;  %v1905_v31 = vadd.f32 %v798_v48, %v792_v44  ;;  %v1908_v56 = vsel %vm254_vm3, 1.0, %v2256_v40  ;;  %v358_v38 = vmul.f32 2.5, %v1268_v20  ;;  %v578_v6 = vmul.f32 0.8333333, %v1726_v9 }
  0x89   : > { %v577_v61 = vmul.f32 %v575_v1, %v1898_v13  ;;  %v364_v59 = vmul.f32 2.5, %v1902_v14  ;;  %v484_v58 = vmul.f32 1.25, %v1268_v20  ;;  %v490_v15 = vmul.f32 %v488_v50, %v1839_v16 }
  0x8a   : > { %v918_v0 = vmul.f32 %v916_v53, %v1905_v31  ;;  %v360_v42 = vmul.f32 %v358_v38, %v1908_v56  ;;  %v574_v26 = vmul.f32 0.8333333, %v1268_v20  ;;  %vm675_vm4 = vcmp.ge.f32.partialorder %v1452_v5, -1.4 }
  0x8b   : > { %v583_v27 = vadd.f32 %v581_v21, %v577_v61  ;;  %v366_v40 = vmul.f32 %v364_v59, %v1820_v19  ;;  %vm677_vm5 = vcmp.lt.f32.partialorder %v1452_v5, -1.0  ;;  %v1289_v9 = vadd.f32 1.4, %v1452_v5  ;;  %v1929_v21 = vld [vmem:[#allocation2 + $0x10] sm:$0xff] }
  0x8c   : > { %v1920_v1 = vadd.f32 %v922_v29, %v918_v0  ;;  %v580_v44 = vmul.f32 %v578_v6, %v1854_v43  ;;  %vm679_vm6 = vmand %vm675_vm4, %vm677_vm5  ;;  %v1924_v16 = vsub.f32 -0.6, %v1452_v5  ;;  %v911_v53 = vmul.f32 1.25, %v1836_v35 }
  0x8d   : > { %631 = vst [vmem:[#allocation2 + $0x90] sm:$0x1] %v583_v27  ;;  %v1927_v30 = vadd.f32 %v366_v40, %v360_v42  ;;  %v1932_v19 = vsel %vm679_vm6, 1.0, %v1929_v21  ;;  %v777_v48 = vmul.f32 2.5, %v1289_v9  ;;  %v1001_v29 = vmul.f32 0.8333333, %v1748_v34 }
  0x8e   : > { %v1008_v20 = vmul.f32 %v1006_v28, %v1920_v1  ;;  %v783_v43 = vmul.f32 2.5, %v1924_v16  ;;  %v907_v50 = vmul.f32 1.25, %v1289_v9  ;;  %v913_v5 = vmul.f32 %v911_v53, %v1861_v32 }
  0x8f   : > { %v1093_v38 = vld [vmem:[#allocation2 + $0xa0] sm:$0xff]  ;;  %v486_v6 = vmul.f32 %v484_v58, %v1927_v30  ;;  %v779_v61 = vmul.f32 %v777_v48, %v1932_v19  ;;  %v997_v59 = vmul.f32 0.8333333, %v1289_v9  ;;  %vm243_vm7 = vcmp.ge.f32.partialorder %v1490_v25, -1.4 }
  0x90   : > { %1126 = vmatprep.subr.mxu0 %v1093_v38  ;;  %v1014_v0 = vadd.f32 %v1012_v8, %v1008_v20  ;;  %v785_v42 = vmul.f32 %v783_v43, %v1842_v11  ;;  %vm245_vm8 = vcmp.lt.f32.partialorder %v1490_v25, -1.0  ;;  %v1267_v34 = vadd.f32 1.4, %v1490_v25 }
  0x91   : > { %v1944_v28 = vadd.f32 %v490_v15, %v486_v6  ;;  %v1003_v32 = vmul.f32 %v1001_v29, %v1876_v4  ;;  %vm247_vm9 = vmand %vm243_vm7, %vm245_vm8  ;;  %v1948_v58 = vsub.f32 -0.6, %v1490_v25  ;;  %v479_v27 = vmul.f32 1.25, %v1858_v54 }
  0x92   : > { %v1951_v40 = vadd.f32 %v785_v42, %v779_v61  ;;  %v1954_v8 = vsel %vm247_vm9, 1.0, %v1929_v21  ;;  %v345_v11 = vmul.f32 2.5, %v1267_v34  ;;  %v569_v9 = vmul.f32 0.8333333, %v1770_v45 }
  0x93   : > { %v576_v53 = vmul.f32 %v574_v26, %v1944_v28  ;;  %v351_v15 = vmul.f32 2.5, %v1948_v58  ;;  %v475_v48 = vmul.f32 1.25, %v1267_v34  ;;  %v481_v4 = vmul.f32 %v479_v27, %v1883_v33 }
  0x94   : > { %v1092_v29 = vld [vmem:[#allocation2 + $0x90] sm:$0xff]  ;;  %v909_v25 = vmul.f32 %v907_v50, %v1951_v40  ;;  %v347_v20 = vmul.f32 %v345_v11, %v1954_v8  ;;  %v565_v43 = vmul.f32 0.8333333, %v1267_v34  ;;  %vm674_vm10 = vcmp.ge.f32.partialorder %v1543_v2, -1.4 }
  0x95   : > { %1127 = vmatpush1.msra.mxu0 %v1092_v29  ;;  %v582_v38 = vadd.f32 %v580_v44, %v576_v53  ;;  %v353_v6 = vmul.f32 %v351_v15, %v1864_v3  ;;  %vm676_vm11 = vcmp.lt.f32.partialorder %v1543_v2, -1.0  ;;  %v1288_v45 = vadd.f32 1.4, %v1543_v2 }
  0x96   : > { %1128 = vmatprep.subr.mxu0 %v1014_v0  ;;  %v1966_v26 = vadd.f32 %v913_v5, %v909_v25  ;;  %v571_v33 = vmul.f32 %v569_v9, %v1898_v13  ;;  %vm678_vm12 = vmand %vm674_vm10, %vm676_vm11  ;;  %v1970_v50 = vsub.f32 -0.6, %v1543_v2  ;;  %v910_v61 = vmul.f32 1.25, %v1880_v47 }
  0x97   : > { %1129 = vmatpush1.msra.mxu0 %v582_v38  ;;  %v1973_v42 = vadd.f32 %v353_v6, %v347_v20  ;;  %v1976_v3 = vsel %vm678_vm12, 1.0, %v1929_v21  ;;  %v776_v44 = vmul.f32 2.5, %v1288_v45  ;;  %v1000_v34 = vmul.f32 0.8333333, %v1792_v24 }
  0x98   : > { %v999_v5 = vmul.f32 %v997_v59, %v1966_v26  ;;  %v782_v0 = vmul.f32 2.5, %v1970_v50  ;;  %v906_v13 = vmul.f32 1.25, %v1288_v45  ;;  %v912_v27 = vmul.f32 %v910_v61, %v1905_v31 }
  0x99   : > { %v477_v2 = vmul.f32 %v475_v48, %v1973_v42  ;;  %v778_v11 = vmul.f32 %v776_v44, %v1976_v3  ;;  %v996_v9 = vmul.f32 0.8333333, %v1288_v45  ;;  %vm242_vm13 = vcmp.ge.f32.partialorder %v1597_v63, -1.4 }
  0x9a   : > { %v1005_v53 = vadd.f32 %v1003_v32, %v999_v5  ;;  %v784_v15 = vmul.f32 %v782_v0, %v1886_v18  ;;  %vm244_vm14 = vcmp.lt.f32.partialorder %v1597_v63, -1.0  ;;  %v1266_v24 = vadd.f32 1.4, %v1597_v63 }
  0x9b   : > { %v1988_v59 = vadd.f32 %v481_v4, %v477_v2  ;;  %v1002_v29 = vmul.f32 %v1000_v34, %v1920_v1  ;;  %vm246_vm15 = vmand %vm242_vm13, %vm244_vm14  ;;  %v1992_v31 = vsub.f32 -0.6, %v1597_v63  ;;  %v478_v48 = vmul.f32 1.25, %v1902_v14  ;;  %v2007_v34 = vld [vmem:[%s1449_s26 + $0x18] sm:$0x1] }
  0x9c   : > { %1061 = vst [vmem:[#allocation2 + $0x78] sm:$0x1] %v1005_v53  ;;  %v1995_v25 = vadd.f32 %v784_v15, %v778_v11  ;;  %v1998_v18 = vsel %vm246_vm15, 1.0, %v1929_v21  ;;  %v344_v32 = vmul.f32 2.5, %v1266_v24  ;;  %v568_v20 = vmul.f32 0.8333333, %v1814_v7 }
  0x9d   : > { %v567_v4 = vmul.f32 %v565_v43, %v1988_v59  ;;  %v350_v1 = vmul.f32 2.5, %v1992_v31  ;;  %v474_v38 = vmul.f32 1.25, %v1266_v24  ;;  %v480_v6 = vmul.f32 %v478_v48, %v1927_v30 }
  0x9e   : > { %v908_v45 = vmul.f32 %v906_v13, %v1995_v25  ;;  %v346_v61 = vmul.f32 %v344_v32, %v1998_v18  ;;  %v564_v44 = vmul.f32 0.8333333, %v1266_v24  ;;  %vm667_vm0 = vcmp.ge.f32.partialorder %v2007_v34, -1.8 }
  0x9f   : > { %v573_v5 = vadd.f32 %v571_v33, %v567_v4  ;;  %v352_v0 = vmul.f32 %v350_v1, %v1908_v56  ;;  %vm669_vm1 = vcmp.lt.f32.partialorder %v2007_v34, -1.4  ;;  %v1287_v7 = vadd.f32 1.8, %v2007_v34  ;;  %v2031_v1 = vld [vmem:[%s1449_s26 + $0x10] sm:$0x1] }
  0xa0   : > { %v2013_v43 = vadd.f32 %v912_v27, %v908_v45  ;;  %v570_v30 = vmul.f32 %v568_v20, %v1944_v28  ;;  %vm671_vm2 = vmand %vm667_vm0, %vm669_vm1  ;;  %v767_v13 = vsub.f32 -1.0, %v2007_v34  ;;  %v901_v2 = vmul.f32 1.25, %v1924_v16 }
  0xa1   : > { %629 = vst [vmem:[#allocation2 + $0x8] sm:$0x1] %v573_v5  ;;  %v2018_v11 = vadd.f32 %v352_v0, %v346_v61  ;;  %v2021_v33 = vsel %vm671_vm2, 1.0, %v1929_v21  ;;  %v763_v56 = vmul.f32 2.5, %v1287_v7  ;;  %v991_v53 = vmul.f32 0.8333333, %v1836_v35 }
  0xa2   : > { %v998_v27 = vmul.f32 %v996_v9, %v2013_v43  ;;  %v769_v28 = vmul.f32 2.5, %v767_v13  ;;  %v897_v15 = vmul.f32 1.25, %v1287_v7  ;;  %v903_v24 = vmul.f32 %v901_v2, %v1951_v40 }
  0xa3   : > { %v1089_v48 = vld [vmem:[#allocation2 + $0x78] sm:$0xff]  ;;  %v476_v32 = vmul.f32 %v474_v38, %v2018_v11  ;;  %v765_v20 = vmul.f32 %v763_v56, %v2021_v33  ;;  %v987_v4 = vmul.f32 0.8333333, %v1287_v7  ;;  %vm235_vm3 = vcmp.ge.f32.partialorder %v2031_v1, -1.8 }
  0xa4   : > { %1130 = vmatprep.subr.mxu0 %v1089_v48  ;;  %v1004_v35 = vadd.f32 %v1002_v29, %v998_v27  ;;  %v771_v9 = vmul.f32 %v769_v28, %v1932_v19  ;;  %vm237_vm4 = vcmp.lt.f32.partialorder %v2031_v1, -1.4  ;;  %v1265_v45 = vadd.f32 1.8, %v2031_v1 }
  0xa5   : > { %v2037_v61 = vadd.f32 %v480_v6, %v476_v32  ;;  %v993_v40 = vmul.f32 %v991_v53, %v1966_v26  ;;  %vm239_vm5 = vmand %vm235_vm3, %vm237_vm4  ;;  %v335_v38 = vsub.f32 -1.0, %v2031_v1  ;;  %v469_v5 = vmul.f32 1.25, %v1948_v58  ;;  %v2055_v32 = vld [vmem:[%s1449_s26 + $0x8] sm:$0xff] }
  0xa6   : > { %v2042_v0 = vadd.f32 %v771_v9, %v765_v20  ;;  %v2045_v29 = vsel %vm239_vm5, 1.0, %v1929_v21  ;;  %v331_v19 = vmul.f32 2.5, %v1265_v45  ;;  %v559_v7 = vmul.f32 0.8333333, %v1858_v54 }
  0xa7   : > { %v566_v2 = vmul.f32 %v564_v44, %v2037_v61  ;;  %v337_v6 = vmul.f32 2.5, %v335_v38  ;;  %v465_v26 = vmul.f32 1.25, %v1265_v45  ;;  %v471_v56 = vmul.f32 %v469_v5, %v1973_v42 }
  0xa8   : > { %v1088_v53 = vld [vmem:[#allocation2 + $0x8] sm:$0xff]  ;;  %v899_v27 = vmul.f32 %v897_v15, %v2042_v0  ;;  %v333_v28 = vmul.f32 %v331_v19, %v2045_v29  ;;  %v555_v48 = vmul.f32 0.8333333, %v1265_v45  ;;  %vm666_vm6 = vcmp.ge.f32.partialorder %v2055_v32, -1.8 }
  0xa9   : > { %1131 = vmatpush1.msra.mxu0 %v1088_v53  ;;  %v572_v54 = vadd.f32 %v570_v30, %v566_v2  ;;  %v339_v44 = vmul.f32 %v337_v6, %v1954_v8  ;;  %vm668_vm7 = vcmp.lt.f32.partialorder %v2055_v32, -1.4  ;;  %v1286_v20 = vadd.f32 1.8, %v2055_v32 }
  0xaa   : > { %1132 = vmatprep.subr.mxu0 %v1004_v35  ;;  %v2061_v42 = vadd.f32 %v903_v24, %v899_v27  ;;  %v561_v15 = vmul.f32 %v559_v7, %v1988_v59  ;;  %vm670_vm8 = vmand %vm666_vm6, %vm668_vm7  ;;  %v766_v9 = vsub.f32 -1.0, %v2055_v32  ;;  %v900_v45 = vmul.f32 1.25, %v1970_v50 }
  0xab   : > { %1133 = vmatpush1.msra.mxu0 %v572_v54  ;;  %v2066_v5 = vadd.f32 %v339_v44, %v333_v28  ;;  %v2069_v8 = vsel %vm670_vm8, 1.0, %v1929_v21  ;;  %v762_v30 = vmul.f32 2.5, %v1286_v20  ;;  %v990_v19 = vmul.f32 0.8333333, %v1880_v47  ;;  %v2081_v54 = vld [vmem:[%s1449_s26] sm:$0xff] }
  0xac   : > { %v989_v24 = vmul.f32 %v987_v4, %v2061_v42  ;;  %v768_v59 = vmul.f32 2.5, %v766_v9  ;;  %v896_v35 = vmul.f32 1.25, %v1286_v20  ;;  %v902_v7 = vmul.f32 %v900_v45, %v1995_v25 }
  0xad   : > { %v467_v2 = vmul.f32 %v465_v26, %v2066_v5  ;;  %v764_v6 = vmul.f32 %v762_v30, %v2069_v8  ;;  %v986_v53 = vmul.f32 0.8333333, %v1286_v20  ;;  %vm234_vm9 = vcmp.ge.f32.partialorder %v1597_v63, -1.8 }
  0xae   : > { %v995_v27 = vadd.f32 %v993_v40, %v989_v24  ;;  %v770_v28 = vmul.f32 %v768_v59, %v1976_v3  ;;  %vm236_vm10 = vcmp.lt.f32.partialorder %v2081_v54, -1.4  ;;  %v1264_v47 = vadd.f32 1.8, %v2081_v54 }
  0xaf   : > { %v2085_v4 = vadd.f32 %v471_v56, %v467_v2  ;;  %v992_v25 = vmul.f32 %v990_v19, %v2013_v43  ;;  %vm238_vm11 = vmand %vm234_vm9, %vm236_vm10  ;;  %v334_v26 = vsub.f32 -1.0, %v2081_v54  ;;  %v468_v44 = vmul.f32 1.25, %v1992_v31 }
  0xb0   : > { %1059 = vst [vmem:[#allocation2 + $0x98] sm:$0x1] %v995_v27  ;;  %v2090_v63 = vadd.f32 %v770_v28, %v764_v6  ;;  %v2093_v3 = vsel %vm238_vm11, 1.0, %v1929_v21  ;;  %v330_v40 = vmul.f32 2.5, %v1264_v47  ;;  %v558_v20 = vmul.f32 0.8333333, %v1902_v14 }
  0xb1   : > { %v557_v45 = vmul.f32 %v555_v48, %v2085_v4  ;;  %v336_v56 = vmul.f32 2.5, %v334_v26  ;;  %v464_v43 = vmul.f32 1.25, %v1264_v47  ;;  %v470_v30 = vmul.f32 %v468_v44, %v2018_v11 }
  0xb2   : > { %v898_v19 = vmul.f32 %v896_v35, %v2090_v63  ;;  %v332_v24 = vmul.f32 %v330_v40, %v2093_v3  ;;  %v554_v59 = vmul.f32 0.8333333, %v1264_v47  ;;  %vm659_vm12 = vcmp.ge.f32.partialorder %v2007_v34, -2.2 }
  0xb3   : > { %v563_v2 = vadd.f32 %v561_v15, %v557_v45  ;;  %v338_v6 = vmul.f32 %v336_v56, %v1998_v18  ;;  %vm661_vm13 = vcmp.lt.f32.partialorder %v2007_v34, -1.8  ;;  %v1285_v14 = vadd.f32 2.2, %v2007_v34 }
  0xb4   : > { %v2106_v48 = vadd.f32 %v902_v7, %v898_v19  ;;  %v560_v27 = vmul.f32 %v558_v20, %v2037_v61  ;;  %vm663_vm14 = vmand %vm659_vm12, %vm661_vm13  ;;  %v753_v11 = vsub.f32 -1.4, %v2007_v34  ;;  %v891_v35 = vmul.f32 1.25, %v767_v13 }
  0xb5   : > { %627 = vst [vmem:[#allocation2 + $0x118] sm:$0x1] %v563_v2  ;;  %v2112_v28 = vadd.f32 %v338_v6, %v332_v24  ;;  %v665_v15 = vsel %vm663_vm14, 1.0, %v1929_v21  ;;  %v749_v18 = vmul.f32 2.5, %v1285_v14  ;;  %v981_v47 = vmul.f32 0.8333333, %v1924_v16 }
  0xb6   : > { %v988_v44 = vmul.f32 %v986_v53, %v2106_v48  ;;  %v755_v7 = vmul.f32 2.5, %v753_v11  ;;  %v887_v40 = vmul.f32 1.25, %v1285_v14  ;;  %v893_v61 = vmul.f32 %v891_v35, %v2042_v0 }
  0xb7   : > { %v1085_v20 = vld [vmem:[#allocation2 + $0x98] sm:$0xff]  ;;  %v466_v45 = vmul.f32 %v464_v43, %v2112_v28  ;;  %v751_v56 = vmul.f32 %v749_v18, %v665_v15  ;;  %v977_v19 = vmul.f32 0.8333333, %v1285_v14  ;;  %vm227_vm15 = vcmp.ge.f32.partialorder %v2031_v1, -2.2 }
  0xb8   : > { %1134 = vmatprep.subr.mxu0 %v1085_v20  ;;  %v994_v13 = vadd.f32 %v992_v25, %v988_v44  ;;  %v757_v24 = vmul.f32 %v755_v7, %v2021_v33  ;;  %vm229_vm0 = vcmp.lt.f32.partialorder %v2031_v1, -1.8  ;;  %v1263_v16 = vadd.f32 2.2, %v2031_v1 }
  0xb9   : > { %v2123_v53 = vadd.f32 %v470_v30, %v466_v45  ;;  %v983_v2 = vmul.f32 %v981_v47, %v2061_v42  ;;  %vm231_vm1 = vmand %vm227_vm15, %vm229_vm0  ;;  %v321_v0 = vsub.f32 -1.4, %v2031_v1  ;;  %v459_v43 = vmul.f32 1.25, %v335_v38 }
  0xba   : > { %v759_v6 = vadd.f32 %v757_v24, %v751_v56  ;;  %v233_v14 = vsel %vm231_vm1, 1.0, %v1929_v21  ;;  %v317_v25 = vmul.f32 2.5, %v1263_v16  ;;  %v549_v33 = vmul.f32 0.8333333, %v1948_v58 }
  0xbb   : > { %v556_v11 = vmul.f32 %v554_v59, %v2123_v53  ;;  %v323_v35 = vmul.f32 2.5, %v321_v0  ;;  %v455_v15 = vmul.f32 1.25, %v1263_v16  ;;  %v461_v30 = vmul.f32 %v459_v43, %v2066_v5 }
  0xbc   : > { %v1084_v18 = vld [vmem:[#allocation2 + $0x118] sm:$0xff]  ;;  %v889_v42 = vmul.f32 %v887_v40, %v759_v6  ;;  %v319_v47 = vmul.f32 %v317_v25, %v233_v14  ;;  %v545_v44 = vmul.f32 0.8333333, %v1263_v16  ;;  %vm658_vm2 = vcmp.ge.f32.partialorder %v2055_v32, -2.2 }
  0xbd   : > { %1135 = vmatpush1.msra.mxu0 %v1084_v18  ;;  %v562_v38 = vadd.f32 %v560_v27, %v556_v11  ;;  %v325_v7 = vmul.f32 %v323_v35, %v2045_v29  ;;  %vm660_vm3 = vcmp.lt.f32.partialorder %v2055_v32, -1.8  ;;  %v1284_v58 = vadd.f32 2.2, %v2055_v32 }
  0xbe   : > { %1136 = vmatprep.subr.mxu0 %v994_v13  ;;  %v895_v59 = vadd.f32 %v893_v61, %v889_v42  ;;  %v551_v20 = vmul.f32 %v549_v33, %v2085_v4  ;;  %vm662_vm4 = vmand %vm658_vm2, %vm660_vm3  ;;  %v752_v5 = vsub.f32 -1.4, %v2055_v32  ;;  %v890_v40 = vmul.f32 1.25, %v766_v9 }
  0xbf   : > { %1137 = vmatpush1.msra.mxu0 %v562_v38  ;;  %v327_v45 = vadd.f32 %v325_v7, %v319_v47  ;;  %v664_v27 = vsel %vm662_vm4, 1.0, %v1929_v21  ;;  %v748_v56 = vmul.f32 2.5, %v1284_v58  ;;  %v980_v29 = vmul.f32 0.8333333, %v1970_v50 }
  0xc0   : > { %v979_v24 = vmul.f32 %v977_v19, %v895_v59  ;;  %v754_v16 = vmul.f32 2.5, %v752_v5  ;;  %v886_v0 = vmul.f32 1.25, %v1284_v58  ;;  %v892_v61 = vmul.f32 %v890_v40, %v2090_v63 }
  0xc1   : > { %v457_v13 = vmul.f32 %v455_v15, %v327_v45  ;;  %v750_v4 = vmul.f32 %v748_v56, %v664_v27  ;;  %v976_v43 = vmul.f32 0.8333333, %v1284_v58  ;;  %vm226_vm5 = vcmp.ge.f32.partialorder %v2081_v54, -2.2 }
  0xc2   : > { %v985_v6 = vadd.f32 %v983_v2, %v979_v24  ;;  %v756_v9 = vmul.f32 %v754_v16, %v2069_v8  ;;  %vm228_vm6 = vcmp.lt.f32.partialorder %v2081_v54, -1.8  ;;  %v1262_v14 = vadd.f32 2.2, %v2081_v54 }
  0xc3   : > { %v463_v25 = vadd.f32 %v461_v30, %v457_v13  ;;  %v982_v50 = vmul.f32 %v980_v29, %v2106_v48  ;;  %vm230_vm7 = vmand %vm226_vm5, %vm228_vm6  ;;  %v320_v19 = vsub.f32 -1.4, %v2081_v54  ;;  %v458_v63 = vmul.f32 1.25, %v334_v26 }
  0xc4   : > { %1057 = vst [vmem:[#allocation2 + $0x18] sm:$0x1] %v985_v6  ;;  %v758_v33 = vadd.f32 %v756_v9, %v750_v4  ;;  %v232_v11 = vsel %vm230_vm7, 1.0, %v1929_v21  ;;  %v316_v2 = vmul.f32 2.5, %v1262_v14  ;;  %v548_v8 = vmul.f32 0.8333333, %v1992_v31 }
  0xc5   : > { %v547_v35 = vmul.f32 %v545_v44, %v463_v25  ;;  %v322_v15 = vmul.f32 2.5, %v320_v19  ;;  %v454_v18 = vmul.f32 1.25, %v1262_v14  ;;  %v460_v30 = vmul.f32 %v458_v63, %v2112_v28 }
  0xc6   : > { %v888_v42 = vmul.f32 %v886_v0, %v758_v33  ;;  %v318_v48 = vmul.f32 %v316_v2, %v232_v11  ;;  %v544_v47 = vmul.f32 0.8333333, %v1262_v14  ;;  %v1283_v38 = vmul.f32 -1.442695, %v2007_v34 }
  0xc7   : > { %v553_v7 = vadd.f32 %v551_v20, %v547_v35  ;;  %v324_v26 = vmul.f32 %v322_v15, %v2093_v3  ;;  %v1261_v58 = vmul.f32 -1.442695, %v2031_v1  ;;  %v1282_v59 = vmul.f32 -1.442695, %v2055_v32 }
  0xc8   : > { %v894_v5 = vadd.f32 %v892_v61, %v888_v42  ;;  %1333 = vpow2.f32 %v1283_v38  ;;  %v1260_v31 = vmul.f32 -1.442695, %v2081_v54  ;;  %vm739_vm8 = vcmp.ge.f32.partialorder %v2007_v34, 1.8 }
  0xc9   : > { %625 = vst [vmem:[#allocation2 + $0x30] sm:$0x1] %v553_v7  ;;  %v326_v28 = vadd.f32 %v324_v26, %v318_v48  ;;  %1335 = vpow2.f32 %v1261_v58  ;;  %vm741_vm9 = vcmp.lt.f32.partialorder %v2007_v34, 2.2  ;;  %v1303_v44 = vadd.f32 -1.4, %v2007_v34 }
  0xca   : > { %v978_v20 = vmul.f32 %v976_v43, %v894_v5  ;;  %1337 = vpow2.f32 %v1282_v59  ;;  %vm2163_vm10 = vmand %vm739_vm8, %vm741_vm9  ;;  %v879_v40 = vsub.f32 2.2, %v2007_v34  ;;  %v967_v45 = vmul.f32 1.25, %v1477_v12 }
  0xcb   : > { %v1081_v27 = vld [vmem:[#allocation2 + $0x18] sm:$0xff]  ;;  %v456_v56 = vmul.f32 %v454_v18, %v326_v28  ;;  %1339 = vpow2.f32 %v1260_v31  ;;  %v745_v29 = vsel %vm2163_vm10, 1.0, %v1929_v21  ;;  %v875_v24 = vmul.f32 2.5, %v1303_v44 }
  0xcc   : > { %1138 = vmatprep.subr.mxu0 %v1081_v27  ;;  %v984_v16 = vadd.f32 %v982_v50, %v978_v20  ;;  %v550_v0 = vmul.f32 %v548_v8, %v2123_v53  ;;  %v881_v61 = vmul.f32 2.5, %v879_v40  ;;  %v971_v43 = vmul.f32 1.25, %v879_v40  ;;  %v1073_v50 = vld [vmem:[%s2247_s1 + $0x8] sm:$0x1f] }
  0xcd   : > { %v462_v13 = vadd.f32 %v460_v30, %v456_v56  ;;  %v877_v4 = vmul.f32 %v875_v24, %v1483_v17  ;;  %v1047_v6 = vmul.f32 0.8333333, %v1471_v10  ;;  %vm307_vm11 = vcmp.ge.f32.partialorder %v2031_v1, 1.8 }
  0xce   : > { %v883_v12 = vmul.f32 %v881_v61, %v745_v29  ;;  %vm309_vm12 = vcmp.lt.f32.partialorder %v2031_v1, 2.2  ;;  %v1281_v9 = vadd.f32 -1.4, %v2031_v1  ;;  %v969_v25 = vmul.f32 %v967_v45, %v1498_v37 }
  0xcf   : > { %v546_v14 = vmul.f32 %v544_v47, %v462_v13  ;;  %vm2179_vm13 = vmand %vm307_vm11, %vm309_vm12  ;;  %v447_v53 = vsub.f32 2.2, %v2031_v1  ;;  %v535_v17 = vmul.f32 1.25, %v1536_v57  ;;  %v615_v11 = vmul.f32 0.8333333, %v1523_v49 }
  0xd0   : > { %v1080_v19 = vld [vmem:[#allocation2 + $0x30] sm:$0xff]  ;;  %v885_v10 = vadd.f32 %v883_v12, %v877_v4  ;;  %v313_v63 = vsel %vm2179_vm13, 1.0, %v1929_v21  ;;  %v443_v33 = vmul.f32 2.5, %v1281_v9  ;;  %v1049_v37 = vmul.f32 %v1047_v6, %v1516_v46 }
  0xd1   : > { %1139 = vmatpush1.msra.mxu0 %v1080_v19  ;;  %v552_v2 = vadd.f32 %v550_v0, %v546_v14  ;;  %v1051_v8 = vmul.f32 0.8333333, %v879_v40  ;;  %v449_v35 = vmul.f32 2.5, %v447_v53  ;;  %v537_v57 = vmul.f32 %v535_v17, %v1555_v23  ;;  %v2264_v17 = vld [vmem:[#allocation5_spill] sm:$0xff] }
  0xd2   : > { %1140 = vmatprep.subr.mxu0 %v984_v16  ;;  %v973_v15 = vmul.f32 %v971_v43, %v885_v10  ;;  %v445_v18 = vmul.f32 %v443_v33, %v1527_v51  ;;  %v539_v30 = vmul.f32 1.25, %v447_v53  ;;  %vm738_vm14 = vcmp.ge.f32.partialorder %v2055_v32, 1.8 }
  0xd3   : > { %1141 = vmatpush1.msra.mxu0 %v552_v2  ;;  %v451_v42 = vmul.f32 %v449_v35, %v313_v63  ;;  %vm740_vm15 = vcmp.lt.f32.partialorder %v2055_v32, 2.2  ;;  %v1302_v49 = vadd.f32 -1.4, %v2055_v32  ;;  %v617_v46 = vmul.f32 %v615_v11, %v1577_v39 }
  0xd4   : > { %v975_v48 = vadd.f32 %v973_v15, %v969_v25  ;;  %v619_v47 = vmul.f32 0.8333333, %v447_v53  ;;  %vm2196_vm0 = vmand %vm738_vm14, %vm740_vm15  ;;  %v878_v51 = vsub.f32 2.2, %v2055_v32  ;;  %v966_v59 = vmul.f32 1.25, %v1588_v52 }
  0xd5   : > { %v1334_v23 = vpop.eup %1333  ;;  %v453_v7 = vadd.f32 %v451_v42, %v445_v18  ;;  %v744_v26 = vsel %vm2196_vm0, 1.0, %v1929_v21  ;;  %v874_v58 = vmul.f32 2.5, %v1302_v49  ;;  %vm306_vm1 = vcmp.ge.f32.partialorder %v2081_v54, 1.8 }
  0xd6   : > { %v1336_v5 = vpop.eup %1335  ;;  %v649_v31 = vadd.f32 1.0, %v1334_v23  ;;  %v1053_v28 = vmul.f32 %v1051_v8, %v975_v48  ;;  %v880_v39 = vmul.f32 2.5, %v878_v51  ;;  %v970_v45 = vmul.f32 1.25, %v878_v51 }
  0xd7   : > { %v1338_v44 = vpop.eup %1337  ;;  %v217_v20 = vadd.f32 1.0, %v1336_v5  ;;  %v541_v3 = vmul.f32 %v539_v30, %v453_v7  ;;  %v876_v40 = vmul.f32 %v874_v58, %v1581_v41  ;;  %v1046_v0 = vmul.f32 0.8333333, %v1575_v36  ;;  %v2266_v30 = vld [vmem:[#allocation6_spill] sm:$0xff] }
  0xd8   : > { %v1340_v27 = vpop.eup %1339  ;;  %1341 = vrcp.f32 %v649_v31  ;;  %v648_v56 = vadd.f32 1.0, %v1338_v44  ;;  %v1055_v29 = vadd.f32 %v1053_v28, %v1049_v37  ;;  %v882_v24 = vmul.f32 %v880_v39, %v744_v26  ;;  %v2265_v37 = vld [vmem:[#allocation4_spill] sm:$0xff] }
  0xd9   : > { %1343 = vrcp.f32 %v217_v20  ;;  %v216_v16 = vadd.f32 1.0, %v1340_v27  ;;  %v543_v52 = vadd.f32 %v541_v3, %v537_v57  ;;  %v968_v13 = vmul.f32 %v966_v59, %v1608_v22 }
  0xda   : > { %1345 = vrcp.f32 %v648_v56  ;;  %1071 = vst [vmem:[#allocation2 + $0xe8] sm:$0x1] %v1055_v29  ;;  %v884_v61 = vadd.f32 %v882_v24, %v876_v40  ;;  %vm308_vm2 = vcmp.lt.f32.partialorder %v2081_v54, 2.2  ;;  %v1280_v4 = vadd.f32 -1.4, %v2081_v54 }
  0xdb   : > { %1347 = vrcp.f32 %v216_v16  ;;  %v621_v41 = vmul.f32 %v619_v47, %v543_v52  ;;  %vm310_vm3 = vmand %vm306_vm1, %vm308_vm2  ;;  %v446_v43 = vsub.f32 2.2, %v2081_v54  ;;  %v1050_v12 = vmul.f32 0.8333333, %v878_v51 }
  0xdc   : > { %v972_v6 = vmul.f32 %v970_v45, %v884_v61  ;;  %v312_v36 = vsel %vm310_vm3, 1.0, %v1929_v21  ;;  %v442_v14 = vmul.f32 2.5, %v1280_v4  ;;  %v534_v22 = vmul.f32 1.25, %v1641_v62 }
  0xdd   : > { %v623_v9 = vadd.f32 %v621_v41, %v617_v46  ;;  %v448_v25 = vmul.f32 2.5, %v446_v43  ;;  %v1048_v19 = vmul.f32 %v1046_v0, %v2264_v17  ;;  %v538_v33 = vmul.f32 1.25, %v446_v43 }
  0xde   : > { %v974_v53 = vadd.f32 %v972_v6, %v968_v13  ;;  %v444_v10 = vmul.f32 %v442_v14, %v1634_v55  ;;  %vm1110_vm4 = vcmask 130048   ;;  %v536_v2 = vmul.f32 %v534_v22, %v1660_v60 }
  0xdf   : > { %639 = vst [vmem:[#allocation2 + $0x40] sm:$0x1] %v623_v9  ;;  %v450_v63 = vmul.f32 %v448_v25, %v312_v36  ;;  %1304 = vmatprep.mubr.msk.f32.mxu0 %vm1110_vm4, %v1073_v50  ;;  %v614_v62 = vmul.f32 0.8333333, %v2265_v37  ;;  %v618_v15 = vmul.f32 0.8333333, %v446_v43 }
  0xe0   : > { %v1052_v11 = vmul.f32 %v1050_v12, %v974_v53 }
  0xe1   : > { %v452_v21 = vadd.f32 %v450_v63, %v444_v10  ;;  %v616_v42 = vmul.f32 %v614_v62, %v2266_v30  ;;  %v1109_v58 = vld [vmem:[#allocation2 + $0xe8] sm:$0xff] }
  0xe2   : > { %v1054_v8 = vadd.f32 %v1052_v11, %v1048_v19 }
  0xe3   : > { %v540_v35 = vmul.f32 %v538_v33, %v452_v21 }
  0xe5   : > { %v1342_v18 = vpop.eup %1341  ;;  %v542_v57 = vadd.f32 %v540_v35, %v536_v2 }
  0xe6   : > { %v1344_v49 = vpop.eup %1343  ;;  %v655_v55 = vmul.f32 %v2007_v34, %v1342_v18  ;;  %v1108_v34 = vld [vmem:[#allocation2 + $0x40] sm:$0xff] }
  0xe7   : > { %v1346_v48 = vpop.eup %1345  ;;  %v223_v46 = vmul.f32 %v2031_v1, %v1344_v49  ;;  %v620_v47 = vmul.f32 %v618_v15, %v542_v57  ;;  %v1072_v1 = vld [vmem:[%s2247_s1] sm:$0x1f] }
  0xe8   : > { %v1348_v38 = vpop.eup %1347  ;;  %657 = vst [vmem:[#allocation2 + $0x48] sm:$0x1] %v655_v55  ;;  %v654_v60 = vmul.f32 %v2055_v32, %v1346_v48 }
  0xe9   : > { %225 = vst [vmem:[#allocation2 + $0x10] sm:$0x1] %v223_v46  ;;  %v222_v51 = vmul.f32 %v2081_v54, %v1348_v38  ;;  %v622_v23 = vadd.f32 %v620_v47, %v616_v42 }
  0xef   : > { %v1077_v7 = vld [vmem:[#allocation2 + $0x48] sm:$0xff] }
  0xf0   : > { %1142 = vmatprep.subr.mxu0 %v1077_v7  ;;  %v1076_v26 = vld [vmem:[#allocation2 + $0x10] sm:$0xff] }
  0xf1   : > { %1143 = vmatpush1.msra.mxu0 %v1076_v26 }
  0xf2   : > { %1144 = vmatprep.subr.mxu0 %v654_v60 }
  0xf3   : > { %1145 = vmatpush1.msra.mxu0 %v222_v51 }
  0xf4   : > { %1174 = vmatprep.subr.mxu0 %v1109_v58 }
  0xf5   : > { %1175 = vmatpush2.msra.mxu0 %v1108_v34 }
  0xf6   : > { %1176 = vmatprep.subr.mxu0 %v1054_v8 }
  0xf7   : > { %1177 = vmatpush2.msra.mxu0 %v622_v23 }
  0xf8   : > { %1179 = vmatmul.mubr.f32.vlgmr.msra.gmra.mxu0 %v1072_v1 }
 0x1b8   : > { %v1180_v32 = vpop.f32.mrf.mxu0 }
 0x1b9   : > { %1185 = vst [vmem:[%s170_s7] sm:$0x1f] %v1180_v32 }
 0x1ba   : > { %v1182_v54 = vpop.f32.mrf.mxu0 }
 0x1bb   : > { %1186 = vst [vmem:[%s170_s7 + $0x8] sm:$0x1f] %v1182_v54 }
 0x1bc PF: > { %p9_p9 = scmp.ge.s32.totalorder %s1411_s13, 4   ;;  %s2267_s9 = smov %s1372_s10 }
 0x1bd   : > { %s2268_s10 = smov %s1420_s16  ;;  %s2269_s11 = smov %s1411_s13 }
 0x1be   :  { %11 = sbr.rel (!%p9_p9) target bundleno = 2 (0x2), region = 86 }

</bundles_post_ra>
